<compile_context>
chip_gen: v5e
topology: v5e:2x2
jax: 0.10.0
libtpu: 0.0.40
codegen_flags: <defaults>
</compile_context>

<pallas_src>
import numpy as np
import jax
import jax.numpy as jnp
from jax.experimental import pallas as pl
from jax.experimental.pallas import tpu as pltpu


# ----------------------------------------------------------------------------
# Row-tiled matmul kernels (in_linear, STFT / iSTFT projections)
# ----------------------------------------------------------------------------
def _mm_bias_kernel(x_ref, w_ref, b_ref, o_ref):
    o_ref[...] = (
        jnp.dot(x_ref[...], w_ref[...], preferred_element_type=jnp.float32)
        + b_ref[...]
    )


def _mm_kernel(x_ref, w_ref, o_ref):
    o_ref[...] = jnp.dot(x_ref[...], w_ref[...], preferred_element_type=jnp.float32)


def matmul_bias(x, w, b, tm=512):
    """y = x @ w + b.  x:[M,K], w:[K,N], b:[N].  Row-tiled, no pre-padding."""
    M, K = x.shape
    N = w.shape[1]
    tm = min(tm, max(8, -(-M // 8) * 8))
    return pl.pallas_call(
        _mm_bias_kernel,
        out_shape=jax.ShapeDtypeStruct((M, N), jnp.float32),
        grid=(pl.cdiv(M, tm),),
        in_specs=[
            pl.BlockSpec((tm, K), lambda i: (i, 0)),
            pl.BlockSpec((K, N), lambda i: (0, 0)),
            pl.BlockSpec((1, N), lambda i: (0, 0)),
        ],
        out_specs=pl.BlockSpec((tm, N), lambda i: (i, 0)),
        compiler_params=pltpu.CompilerParams(dimension_semantics=("parallel",)),
    )(x, w, b.reshape(1, N))


def matmul_plain(x, w, tm=512):
    """y = x @ w (no bias) — used for the STFT / iSTFT projections."""
    M, K = x.shape
    N = w.shape[1]
    tm = min(tm, max(8, -(-M // 8) * 8))
    return pl.pallas_call(
        _mm_kernel,
        out_shape=jax.ShapeDtypeStruct((M, N), jnp.float32),
        grid=(pl.cdiv(M, tm),),
        in_specs=[
            pl.BlockSpec((tm, K), lambda i: (i, 0)),
            pl.BlockSpec((K, N), lambda i: (0, 0)),
        ],
        out_specs=pl.BlockSpec((tm, N), lambda i: (i, 0)),
        compiler_params=pltpu.CompilerParams(dimension_semantics=("parallel",)),
    )(x, w)


# ----------------------------------------------------------------------------
# Fused inp_conv (2 -> width, 1x1) + LayerNorm(F) + PReLU(width)
#   K=2 "matmul" done as VPU broadcast math; output already [B, T, C, F].
# ----------------------------------------------------------------------------
def inp_fused(hr, hi, w0, w1, bias, gamma, beta, alpha, tt=8):
    B, T, F_ = hr.shape
    width = w0.shape[0]

    def kernel(hr_ref, hi_ref, w0_ref, w1_ref, b_ref, g_ref, be_ref, a_ref, o_ref):
        hrv = hr_ref[0]                                  # [tt, F]
        hiv = hi_ref[0]
        y = (w0_ref[...][None] * hrv[:, None, :]
             + w1_ref[...][None] * hiv[:, None, :]
             + b_ref[...][None])                         # [tt, width, F]
        mu = jnp.mean(y, axis=-1, keepdims=True)
        yc = y - mu
        var = jnp.mean(yc * yc, axis=-1, keepdims=True)
        y = yc * jax.lax.rsqrt(var + 1e-5) * g_ref[...][None] + be_ref[...][None]
        a = a_ref[...][None]                             # [1, width, 1]
        o_ref[0] = jnp.where(y >= 0.0, y, a * y)

    return pl.pallas_call(
        kernel,
        out_shape=jax.ShapeDtypeStruct((B, T, width, F_), jnp.float32),
        grid=(B, pl.cdiv(T, tt)),
        in_specs=[
            pl.BlockSpec((1, tt, F_), lambda b, i: (b, i, 0)),
            pl.BlockSpec((1, tt, F_), lambda b, i: (b, i, 0)),
            pl.BlockSpec((width, 1), lambda b, i: (0, 0)),
            pl.BlockSpec((width, 1), lambda b, i: (0, 0)),
            pl.BlockSpec((width, 1), lambda b, i: (0, 0)),
            pl.BlockSpec((1, F_), lambda b, i: (0, 0)),
            pl.BlockSpec((1, F_), lambda b, i: (0, 0)),
            pl.BlockSpec((width, 1), lambda b, i: (0, 0)),
        ],
        out_specs=pl.BlockSpec((1, tt, width, F_), lambda b, i: (b, i, 0, 0)),
        compiler_params=pltpu.CompilerParams(
            dimension_semantics=("parallel", "parallel")),
    )(hr, hi, w0, w1, bias, gamma, beta, alpha)


# ----------------------------------------------------------------------------
# Fused DenseBlock step: dilated (2,3) conv + LayerNorm(F) + PReLU(Cout)
#   xp is pre-padded:  T by (dil, 0),  F by (1, 1).  Two time taps come from
#   two BlockSpecs into the SAME buffer (block index shift of `dil`).
# ----------------------------------------------------------------------------
def dense_conv_ln_prelu(xp, w, bias, gamma, beta, alpha, dil):
    B, Tp, Cin, Fp = xp.shape
    T = Tp - dil
    F_ = Fp - 2
    Cout = w.shape[2]

    def kernel(xa_ref, xb_ref, w_ref, b_ref, g_ref, be_ref, a_ref, o_ref):
        xa = xa_ref[0, 0]                                # [Cin, Fp]  (kt = 0 tap)
        xb = xb_ref[0, 0]                                # [Cin, Fp]  (kt = 1 tap)
        acc = None
        for kt, tap in ((0, xa), (1, xb)):
            for kf in range(3):
                term = jnp.dot(w_ref[kt, kf], tap[:, kf:kf + F_],
                               preferred_element_type=jnp.float32)   # [Cout, F]
                acc = term if acc is None else acc + term
        acc = acc + b_ref[...]                           # bias [Cout, 1]
        mu = jnp.mean(acc, axis=-1, keepdims=True)
        xc = acc - mu
        var = jnp.mean(xc * xc, axis=-1, keepdims=True)
        y = xc * jax.lax.rsqrt(var + 1e-5) * g_ref[...] + be_ref[...]
        o_ref[0, 0] = jnp.where(y >= 0.0, y, a_ref[...] * y)

    return pl.pallas_call(
        kernel,
        out_shape=jax.ShapeDtypeStruct((B, T, Cout, F_), jnp.float32),
        grid=(B, T),
        in_specs=[
            pl.BlockSpec((1, 1, Cin, Fp), lambda bb, t: (bb, t, 0, 0)),
            pl.BlockSpec((1, 1, Cin, Fp), lambda bb, t: (bb, t + dil, 0, 0)),
            pl.BlockSpec((2, 3, Cout, Cin), lambda bb, t: (0, 0, 0, 0)),
            pl.BlockSpec((Cout, 1), lambda bb, t: (0, 0)),
            pl.BlockSpec((1, F_), lambda bb, t: (0, 0)),
            pl.BlockSpec((1, F_), lambda bb, t: (0, 0)),
            pl.BlockSpec((Cout, 1), lambda bb, t: (0, 0)),
        ],
        out_specs=pl.BlockSpec((1, 1, Cout, F_), lambda bb, t: (bb, t, 0, 0)),
        compiler_params=pltpu.CompilerParams(
            dimension_semantics=("parallel", "parallel")),
    )(xp, xp, w, bias, gamma, beta, alpha)


def dense_block(x, p, depth):
    """Exact DenseBlock.forward in [B, T, C, F] layout (skip concat on axis 2)."""
    skip = x
    out = x
    for i in range(depth):
        dil = 2 ** i                                     # pad_length == dil (twidth=2)
        xp = jnp.pad(skip, ((0, 0), (dil, 0), (0, 0), (1, 1)))
        out = dense_conv_ln_prelu(xp, p[f"conv{i}_w"], p[f"conv{i}_b"],
                                  p[f"norm{i}_g"], p[f"norm{i}_b"],
                                  p[f"prelu{i}_a"], dil)
        skip = jnp.concatenate([out, skip], axis=2)
    return out


# ----------------------------------------------------------------------------
# Fused output1(out) * output2(out) gate: one [2C, C] dot + tanh * sigmoid
# ----------------------------------------------------------------------------
def gated_fused(h, wg, bg, tt=8):
    B, T, C, F_ = h.shape

    def kernel(h_ref, w_ref, b_ref, o_ref):
        w = w_ref[...]                                   # [2C, C]
        b = b_ref[...]                                   # [2C, 1]
        for j in range(tt):
            x = h_ref[0, j]                              # [C, F]
            z = jnp.dot(w, x, preferred_element_type=jnp.float32) + b
            o_ref[0, j] = jnp.tanh(z[:C]) * jax.nn.sigmoid(z[C:])

    return pl.pallas_call(
        kernel,
        out_shape=jax.ShapeDtypeStruct((B, T, C, F_), jnp.float32),
        grid=(B, pl.cdiv(T, tt)),
        in_specs=[
            pl.BlockSpec((1, tt, C, F_), lambda b, i: (b, i, 0, 0)),
            pl.BlockSpec((2 * C, C), lambda b, i: (0, 0)),
            pl.BlockSpec((2 * C, 1), lambda b, i: (0, 0)),
        ],
        out_specs=pl.BlockSpec((1, tt, C, F_), lambda b, i: (b, i, 0, 0)),
        compiler_params=pltpu.CompilerParams(
            dimension_semantics=("parallel", "parallel")),
    )(h, wg, bg)


# ----------------------------------------------------------------------------
# Fused out_conv (width -> 2, 1x1) + complex mask ('C' masking mode)
#   mask_real / mask_imag never materialize in HBM.
# ----------------------------------------------------------------------------
def outconv_mask(h, real_t, imag_t, w_mr, w_mi, b2, tt=8):
    B, T, C, F_ = h.shape

    def kernel(h_ref, wr_ref, wi_ref, b_ref, r_ref, i_ref, or_ref, oi_ref):
        hv = h_ref[0]                                    # [tt, C, F]
        bv = b_ref[...]                                  # [2, 1]
        mr = jnp.sum(wr_ref[...] * hv, axis=1) + bv[0:1, :]   # [tt, F]
        mi = jnp.sum(wi_ref[...] * hv, axis=1) + bv[1:2, :]
        r = r_ref[0]
        im = i_ref[0]
        or_ref[0] = r * mr - im * mi
        oi_ref[0] = r * mi + im * mr

    return pl.pallas_call(
        kernel,
        out_shape=(jax.ShapeDtypeStruct((B, T, F_), jnp.float32),
                   jax.ShapeDtypeStruct((B, T, F_), jnp.float32)),
        grid=(B, pl.cdiv(T, tt)),
        in_specs=[
            pl.BlockSpec((1, tt, C, F_), lambda b, i: (b, i, 0, 0)),
            pl.BlockSpec((1, C, 1), lambda b, i: (0, 0, 0)),
            pl.BlockSpec((1, C, 1), lambda b, i: (0, 0, 0)),
            pl.BlockSpec((2, 1), lambda b, i: (0, 0)),
            pl.BlockSpec((1, tt, F_), lambda b, i: (b, i, 0)),
            pl.BlockSpec((1, tt, F_), lambda b, i: (b, i, 0)),
        ],
        out_specs=(pl.BlockSpec((1, tt, F_), lambda b, i: (b, i, 0)),
                   pl.BlockSpec((1, tt, F_), lambda b, i: (b, i, 0))),
        compiler_params=pltpu.CompilerParams(
            dimension_semantics=("parallel", "parallel")),
    )(h, w_mr, w_mi, b2, real_t, imag_t)


# ----------------------------------------------------------------------------
# ConvSTFT / ConviSTFT
# TODO(synk): ConvSTFT/ConviSTFT class source not provided; standard conv-STFT
#             semantics (hann window, rfft basis, pinv synthesis, window
#             envelope normalization) are implemented here.
# ----------------------------------------------------------------------------
def make_stft_kernels(L):
    n = np.arange(L)
    window = 0.5 - 0.5 * np.cos(2.0 * np.pi * n / L)               # periodic hann
    fourier = np.fft.rfft(np.eye(L))                               # [L, L//2+1]
    kernel = np.concatenate([np.real(fourier), np.imag(fourier)], axis=1).T  # [2Fb, L]
    fwd = (kernel * window[None, :]).astype(np.float32)            # [2Fb, L]
    inv = (np.linalg.pinv(kernel).T * window[None, :]).astype(np.float32)    # [2Fb, L]
    return (jnp.asarray(fwd.T),                                    # [L, 2Fb]
            jnp.asarray(inv),                                      # [2Fb, L]
            jnp.asarray(window.astype(np.float32)))


# ----------------------------------------------------------------------------
# Parameters (deterministic synthetic init; args.feature == 'raw')
# ----------------------------------------------------------------------------
def init_params(key, width, F, L, depth=3):
    keys = iter(jax.random.split(key, 64))

    def w(shape, fan_in):
        return jax.random.normal(next(keys), shape, jnp.float32) / np.sqrt(fan_in)

    def dense_params():
        d = {}
        for i in range(depth):
            cin = width * (i + 1)
            w_pt = w((width, cin, 2, 3), cin * 6)                  # PyTorch layout
            d[f"conv{i}_w"] = jnp.transpose(w_pt, (2, 3, 0, 1))    # [2,3,Cout,Cin]
            d[f"conv{i}_b"] = jnp.zeros((width, 1), jnp.float32)
            d[f"norm{i}_g"] = jnp.ones((1, F), jnp.float32)
            d[f"norm{i}_b"] = jnp.zeros((1, F), jnp.float32)
            d[f"prelu{i}_a"] = jnp.full((width, 1), 0.25, jnp.float32)
        return d

    wi = w((width, 2), 2)            # inp_conv 1x1 weight
    wo = w((2, width), width)        # out_conv 1x1 weight
    w1g = w((width, width), width)   # output1 conv
    w2g = w((width, width), width)   # output2 conv

    p = {
        "in_linear_w": w((F, F), F),                               # [in, out]
        "in_linear_b": jnp.zeros((F,), jnp.float32),
        "inp_w0": wi[:, 0:1],
        "inp_w1": wi[:, 1:2],
        "inp_b": jnp.zeros((width, 1), jnp.float32),
        "inp_g": jnp.ones((1, F), jnp.float32),
        "inp_beta": jnp.zeros((1, F), jnp.float32),
        "inp_a": jnp.full((width, 1), 0.25, jnp.float32),
        "enc_dense": dense_params(),
        "dec_dense": dense_params(),
        "gate_w": jnp.concatenate([w1g, w2g], axis=0),             # [2*width, width]
        "gate_b": jnp.zeros((2 * width, 1), jnp.float32),
        "outc_wr": wo[0].reshape(1, width, 1),
        "outc_wi": wo[1].reshape(1, width, 1),
        "outc_b": jnp.zeros((2, 1), jnp.float32),
    }
    fwd, inv, win = make_stft_kernels(L)
    p["stft_kernel"], p["istft_kernel"], p["window"] = fwd, inv, win
    return p


# ----------------------------------------------------------------------------
# DPTNet forward (args.feature == 'raw', masking_mode == 'C')
# ----------------------------------------------------------------------------
def dptnet_forward(params, x, L, shift, depth=3, tt=8):
    length = x.shape[-1]
    pad_amt = shift - length % shift
    xp = jnp.pad(x, ((0, 0), (0, pad_amt)))
    B, Lp = xp.shape

    # -- ConvSTFT (framing gather in XLA, projection matmul in Pallas) --------
    padlr = L - shift
    xpad = jnp.pad(xp, ((0, 0), (padlr, padlr)))
    total = Lp + 2 * padlr
    T = (total - L) // shift + 1
    fidx = np.arange(T)[:, None] * shift + np.arange(L)[None, :]
    frames = xpad[:, fidx]                                         # [B, T, L]
    spec = matmul_plain(frames.reshape(B * T, L), params["stft_kernel"])
    Fb = params["stft_kernel"].shape[1] // 2
    spec = spec.reshape(B, T, 2 * Fb)
    real_t = spec[:, :, 1:Fb]                                      # drop DC -> [B,T,F]
    imag_t = spec[:, :, Fb + 1:]
    F_ = Fb - 1

    # -- in_linear (Linear over F, shared by real / imag channels) -----------
    rows = jnp.concatenate([real_t.reshape(B * T, F_),
                            imag_t.reshape(B * T, F_)], axis=0)
    h = matmul_bias(rows, params["in_linear_w"], params["in_linear_b"])
    hr = h[:B * T].reshape(B, T, F_)
    hi = h[B * T:].reshape(B, T, F_)

    # -- inp_conv -> inp_norm -> inp_prelu (fused) ----------------------------
    h0 = inp_fused(hr, hi, params["inp_w0"], params["inp_w1"], params["inp_b"],
                   params["inp_g"], params["inp_beta"], params["inp_a"], tt)

    # -- encoder dense block ---------------------------------------------------
    h1 = dense_block(h0, params["enc_dense"], depth)

    # TODO(synk): Dual_Transformer definition not provided in the source module;
    #             treated as identity (shape-preserving) here.

    # -- output1(out) * output2(out)  (fused single-dot tanh/sigmoid gate) ----
    hg = gated_fused(h1, params["gate_w"], params["gate_b"], tt)

    # -- decoder dense block ---------------------------------------------------
    hd = dense_block(hg, params["dec_dense"], depth)

    # -- out_conv + complex mask ('C') fused -----------------------------------
    out_r, out_i = outconv_mask(hd, real_t, imag_t,
                                params["outc_wr"], params["outc_wi"],
                                params["outc_b"], tt)

    # -- re-insert DC, pack [real | imag] rows, ConviSTFT -----------------------
    zeros = jnp.zeros((B, T, 1), jnp.float32)
    spec_rows = jnp.concatenate([zeros, out_r, zeros, out_i], axis=-1)  # [B,T,2Fb]
    frames_o = matmul_plain(spec_rows.reshape(B * T, 2 * Fb),
                            params["istft_kernel"]).reshape(B, T, L)

    total_o = (T - 1) * shift + L
    oidx = (np.arange(T)[:, None] * shift + np.arange(L)[None, :]).reshape(-1)
    wav = jnp.zeros((B, total_o), jnp.float32).at[:, oidx].add(frames_o.reshape(B, -1))
    coff = jnp.zeros((total_o,), jnp.float32).at[oidx].add(
        jnp.tile(params["window"] ** 2, T))
    wav = wav / (coff + 1e-8)
    trim = L - shift
    wav = wav[:, trim: total_o - trim]
    wav = jnp.clip(wav, -1.0, 1.0)
    return wav[..., :length]


# ----------------------------------------------------------------------------
if __name__ == "__main__":
    # Small, forward-consistent shapes: L (STFT window) = 32 -> F = 16, hop = 8,
    # width = 8, DenseBlock depth = 3, batch = 2, 50 audio samples.
    B, L, SHIFT, WIDTH, DEPTH = 2, 32, 8, 8, 3
    F = L // 2

    key = jax.random.PRNGKey(0)
    pkey, xkey = jax.random.split(key)
    params = init_params(pkey, WIDTH, F, L, DEPTH)
    x = 0.1 * jax.random.normal(xkey, (B, 50), jnp.float32)

    fwd = jax.jit(dptnet_forward, static_argnames=("L", "shift", "depth", "tt"))
    out = fwd(params, x, L=L, shift=SHIFT, depth=DEPTH)
    jax.block_until_ready(out)
    assert out.shape == (B, 50), out.shape
    assert bool(jnp.all(jnp.isfinite(out)))
    print("KERNEL_OK")
</pallas_src>

<mosaic_0001>
module attributes {stable_mosaic.version = 11 : i64} {
  func.func @_mm_kernel(%arg0: i32, %arg1: memref<24x32xf32, #tpu.memory_space<vmem>>, %arg2: memref<32x34xf32, #tpu.memory_space<vmem>>, %arg3: memref<24x34xf32, #tpu.memory_space<vmem>>) attributes {dimension_semantics = [#tpu.dimension_semantics<parallel>], iteration_bounds = array<i64: 1>, scalar_prefetch = 0 : i64, scratch_operands = 0 : i64, tpu.core_type = #tpu.core_type<tc>, window_params = [{transform_indices = @transform_0, window_bounds = array<i64: 24, 32>}, {pipeline_mode = #tpu.pipeline_mode<synchronous>, transform_indices = @transform_1, window_bounds = array<i64: 32, 34>}, {transform_indices = @transform_2, window_bounds = array<i64: 24, 34>}]} {
    %c0 = arith.constant 0 : index
    %c0_0 = arith.constant 0 : index
    %0 = vector.load %arg1[%c0, %c0_0] : memref<24x32xf32, #tpu.memory_space<vmem>>, vector<24x32xf32>
    %c0_1 = arith.constant 0 : index
    %c0_2 = arith.constant 0 : index
    %1 = vector.load %arg2[%c0_1, %c0_2] : memref<32x34xf32, #tpu.memory_space<vmem>>, vector<32x34xf32>
    %cst = arith.constant dense<0.000000e+00> : vector<24x34xf32>
    %2 = tpu.matmul %0, %1, %cst {dimension_numbers = #tpu.dot_dimension_numbers<[1], [0], [0], [1], [0, 0, 1, 1], [], []>} : vector<24x32xf32>, vector<32x34xf32>, vector<24x34xf32> -> vector<24x34xf32>
    %c0_3 = arith.constant 0 : index
    %c0_4 = arith.constant 0 : index
    %3 = vector.load %arg3[%c0_3, %c0_4] : memref<24x34xf32, #tpu.memory_space<vmem>>, vector<24x34xf32>
    tpu.vector_store %arg3[%c0_3, %c0_4], %2 {strides = array<i32>} : memref<24x34xf32, #tpu.memory_space<vmem>>, vector<24x34xf32>,
    return
  }
  func.func @transform_0(%arg0: i32) -> (i32, i32) {
    %c0_i32 = arith.constant 0 : i32
    %c0_i32_0 = arith.constant 0 : i32
    return %arg0, %c0_i32 : i32, i32
  }
  func.func @transform_1(%arg0: i32) -> (i32, i32) {
    %c0_i32 = arith.constant 0 : i32
    %c0_i32_0 = arith.constant 0 : i32
    %c0_i32_1 = arith.constant 0 : i32
    return %c0_i32, %c0_i32_0 : i32, i32
  }
  func.func @transform_2(%arg0: i32) -> (i32, i32) {
    %c0_i32 = arith.constant 0 : i32
    %c0_i32_0 = arith.constant 0 : i32
    return %arg0, %c0_i32 : i32, i32
  }
}

module attributes {stable_mosaic.version = 11 : i64} {
  func.func @_mm_bias_kernel(%arg0: i32, %arg1: memref<40x16xf32, #tpu.memory_space<vmem>>, %arg2: memref<16x16xf32, #tpu.memory_space<vmem>>, %arg3: memref<1x16xf32, #tpu.memory_space<vmem>>, %arg4: memref<40x16xf32, #tpu.memory_space<vmem>>) attributes {dimension_semantics = [#tpu.dimension_semantics<parallel>], iteration_bounds = array<i64: 1>, scalar_prefetch = 0 : i64, scratch_operands = 0 : i64, tpu.core_type = #tpu.core_type<tc>, window_params = [{transform_indices = @transform_0, window_bounds = array<i64: 40, 16>}, {pipeline_mode = #tpu.pipeline_mode<synchronous>, transform_indices = @transform_1, window_bounds = array<i64: 16, 16>}, {pipeline_mode = #tpu.pipeline_mode<synchronous>, transform_indices = @transform_2, window_bounds = array<i64: 1, 16>}, {transform_indices = @transform_3, window_bounds = array<i64: 40, 16>}]} {
    %c0 = arith.constant 0 : index
    %c0_0 = arith.constant 0 : index
    %0 = vector.load %arg1[%c0, %c0_0] : memref<40x16xf32, #tpu.memory_space<vmem>>, vector<40x16xf32>
    %c0_1 = arith.constant 0 : index
    %c0_2 = arith.constant 0 : index
    %1 = vector.load %arg2[%c0_1, %c0_2] : memref<16x16xf32, #tpu.memory_space<vmem>>, vector<16x16xf32>
    %cst = arith.constant dense<0.000000e+00> : vector<40x16xf32>
    %2 = tpu.matmul %0, %1, %cst {dimension_numbers = #tpu.dot_dimension_numbers<[1], [0], [0], [1], [0, 0, 1, 1], [], []>} : vector<40x16xf32>, vector<16x16xf32>, vector<40x16xf32> -> vector<40x16xf32>
    %c0_3 = arith.constant 0 : index
    %c0_4 = arith.constant 0 : index
    %3 = vector.load %arg3[%c0_3, %c0_4] : memref<1x16xf32, #tpu.memory_space<vmem>>, vector<1x16xf32>
    %4 = vector.broadcast %3 : vector<1x16xf32> to vector<40x16xf32>
    %5 = arith.addf %2, %4 : vector<40x16xf32>
    %c0_5 = arith.constant 0 : index
    %c0_6 = arith.constant 0 : index
    %6 = vector.load %arg4[%c0_5, %c0_6] : memref<40x16xf32, #tpu.memory_space<vmem>>, vector<40x16xf32>
    tpu.vector_store %arg4[%c0_5, %c0_6], %5 {strides = array<i32>} : memref<40x16xf32, #tpu.memory_space<vmem>>, vector<40x16xf32>,
    return
  }
  func.func @transform_0(%arg0: i32) -> (i32, i32) {
    %c0_i32 = arith.constant 0 : i32
    %c0_i32_0 = arith.constant 0 : i32
    return %arg0, %c0_i32 : i32, i32
  }
  func.func @transform_1(%arg0: i32) -> (i32, i32) {
    %c0_i32 = arith.constant 0 : i32
    %c0_i32_0 = arith.constant 0 : i32
    %c0_i32_1 = arith.constant 0 : i32
    return %c0_i32, %c0_i32_0 : i32, i32
  }
  func.func @transform_2(%arg0: i32) -> (i32, i32) {
    %c0_i32 = arith.constant 0 : i32
    %c0_i32_0 = arith.constant 0 : i32
    %c0_i32_1 = arith.constant 0 : i32
    return %c0_i32, %c0_i32_0 : i32, i32
  }
  func.func @transform_3(%arg0: i32) -> (i32, i32) {
    %c0_i32 = arith.constant 0 : i32
    %c0_i32_0 = arith.constant 0 : i32
    return %arg0, %c0_i32 : i32, i32
  }
}

module attributes {stable_mosaic.version = 11 : i64} {
  func.func @kernel(%arg0: i32, %arg1: i32, %arg2: memref<1x8x16xf32, #tpu.memory_space<vmem>>, %arg3: memref<1x8x16xf32, #tpu.memory_space<vmem>>, %arg4: memref<8x1xf32, #tpu.memory_space<vmem>>, %arg5: memref<8x1xf32, #tpu.memory_space<vmem>>, %arg6: memref<8x1xf32, #tpu.memory_space<vmem>>, %arg7: memref<1x16xf32, #tpu.memory_space<vmem>>, %arg8: memref<1x16xf32, #tpu.memory_space<vmem>>, %arg9: memref<8x1xf32, #tpu.memory_space<vmem>>, %arg10: memref<1x8x8x16xf32, #tpu.memory_space<vmem>>) attributes {dimension_semantics = [#tpu.dimension_semantics<parallel>, #tpu.dimension_semantics<parallel>], iteration_bounds = array<i64: 2, 2>, scalar_prefetch = 0 : i64, scratch_operands = 0 : i64, tpu.core_type = #tpu.core_type<tc>, window_params = [{transform_indices = @transform_0, window_bounds = array<i64: 1, 8, 16>}, {transform_indices = @transform_1, window_bounds = array<i64: 1, 8, 16>}, {pipeline_mode = #tpu.pipeline_mode<synchronous>, transform_indices = @transform_2, window_bounds = array<i64: 8, 1>}, {pipeline_mode = #tpu.pipeline_mode<synchronous>, transform_indices = @transform_3, window_bounds = array<i64: 8, 1>}, {pipeline_mode = #tpu.pipeline_mode<synchronous>, transform_indices = @transform_4, window_bounds = array<i64: 8, 1>}, {pipeline_mode = #tpu.pipeline_mode<synchronous>, transform_indices = @transform_5, window_bounds = array<i64: 1, 16>}, {pipeline_mode = #tpu.pipeline_mode<synchronous>, transform_indices = @transform_6, window_bounds = array<i64: 1, 16>}, {pipeline_mode = #tpu.pipeline_mode<synchronous>, transform_indices = @transform_7, window_bounds = array<i64: 8, 1>}, {transform_indices = @transform_8, window_bounds = array<i64: 1, 8, 8, 16>}]} {
    %c0 = arith.constant 0 : index
    %c0_0 = arith.constant 0 : index
    %c0_1 = arith.constant 0 : index
    %0 = vector.load %arg2[%c0, %c0_0, %c0_1] : memref<1x8x16xf32, #tpu.memory_space<vmem>>, vector<1x8x16xf32>
    %1 = vector.shape_cast %0 : vector<1x8x16xf32> to vector<8x16xf32>
    %c0_2 = arith.constant 0 : index
    %c0_3 = arith.constant 0 : index
    %c0_4 = arith.constant 0 : index
    %2 = vector.load %arg3[%c0_2, %c0_3, %c0_4] : memref<1x8x16xf32, #tpu.memory_space<vmem>>, vector<1x8x16xf32>
    %3 = vector.shape_cast %2 : vector<1x8x16xf32> to vector<8x16xf32>
    %c0_5 = arith.constant 0 : index
    %c0_6 = arith.constant 0 : index
    %4 = vector.load %arg4[%c0_5, %c0_6] : memref<8x1xf32, #tpu.memory_space<vmem>>, vector<8x1xf32>
    %5 = vector.shape_cast %4 : vector<8x1xf32> to vector<1x8x1xf32>
    %6 = vector.shape_cast %1 : vector<8x16xf32> to vector<8x1x16xf32>
    %7 = vector.broadcast %5 : vector<1x8x1xf32> to vector<8x8x16xf32>
    %8 = vector.broadcast %6 : vector<8x1x16xf32> to vector<8x8x16xf32>
    %9 = arith.mulf %7, %8 : vector<8x8x16xf32>
    %c0_7 = arith.constant 0 : index
    %c0_8 = arith.constant 0 : index
    %10 = vector.load %arg5[%c0_7, %c0_8] : memref<8x1xf32, #tpu.memory_space<vmem>>, vector<8x1xf32>
    %11 = vector.shape_cast %10 : vector<8x1xf32> to vector<1x8x1xf32>
    %12 = vector.shape_cast %3 : vector<8x16xf32> to vector<8x1x16xf32>
    %13 = vector.broadcast %11 : vector<1x8x1xf32> to vector<8x8x16xf32>
    %14 = vector.broadcast %12 : vector<8x1x16xf32> to vector<8x8x16xf32>
    %15 = arith.mulf %13, %14 : vector<8x8x16xf32>
    %16 = arith.addf %9, %15 : vector<8x8x16xf32>
    %c0_9 = arith.constant 0 : index
    %c0_10 = arith.constant 0 : index
    %17 = vector.load %arg6[%c0_9, %c0_10] : memref<8x1xf32, #tpu.memory_space<vmem>>, vector<8x1xf32>
    %18 = vector.shape_cast %17 : vector<8x1xf32> to vector<1x8x1xf32>
    %19 = vector.broadcast %18 : vector<1x8x1xf32> to vector<8x8x16xf32>
    %20 = arith.addf %16, %19 : vector<8x8x16xf32>
    %cst = arith.constant dense<0.000000e+00> : vector<8x8xf32>
    %21 = vector.multi_reduction <add>, %20, %cst [2] : vector<8x8x16xf32> to vector<8x8xf32>
    %22 = vector.shape_cast %21 : vector<8x8xf32> to vector<8x8x1xf32>
    %cst_11 = arith.constant 1.600000e+01 : f32
    %23 = vector.broadcast %cst_11 : f32 to vector<8x8x1xf32>
    %24 = arith.divf %22, %23 : vector<8x8x1xf32>
    %25 = vector.broadcast %24 : vector<8x8x1xf32> to vector<8x8x16xf32>
    %26 = arith.subf %20, %25 : vector<8x8x16xf32>
    %27 = arith.mulf %26, %26 : vector<8x8x16xf32>
    %cst_12 = arith.constant dense<0.000000e+00> : vector<8x8xf32>
    %28 = vector.multi_reduction <add>, %27, %cst_12 [2] : vector<8x8x16xf32> to vector<8x8xf32>
    %29 = vector.shape_cast %28 : vector<8x8xf32> to vector<8x8x1xf32>
    %cst_13 = arith.constant 1.600000e+01 : f32
    %30 = vector.broadcast %cst_13 : f32 to vector<8x8x1xf32>
    %31 = arith.divf %29, %30 : vector<8x8x1xf32>
    %cst_14 = arith.constant 9.99999974E-6 : f32
    %32 = vector.broadcast %cst_14 : f32 to vector<8x8x1xf32>
    %33 = arith.addf %31, %32 : vector<8x8x1xf32>
    %34 = math.rsqrt %33 : vector<8x8x1xf32>
    %35 = vector.broadcast %34 : vector<8x8x1xf32> to vector<8x8x16xf32>
    %36 = arith.mulf %26, %35 : vector<8x8x16xf32>
    %c0_15 = arith.constant 0 : index
    %c0_16 = arith.constant 0 : index
    %37 = vector.load %arg7[%c0_15, %c0_16] : memref<1x16xf32, #tpu.memory_space<vmem>>, vector<1x16xf32>
    %38 = vector.shape_cast %37 : vector<1x16xf32> to vector<1x1x16xf32>
    %39 = vector.broadcast %38 : vector<1x1x16xf32> to vector<8x8x16xf32>
    %40 = arith.mulf %36, %39 : vector<8x8x16xf32>
    %c0_17 = arith.constant 0 : index
    %c0_18 = arith.constant 0 : index
    %41 = vector.load %arg8[%c0_17, %c0_18] : memref<1x16xf32, #tpu.memory_space<vmem>>, vector<1x16xf32>
    %42 = vector.shape_cast %41 : vector<1x16xf32> to vector<1x1x16xf32>
    %43 = vector.broadcast %42 : vector<1x1x16xf32> to vector<8x8x16xf32>
    %44 = arith.addf %40, %43 : vector<8x8x16xf32>
    %c0_19 = arith.constant 0 : index
    %c0_20 = arith.constant 0 : index
    %45 = vector.load %arg9[%c0_19, %c0_20] : memref<8x1xf32, #tpu.memory_space<vmem>>, vector<8x1xf32>
    %46 = vector.shape_cast %45 : vector<8x1xf32> to vector<1x8x1xf32>
    %cst_21 = arith.constant 0.000000e+00 : f32
    %47 = vector.broadcast %cst_21 : f32 to vector<8x8x16xf32>
    %48 = arith.cmpf oge, %44, %47 : vector<8x8x16xf32>
    %49 = vector.broadcast %46 : vector<1x8x1xf32> to vector<8x8x16xf32>
    %50 = arith.mulf %49, %44 : vector<8x8x16xf32>
    %51 = arith.select %48, %44, %50 : vector<8x8x16xi1>, vector<8x8x16xf32>
    %c0_22 = arith.constant 0 : index
    %c0_23 = arith.constant 0 : index
    %c0_24 = arith.constant 0 : index
    %c0_25 = arith.constant 0 : index
    %52 = vector.load %arg10[%c0_22, %c0_23, %c0_24, %c0_25] : memref<1x8x8x16xf32, #tpu.memory_space<vmem>>, vector<1x8x8x16xf32>
    %53 = vector.shape_cast %52 : vector<1x8x8x16xf32> to vector<8x8x16xf32>
    %54 = vector.shape_cast %51 : vector<8x8x16xf32> to vector<1x8x8x16xf32>
    tpu.vector_store %arg10[%c0_22, %c0_23, %c0_24, %c0_25], %54 {strides = array<i32>} : memref<1x8x8x16xf32, #tpu.memory_space<vmem>>, vector<1x8x8x16xf32>,
    return
  }
  func.func @transform_0(%arg0: i32, %arg1: i32) -> (i32, i32, i32) {
    %c0_i32 = arith.constant 0 : i32
    %c0_i32_0 = arith.constant 0 : i32
    return %arg0, %arg1, %c0_i32 : i32, i32, i32
  }
  func.func @transform_1(%arg0: i32, %arg1: i32) -> (i32, i32, i32) {
    %c0_i32 = arith.constant 0 : i32
    %c0_i32_0 = arith.constant 0 : i32
    return %arg0, %arg1, %c0_i32 : i32, i32, i32
  }
  func.func @transform_2(%arg0: i32, %arg1: i32) -> (i32, i32) {
    %c0_i32 = arith.constant 0 : i32
    %c0_i32_0 = arith.constant 0 : i32
    %c0_i32_1 = arith.constant 0 : i32
    return %c0_i32, %c0_i32_0 : i32, i32
  }
  func.func @transform_3(%arg0: i32, %arg1: i32) -> (i32, i32) {
    %c0_i32 = arith.constant 0 : i32
    %c0_i32_0 = arith.constant 0 : i32
    %c0_i32_1 = arith.constant 0 : i32
    return %c0_i32, %c0_i32_0 : i32, i32
  }
  func.func @transform_4(%arg0: i32, %arg1: i32) -> (i32, i32) {
    %c0_i32 = arith.constant 0 : i32
    %c0_i32_0 = arith.constant 0 : i32
    %c0_i32_1 = arith.constant 0 : i32
    return %c0_i32, %c0_i32_0 : i32, i32
  }
  func.func @transform_5(%arg0: i32, %arg1: i32) -> (i32, i32) {
    %c0_i32 = arith.constant 0 : i32
    %c0_i32_0 = arith.constant 0 : i32
    %c0_i32_1 = arith.constant 0 : i32
    return %c0_i32, %c0_i32_0 : i32, i32
  }
  func.func @transform_6(%arg0: i32, %arg1: i32) -> (i32, i32) {
    %c0_i32 = arith.constant 0 : i32
    %c0_i32_0 = arith.constant 0 : i32
    %c0_i32_1 = arith.constant 0 : i32
    return %c0_i32, %c0_i32_0 : i32, i32
  }
  func.func @transform_7(%arg0: i32, %arg1: i32) -> (i32, i32) {
    %c0_i32 = arith.constant 0 : i32
    %c0_i32_0 = arith.constant 0 : i32
    %c0_i32_1 = arith.constant 0 : i32
    return %c0_i32, %c0_i32_0 : i32, i32
  }
  func.func @transform_8(%arg0: i32, %arg1: i32) -> (i32, i32, i32, i32) {
    %c0_i32 = arith.constant 0 : i32
    %c0_i32_0 = arith.constant 0 : i32
    %c0_i32_1 = arith.constant 0 : i32
    return %arg0, %arg1, %c0_i32, %c0_i32_0 : i32, i32, i32, i32
  }
}

module attributes {stable_mosaic.version = 11 : i64} {
  func.func @kernel(%arg0: i32, %arg1: i32, %arg2: memref<1x1x8x18xf32, #tpu.memory_space<vmem>>, %arg3: memref<1x1x8x18xf32, #tpu.memory_space<vmem>>, %arg4: memref<2x3x8x8xf32, #tpu.memory_space<vmem>>, %arg5: memref<8x1xf32, #tpu.memory_space<vmem>>, %arg6: memref<1x16xf32, #tpu.memory_space<vmem>>, %arg7: memref<1x16xf32, #tpu.memory_space<vmem>>, %arg8: memref<8x1xf32, #tpu.memory_space<vmem>>, %arg9: memref<1x1x8x16xf32, #tpu.memory_space<vmem>>) attributes {dimension_semantics = [#tpu.dimension_semantics<parallel>, #tpu.dimension_semantics<parallel>], iteration_bounds = array<i64: 2, 10>, scalar_prefetch = 0 : i64, scratch_operands = 0 : i64, tpu.core_type = #tpu.core_type<tc>, window_params = [{transform_indices = @transform_0, window_bounds = array<i64: 1, 1, 8, 18>}, {transform_indices = @transform_1, window_bounds = array<i64: 1, 1, 8, 18>}, {pipeline_mode = #tpu.pipeline_mode<synchronous>, transform_indices = @transform_2, window_bounds = array<i64: 2, 3, 8, 8>}, {pipeline_mode = #tpu.pipeline_mode<synchronous>, transform_indices = @transform_3, window_bounds = array<i64: 8, 1>}, {pipeline_mode = #tpu.pipeline_mode<synchronous>, transform_indices = @transform_4, window_bounds = array<i64: 1, 16>}, {pipeline_mode = #tpu.pipeline_mode<synchronous>, transform_indices = @transform_5, window_bounds = array<i64: 1, 16>}, {pipeline_mode = #tpu.pipeline_mode<synchronous>, transform_indices = @transform_6, window_bounds = array<i64: 8, 1>}, {transform_indices = @transform_7, window_bounds = array<i64: 1, 1, 8, 16>}]} {
    %c0 = arith.constant 0 : index
    %c0_0 = arith.constant 0 : index
    %c0_1 = arith.constant 0 : index
    %c0_2 = arith.constant 0 : index
    %0 = vector.load %arg2[%c0, %c0_0, %c0_1, %c0_2] : memref<1x1x8x18xf32, #tpu.memory_space<vmem>>, vector<1x1x8x18xf32>
    %1 = vector.shape_cast %0 : vector<1x1x8x18xf32> to vector<8x18xf32>
    %c0_3 = arith.constant 0 : index
    %c0_4 = arith.constant 0 : index
    %c0_5 = arith.constant 0 : index
    %c0_6 = arith.constant 0 : index
    %2 = vector.load %arg3[%c0_3, %c0_4, %c0_5, %c0_6] : memref<1x1x8x18xf32, #tpu.memory_space<vmem>>, vector<1x1x8x18xf32>
    %3 = vector.shape_cast %2 : vector<1x1x8x18xf32> to vector<8x18xf32>
    %c0_7 = arith.constant 0 : index
    %c0_8 = arith.constant 0 : index
    %c0_9 = arith.constant 0 : index
    %c0_10 = arith.constant 0 : index
    %4 = vector.load %arg4[%c0_7, %c0_8, %c0_9, %c0_10] : memref<2x3x8x8xf32, #tpu.memory_space<vmem>>, vector<1x1x8x8xf32>
    %5 = vector.shape_cast %4 : vector<1x1x8x8xf32> to vector<8x8xf32>
    %6 = vector.extract_strided_slice %1 {offsets = [0, 0], sizes = [8, 16], strides = [1, 1]} : vector<8x18xf32> to vector<8x16xf32>
    %cst = arith.constant dense<0.000000e+00> : vector<8x16xf32>
    %7 = tpu.matmul %5, %6, %cst {dimension_numbers = #tpu.dot_dimension_numbers<[1], [0], [0], [1], [0, 0, 1, 1], [], []>} : vector<8x8xf32>, vector<8x16xf32>, vector<8x16xf32> -> vector<8x16xf32>
    %c0_11 = arith.constant 0 : index
    %c1 = arith.constant 1 : index
    %c0_12 = arith.constant 0 : index
    %c0_13 = arith.constant 0 : index
    %8 = vector.load %arg4[%c0_11, %c1, %c0_12, %c0_13] : memref<2x3x8x8xf32, #tpu.memory_space<vmem>>, vector<1x1x8x8xf32>
    %9 = vector.shape_cast %8 : vector<1x1x8x8xf32> to vector<8x8xf32>
    %10 = vector.extract_strided_slice %1 {offsets = [0, 1], sizes = [8, 16], strides = [1, 1]} : vector<8x18xf32> to vector<8x16xf32>
    %cst_14 = arith.constant dense<0.000000e+00> : vector<8x16xf32>
    %11 = tpu.matmul %9, %10, %cst_14 {dimension_numbers = #tpu.dot_dimension_numbers<[1], [0], [0], [1], [0, 0, 1, 1], [], []>} : vector<8x8xf32>, vector<8x16xf32>, vector<8x16xf32> -> vector<8x16xf32>
    %12 = arith.addf %7, %11 : vector<8x16xf32>
    %c0_15 = arith.constant 0 : index
    %c2 = arith.constant 2 : index
    %c0_16 = arith.constant 0 : index
    %c0_17 = arith.constant 0 : index
    %13 = vector.load %arg4[%c0_15, %c2, %c0_16, %c0_17] : memref<2x3x8x8xf32, #tpu.memory_space<vmem>>, vector<1x1x8x8xf32>
    %14 = vector.shape_cast %13 : vector<1x1x8x8xf32> to vector<8x8xf32>
    %15 = vector.extract_strided_slice %1 {offsets = [0, 2], sizes = [8, 16], strides = [1, 1]} : vector<8x18xf32> to vector<8x16xf32>
    %cst_18 = arith.constant dense<0.000000e+00> : vector<8x16xf32>
    %16 = tpu.matmul %14, %15, %cst_18 {dimension_numbers = #tpu.dot_dimension_numbers<[1], [0], [0], [1], [0, 0, 1, 1], [], []>} : vector<8x8xf32>, vector<8x16xf32>, vector<8x16xf32> -> vector<8x16xf32>
    %17 = arith.addf %12, %16 : vector<8x16xf32>
    %c1_19 = arith.constant 1 : index
    %c0_20 = arith.constant 0 : index
    %c0_21 = arith.constant 0 : index
    %c0_22 = arith.constant 0 : index
    %18 = vector.load %arg4[%c1_19, %c0_20, %c0_21, %c0_22] : memref<2x3x8x8xf32, #tpu.memory_space<vmem>>, vector<1x1x8x8xf32>
    %19 = vector.shape_cast %18 : vector<1x1x8x8xf32> to vector<8x8xf32>
    %20 = vector.extract_strided_slice %3 {offsets = [0, 0], sizes = [8, 16], strides = [1, 1]} : vector<8x18xf32> to vector<8x16xf32>
    %cst_23 = arith.constant dense<0.000000e+00> : vector<8x16xf32>
    %21 = tpu.matmul %19, %20, %cst_23 {dimension_numbers = #tpu.dot_dimension_numbers<[1], [0], [0], [1], [0, 0, 1, 1], [], []>} : vector<8x8xf32>, vector<8x16xf32>, vector<8x16xf32> -> vector<8x16xf32>
    %22 = arith.addf %17, %21 : vector<8x16xf32>
    %c1_24 = arith.constant 1 : index
    %c1_25 = arith.constant 1 : index
    %c0_26 = arith.constant 0 : index
    %c0_27 = arith.constant 0 : index
    %23 = vector.load %arg4[%c1_24, %c1_25, %c0_26, %c0_27] : memref<2x3x8x8xf32, #tpu.memory_space<vmem>>, vector<1x1x8x8xf32>
    %24 = vector.shape_cast %23 : vector<1x1x8x8xf32> to vector<8x8xf32>
    %25 = vector.extract_strided_slice %3 {offsets = [0, 1], sizes = [8, 16], strides = [1, 1]} : vector<8x18xf32> to vector<8x16xf32>
    %cst_28 = arith.constant dense<0.000000e+00> : vector<8x16xf32>
    %26 = tpu.matmul %24, %25, %cst_28 {dimension_numbers = #tpu.dot_dimension_numbers<[1], [0], [0], [1], [0, 0, 1, 1], [], []>} : vector<8x8xf32>, vector<8x16xf32>, vector<8x16xf32> -> vector<8x16xf32>
    %27 = arith.addf %22, %26 : vector<8x16xf32>
    %c1_29 = arith.constant 1 : index
    %c2_30 = arith.constant 2 : index
    %c0_31 = arith.constant 0 : index
    %c0_32 = arith.constant 0 : index
    %28 = vector.load %arg4[%c1_29, %c2_30, %c0_31, %c0_32] : memref<2x3x8x8xf32, #tpu.memory_space<vmem>>, vector<1x1x8x8xf32>
    %29 = vector.shape_cast %28 : vector<1x1x8x8xf32> to vector<8x8xf32>
    %30 = vector.extract_strided_slice %3 {offsets = [0, 2], sizes = [8, 16], strides = [1, 1]} : vector<8x18xf32> to vector<8x16xf32>
    %cst_33 = arith.constant dense<0.000000e+00> : vector<8x16xf32>
    %31 = tpu.matmul %29, %30, %cst_33 {dimension_numbers = #tpu.dot_dimension_numbers<[1], [0], [0], [1], [0, 0, 1, 1], [], []>} : vector<8x8xf32>, vector<8x16xf32>, vector<8x16xf32> -> vector<8x16xf32>
    %32 = arith.addf %27, %31 : vector<8x16xf32>
    %c0_34 = arith.constant 0 : index
    %c0_35 = arith.constant 0 : index
    %33 = vector.load %arg5[%c0_34, %c0_35] : memref<8x1xf32, #tpu.memory_space<vmem>>, vector<8x1xf32>
    %34 = vector.broadcast %33 : vector<8x1xf32> to vector<8x16xf32>
    %35 = arith.addf %32, %34 : vector<8x16xf32>
    %cst_36 = arith.constant dense<0.000000e+00> : vector<8xf32>
    %36 = vector.multi_reduction <add>, %35, %cst_36 [1] : vector<8x16xf32> to vector<8xf32>
    %37 = vector.shape_cast %36 : vector<8xf32> to vector<8x1xf32>
    %cst_37 = arith.constant 1.600000e+01 : f32
    %38 = vector.broadcast %cst_37 : f32 to vector<8x1xf32>
    %39 = arith.divf %37, %38 : vector<8x1xf32>
    %40 = vector.broadcast %39 : vector<8x1xf32> to vector<8x16xf32>
    %41 = arith.subf %35, %40 : vector<8x16xf32>
    %42 = arith.mulf %41, %41 : vector<8x16xf32>
    %cst_38 = arith.constant dense<0.000000e+00> : vector<8xf32>
    %43 = vector.multi_reduction <add>, %42, %cst_38 [1] : vector<8x16xf32> to vector<8xf32>
    %44 = vector.shape_cast %43 : vector<8xf32> to vector<8x1xf32>
    %cst_39 = arith.constant 1.600000e+01 : f32
    %45 = vector.broadcast %cst_39 : f32 to vector<8x1xf32>
    %46 = arith.divf %44, %45 : vector<8x1xf32>
    %cst_40 = arith.constant 9.99999974E-6 : f32
    %47 = vector.broadcast %cst_40 : f32 to vector<8x1xf32>
    %48 = arith.addf %46, %47 : vector<8x1xf32>
    %49 = math.rsqrt %48 : vector<8x1xf32>
    %50 = vector.broadcast %49 : vector<8x1xf32> to vector<8x16xf32>
    %51 = arith.mulf %41, %50 : vector<8x16xf32>
    %c0_41 = arith.constant 0 : index
    %c0_42 = arith.constant 0 : index
    %52 = vector.load %arg6[%c0_41, %c0_42] : memref<1x16xf32, #tpu.memory_space<vmem>>, vector<1x16xf32>
    %53 = vector.broadcast %52 : vector<1x16xf32> to vector<8x16xf32>
    %54 = arith.mulf %51, %53 : vector<8x16xf32>
    %c0_43 = arith.constant 0 : index
    %c0_44 = arith.constant 0 : index
    %55 = vector.load %arg7[%c0_43, %c0_44] : memref<1x16xf32, #tpu.memory_space<vmem>>, vector<1x16xf32>
    %56 = vector.broadcast %55 : vector<1x16xf32> to vector<8x16xf32>
    %57 = arith.addf %54, %56 : vector<8x16xf32>
    %cst_45 = arith.constant 0.000000e+00 : f32
    %58 = vector.broadcast %cst_45 : f32 to vector<8x16xf32>
    %59 = arith.cmpf oge, %57, %58 : vector<8x16xf32>
    %c0_46 = arith.constant 0 : index
    %c0_47 = arith.constant 0 : index
    %60 = vector.load %arg8[%c0_46, %c0_47] : memref<8x1xf32, #tpu.memory_space<vmem>>, vector<8x1xf32>
    %61 = vector.broadcast %60 : vector<8x1xf32> to vector<8x16xf32>
    %62 = arith.mulf %61, %57 : vector<8x16xf32>
    %63 = arith.select %59, %57, %62 : vector<8x16xi1>, vector<8x16xf32>
    %c0_48 = arith.constant 0 : index
    %c0_49 = arith.constant 0 : index
    %c0_50 = arith.constant 0 : index
    %c0_51 = arith.constant 0 : index
    %64 = vector.load %arg9[%c0_48, %c0_49, %c0_50, %c0_51] : memref<1x1x8x16xf32, #tpu.memory_space<vmem>>, vector<1x1x8x16xf32>
    %65 = vector.shape_cast %64 : vector<1x1x8x16xf32> to vector<8x16xf32>
    %66 = vector.shape_cast %63 : vector<8x16xf32> to vector<1x1x8x16xf32>
    tpu.vector_store %arg9[%c0_48, %c0_49, %c0_50, %c0_51], %66 {strides = array<i32>} : memref<1x1x8x16xf32, #tpu.memory_space<vmem>>, vector<1x1x8x16xf32>,
    return
  }
  func.func @transform_0(%arg0: i32, %arg1: i32) -> (i32, i32, i32, i32) {
    %c0_i32 = arith.constant 0 : i32
    %c0_i32_0 = arith.constant 0 : i32
    %c0_i32_1 = arith.constant 0 : i32
    return %arg0, %arg1, %c0_i32, %c0_i32_0 : i32, i32, i32, i32
  }
  func.func @transform_1(%arg0: i32, %arg1: i32) -> (i32, i32, i32, i32) {
    %c1_i32 = arith.constant 1 : i32
    %0 = arith.addi %arg1, %c1_i32 : i32
    %c0_i32 = arith.constant 0 : i32
    %c0_i32_0 = arith.constant 0 : i32
    %c0_i32_1 = arith.constant 0 : i32
    return %arg0, %0, %c0_i32, %c0_i32_0 : i32, i32, i32, i32
  }
  func.func @transform_2(%arg0: i32, %arg1: i32) -> (i32, i32, i32, i32) {
    %c0_i32 = arith.constant 0 : i32
    %c0_i32_0 = arith.constant 0 : i32
    %c0_i32_1 = arith.constant 0 : i32
    %c0_i32_2 = arith.constant 0 : i32
    %c0_i32_3 = arith.constant 0 : i32
    return %c0_i32, %c0_i32_0, %c0_i32_1, %c0_i32_2 : i32, i32, i32, i32
  }
  func.func @transform_3(%arg0: i32, %arg1: i32) -> (i32, i32) {
    %c0_i32 = arith.constant 0 : i32
    %c0_i32_0 = arith.constant 0 : i32
    %c0_i32_1 = arith.constant 0 : i32
    return %c0_i32, %c0_i32_0 : i32, i32
  }
  func.func @transform_4(%arg0: i32, %arg1: i32) -> (i32, i32) {
    %c0_i32 = arith.constant 0 : i32
    %c0_i32_0 = arith.constant 0 : i32
    %c0_i32_1 = arith.constant 0 : i32
    return %c0_i32, %c0_i32_0 : i32, i32
  }
  func.func @transform_5(%arg0: i32, %arg1: i32) -> (i32, i32) {
    %c0_i32 = arith.constant 0 : i32
    %c0_i32_0 = arith.constant 0 : i32
    %c0_i32_1 = arith.constant 0 : i32
    return %c0_i32, %c0_i32_0 : i32, i32
  }
  func.func @transform_6(%arg0: i32, %arg1: i32) -> (i32, i32) {
    %c0_i32 = arith.constant 0 : i32
    %c0_i32_0 = arith.constant 0 : i32
    %c0_i32_1 = arith.constant 0 : i32
    return %c0_i32, %c0_i32_0 : i32, i32
  }
  func.func @transform_7(%arg0: i32, %arg1: i32) -> (i32, i32, i32, i32) {
    %c0_i32 = arith.constant 0 : i32
    %c0_i32_0 = arith.constant 0 : i32
    %c0_i32_1 = arith.constant 0 : i32
    return %arg0, %arg1, %c0_i32, %c0_i32_0 : i32, i32, i32, i32
  }
}

module attributes {stable_mosaic.version = 11 : i64} {
  func.func @kernel(%arg0: i32, %arg1: i32, %arg2: memref<1x1x16x18xf32, #tpu.memory_space<vmem>>, %arg3: memref<1x1x16x18xf32, #tpu.memory_space<vmem>>, %arg4: memref<2x3x8x16xf32, #tpu.memory_space<vmem>>, %arg5: memref<8x1xf32, #tpu.memory_space<vmem>>, %arg6: memref<1x16xf32, #tpu.memory_space<vmem>>, %arg7: memref<1x16xf32, #tpu.memory_space<vmem>>, %arg8: memref<8x1xf32, #tpu.memory_space<vmem>>, %arg9: memref<1x1x8x16xf32, #tpu.memory_space<vmem>>) attributes {dimension_semantics = [#tpu.dimension_semantics<parallel>, #tpu.dimension_semantics<parallel>], iteration_bounds = array<i64: 2, 10>, scalar_prefetch = 0 : i64, scratch_operands = 0 : i64, tpu.core_type = #tpu.core_type<tc>, window_params = [{transform_indices = @transform_0, window_bounds = array<i64: 1, 1, 16, 18>}, {transform_indices = @transform_1, window_bounds = array<i64: 1, 1, 16, 18>}, {pipeline_mode = #tpu.pipeline_mode<synchronous>, transform_indices = @transform_2, window_bounds = array<i64: 2, 3, 8, 16>}, {pipeline_mode = #tpu.pipeline_mode<synchronous>, transform_indices = @transform_3, window_bounds = array<i64: 8, 1>}, {pipeline_mode = #tpu.pipeline_mode<synchronous>, transform_indices = @transform_4, window_bounds = array<i64: 1, 16>}, {pipeline_mode = #tpu.pipeline_mode<synchronous>, transform_indices = @transform_5, window_bounds = array<i64: 1, 16>}, {pipeline_mode = #tpu.pipeline_mode<synchronous>, transform_indices = @transform_6, window_bounds = array<i64: 8, 1>}, {transform_indices = @transform_7, window_bounds = array<i64: 1, 1, 8, 16>}]} {
    %c0 = arith.constant 0 : index
    %c0_0 = arith.constant 0 : index
    %c0_1 = arith.constant 0 : index
    %c0_2 = arith.constant 0 : index
    %0 = vector.load %arg2[%c0, %c0_0, %c0_1, %c0_2] : memref<1x1x16x18xf32, #tpu.memory_space<vmem>>, vector<1x1x16x18xf32>
    %1 = vector.shape_cast %0 : vector<1x1x16x18xf32> to vector<16x18xf32>
    %c0_3 = arith.constant 0 : index
    %c0_4 = arith.constant 0 : index
    %c0_5 = arith.constant 0 : index
    %c0_6 = arith.constant 0 : index
    %2 = vector.load %arg3[%c0_3, %c0_4, %c0_5, %c0_6] : memref<1x1x16x18xf32, #tpu.memory_space<vmem>>, vector<1x1x16x18xf32>
    %3 = vector.shape_cast %2 : vector<1x1x16x18xf32> to vector<16x18xf32>
    %c0_7 = arith.constant 0 : index
    %c0_8 = arith.constant 0 : index
    %c0_9 = arith.constant 0 : index
    %c0_10 = arith.constant 0 : index
    %4 = vector.load %arg4[%c0_7, %c0_8, %c0_9, %c0_10] : memref<2x3x8x16xf32, #tpu.memory_space<vmem>>, vector<1x1x8x16xf32>
    %5 = vector.shape_cast %4 : vector<1x1x8x16xf32> to vector<8x16xf32>
    %6 = vector.extract_strided_slice %1 {offsets = [0, 0], sizes = [16, 16], strides = [1, 1]} : vector<16x18xf32> to vector<16x16xf32>
    %cst = arith.constant dense<0.000000e+00> : vector<8x16xf32>
    %7 = tpu.matmul %5, %6, %cst {dimension_numbers = #tpu.dot_dimension_numbers<[1], [0], [0], [1], [0, 0, 1, 1], [], []>} : vector<8x16xf32>, vector<16x16xf32>, vector<8x16xf32> -> vector<8x16xf32>
    %c0_11 = arith.constant 0 : index
    %c1 = arith.constant 1 : index
    %c0_12 = arith.constant 0 : index
    %c0_13 = arith.constant 0 : index
    %8 = vector.load %arg4[%c0_11, %c1, %c0_12, %c0_13] : memref<2x3x8x16xf32, #tpu.memory_space<vmem>>, vector<1x1x8x16xf32>
    %9 = vector.shape_cast %8 : vector<1x1x8x16xf32> to vector<8x16xf32>
    %10 = vector.extract_strided_slice %1 {offsets = [0, 1], sizes = [16, 16], strides = [1, 1]} : vector<16x18xf32> to vector<16x16xf32>
    %cst_14 = arith.constant dense<0.000000e+00> : vector<8x16xf32>
    %11 = tpu.matmul %9, %10, %cst_14 {dimension_numbers = #tpu.dot_dimension_numbers<[1], [0], [0], [1], [0, 0, 1, 1], [], []>} : vector<8x16xf32>, vector<16x16xf32>, vector<8x16xf32> -> vector<8x16xf32>
    %12 = arith.addf %7, %11 : vector<8x16xf32>
    %c0_15 = arith.constant 0 : index
    %c2 = arith.constant 2 : index
    %c0_16 = arith.constant 0 : index
    %c0_17 = arith.constant 0 : index
    %13 = vector.load %arg4[%c0_15, %c2, %c0_16, %c0_17] : memref<2x3x8x16xf32, #tpu.memory_space<vmem>>, vector<1x1x8x16xf32>
    %14 = vector.shape_cast %13 : vector<1x1x8x16xf32> to vector<8x16xf32>
    %15 = vector.extract_strided_slice %1 {offsets = [0, 2], sizes = [16, 16], strides = [1, 1]} : vector<16x18xf32> to vector<16x16xf32>
    %cst_18 = arith.constant dense<0.000000e+00> : vector<8x16xf32>
    %16 = tpu.matmul %14, %15, %cst_18 {dimension_numbers = #tpu.dot_dimension_numbers<[1], [0], [0], [1], [0, 0, 1, 1], [], []>} : vector<8x16xf32>, vector<16x16xf32>, vector<8x16xf32> -> vector<8x16xf32>
    %17 = arith.addf %12, %16 : vector<8x16xf32>
    %c1_19 = arith.constant 1 : index
    %c0_20 = arith.constant 0 : index
    %c0_21 = arith.constant 0 : index
    %c0_22 = arith.constant 0 : index
    %18 = vector.load %arg4[%c1_19, %c0_20, %c0_21, %c0_22] : memref<2x3x8x16xf32, #tpu.memory_space<vmem>>, vector<1x1x8x16xf32>
    %19 = vector.shape_cast %18 : vector<1x1x8x16xf32> to vector<8x16xf32>
    %20 = vector.extract_strided_slice %3 {offsets = [0, 0], sizes = [16, 16], strides = [1, 1]} : vector<16x18xf32> to vector<16x16xf32>
    %cst_23 = arith.constant dense<0.000000e+00> : vector<8x16xf32>
    %21 = tpu.matmul %19, %20, %cst_23 {dimension_numbers = #tpu.dot_dimension_numbers<[1], [0], [0], [1], [0, 0, 1, 1], [], []>} : vector<8x16xf32>, vector<16x16xf32>, vector<8x16xf32> -> vector<8x16xf32>
    %22 = arith.addf %17, %21 : vector<8x16xf32>
    %c1_24 = arith.constant 1 : index
    %c1_25 = arith.constant 1 : index
    %c0_26 = arith.constant 0 : index
    %c0_27 = arith.constant 0 : index
    %23 = vector.load %arg4[%c1_24, %c1_25, %c0_26, %c0_27] : memref<2x3x8x16xf32, #tpu.memory_space<vmem>>, vector<1x1x8x16xf32>
    %24 = vector.shape_cast %23 : vector<1x1x8x16xf32> to vector<8x16xf32>
    %25 = vector.extract_strided_slice %3 {offsets = [0, 1], sizes = [16, 16], strides = [1, 1]} : vector<16x18xf32> to vector<16x16xf32>
    %cst_28 = arith.constant dense<0.000000e+00> : vector<8x16xf32>
    %26 = tpu.matmul %24, %25, %cst_28 {dimension_numbers = #tpu.dot_dimension_numbers<[1], [0], [0], [1], [0, 0, 1, 1], [], []>} : vector<8x16xf32>, vector<16x16xf32>, vector<8x16xf32> -> vector<8x16xf32>
    %27 = arith.addf %22, %26 : vector<8x16xf32>
    %c1_29 = arith.constant 1 : index
    %c2_30 = arith.constant 2 : index
    %c0_31 = arith.constant 0 : index
    %c0_32 = arith.constant 0 : index
    %28 = vector.load %arg4[%c1_29, %c2_30, %c0_31, %c0_32] : memref<2x3x8x16xf32, #tpu.memory_space<vmem>>, vector<1x1x8x16xf32>
    %29 = vector.shape_cast %28 : vector<1x1x8x16xf32> to vector<8x16xf32>
    %30 = vector.extract_strided_slice %3 {offsets = [0, 2], sizes = [16, 16], strides = [1, 1]} : vector<16x18xf32> to vector<16x16xf32>
    %cst_33 = arith.constant dense<0.000000e+00> : vector<8x16xf32>
    %31 = tpu.matmul %29, %30, %cst_33 {dimension_numbers = #tpu.dot_dimension_numbers<[1], [0], [0], [1], [0, 0, 1, 1], [], []>} : vector<8x16xf32>, vector<16x16xf32>, vector<8x16xf32> -> vector<8x16xf32>
    %32 = arith.addf %27, %31 : vector<8x16xf32>
    %c0_34 = arith.constant 0 : index
    %c0_35 = arith.constant 0 : index
    %33 = vector.load %arg5[%c0_34, %c0_35] : memref<8x1xf32, #tpu.memory_space<vmem>>, vector<8x1xf32>
    %34 = vector.broadcast %33 : vector<8x1xf32> to vector<8x16xf32>
    %35 = arith.addf %32, %34 : vector<8x16xf32>
    %cst_36 = arith.constant dense<0.000000e+00> : vector<8xf32>
    %36 = vector.multi_reduction <add>, %35, %cst_36 [1] : vector<8x16xf32> to vector<8xf32>
    %37 = vector.shape_cast %36 : vector<8xf32> to vector<8x1xf32>
    %cst_37 = arith.constant 1.600000e+01 : f32
    %38 = vector.broadcast %cst_37 : f32 to vector<8x1xf32>
    %39 = arith.divf %37, %38 : vector<8x1xf32>
    %40 = vector.broadcast %39 : vector<8x1xf32> to vector<8x16xf32>
    %41 = arith.subf %35, %40 : vector<8x16xf32>
    %42 = arith.mulf %41, %41 : vector<8x16xf32>
    %cst_38 = arith.constant dense<0.000000e+00> : vector<8xf32>
    %43 = vector.multi_reduction <add>, %42, %cst_38 [1] : vector<8x16xf32> to vector<8xf32>
    %44 = vector.shape_cast %43 : vector<8xf32> to vector<8x1xf32>
    %cst_39 = arith.constant 1.600000e+01 : f32
    %45 = vector.broadcast %cst_39 : f32 to vector<8x1xf32>
    %46 = arith.divf %44, %45 : vector<8x1xf32>
    %cst_40 = arith.constant 9.99999974E-6 : f32
    %47 = vector.broadcast %cst_40 : f32 to vector<8x1xf32>
    %48 = arith.addf %46, %47 : vector<8x1xf32>
    %49 = math.rsqrt %48 : vector<8x1xf32>
    %50 = vector.broadcast %49 : vector<8x1xf32> to vector<8x16xf32>
    %51 = arith.mulf %41, %50 : vector<8x16xf32>
    %c0_41 = arith.constant 0 : index
    %c0_42 = arith.constant 0 : index
    %52 = vector.load %arg6[%c0_41, %c0_42] : memref<1x16xf32, #tpu.memory_space<vmem>>, vector<1x16xf32>
    %53 = vector.broadcast %52 : vector<1x16xf32> to vector<8x16xf32>
    %54 = arith.mulf %51, %53 : vector<8x16xf32>
    %c0_43 = arith.constant 0 : index
    %c0_44 = arith.constant 0 : index
    %55 = vector.load %arg7[%c0_43, %c0_44] : memref<1x16xf32, #tpu.memory_space<vmem>>, vector<1x16xf32>
    %56 = vector.broadcast %55 : vector<1x16xf32> to vector<8x16xf32>
    %57 = arith.addf %54, %56 : vector<8x16xf32>
    %cst_45 = arith.constant 0.000000e+00 : f32
    %58 = vector.broadcast %cst_45 : f32 to vector<8x16xf32>
    %59 = arith.cmpf oge, %57, %58 : vector<8x16xf32>
    %c0_46 = arith.constant 0 : index
    %c0_47 = arith.constant 0 : index
    %60 = vector.load %arg8[%c0_46, %c0_47] : memref<8x1xf32, #tpu.memory_space<vmem>>, vector<8x1xf32>
    %61 = vector.broadcast %60 : vector<8x1xf32> to vector<8x16xf32>
    %62 = arith.mulf %61, %57 : vector<8x16xf32>
    %63 = arith.select %59, %57, %62 : vector<8x16xi1>, vector<8x16xf32>
    %c0_48 = arith.constant 0 : index
    %c0_49 = arith.constant 0 : index
    %c0_50 = arith.constant 0 : index
    %c0_51 = arith.constant 0 : index
    %64 = vector.load %arg9[%c0_48, %c0_49, %c0_50, %c0_51] : memref<1x1x8x16xf32, #tpu.memory_space<vmem>>, vector<1x1x8x16xf32>
    %65 = vector.shape_cast %64 : vector<1x1x8x16xf32> to vector<8x16xf32>
    %66 = vector.shape_cast %63 : vector<8x16xf32> to vector<1x1x8x16xf32>
    tpu.vector_store %arg9[%c0_48, %c0_49, %c0_50, %c0_51], %66 {strides = array<i32>} : memref<1x1x8x16xf32, #tpu.memory_space<vmem>>, vector<1x1x8x16xf32>,
    return
  }
  func.func @transform_0(%arg0: i32, %arg1: i32) -> (i32, i32, i32, i32) {
    %c0_i32 = arith.constant 0 : i32
    %c0_i32_0 = arith.constant 0 : i32
    %c0_i32_1 = arith.constant 0 : i32
    return %arg0, %arg1, %c0_i32, %c0_i32_0 : i32, i32, i32, i32
  }
  func.func @transform_1(%arg0: i32, %arg1: i32) -> (i32, i32, i32, i32) {
    %c2_i32 = arith.constant 2 : i32
    %0 = arith.addi %arg1, %c2_i32 : i32
    %c0_i32 = arith.constant 0 : i32
    %c0_i32_0 = arith.constant 0 : i32
    %c0_i32_1 = arith.constant 0 : i32
    return %arg0, %0, %c0_i32, %c0_i32_0 : i32, i32, i32, i32
  }
  func.func @transform_2(%arg0: i32, %arg1: i32) -> (i32, i32, i32, i32) {
    %c0_i32 = arith.constant 0 : i32
    %c0_i32_0 = arith.constant 0 : i32
    %c0_i32_1 = arith.constant 0 : i32
    %c0_i32_2 = arith.constant 0 : i32
    %c0_i32_3 = arith.constant 0 : i32
    return %c0_i32, %c0_i32_0, %c0_i32_1, %c0_i32_2 : i32, i32, i32, i32
  }
  func.func @transform_3(%arg0: i32, %arg1: i32) -> (i32, i32) {
    %c0_i32 = arith.constant 0 : i32
    %c0_i32_0 = arith.constant 0 : i32
    %c0_i32_1 = arith.constant 0 : i32
    return %c0_i32, %c0_i32_0 : i32, i32
  }
  func.func @transform_4(%arg0: i32, %arg1: i32) -> (i32, i32) {
    %c0_i32 = arith.constant 0 : i32
    %c0_i32_0 = arith.constant 0 : i32
    %c0_i32_1 = arith.constant 0 : i32
    return %c0_i32, %c0_i32_0 : i32, i32
  }
  func.func @transform_5(%arg0: i32, %arg1: i32) -> (i32, i32) {
    %c0_i32 = arith.constant 0 : i32
    %c0_i32_0 = arith.constant 0 : i32
    %c0_i32_1 = arith.constant 0 : i32
    return %c0_i32, %c0_i32_0 : i32, i32
  }
  func.func @transform_6(%arg0: i32, %arg1: i32) -> (i32, i32) {
    %c0_i32 = arith.constant 0 : i32
    %c0_i32_0 = arith.constant 0 : i32
    %c0_i32_1 = arith.constant 0 : i32
    return %c0_i32, %c0_i32_0 : i32, i32
  }
  func.func @transform_7(%arg0: i32, %arg1: i32) -> (i32, i32, i32, i32) {
    %c0_i32 = arith.constant 0 : i32
    %c0_i32_0 = arith.constant 0 : i32
    %c0_i32_1 = arith.constant 0 : i32
    return %arg0, %arg1, %c0_i32, %c0_i32_0 : i32, i32, i32, i32
  }
}

module attributes {stable_mosaic.version = 11 : i64} {
  func.func @kernel(%arg0: i32, %arg1: i32, %arg2: memref<1x1x24x18xf32, #tpu.memory_space<vmem>>, %arg3: memref<1x1x24x18xf32, #tpu.memory_space<vmem>>, %arg4: memref<2x3x8x24xf32, #tpu.memory_space<vmem>>, %arg5: memref<8x1xf32, #tpu.memory_space<vmem>>, %arg6: memref<1x16xf32, #tpu.memory_space<vmem>>, %arg7: memref<1x16xf32, #tpu.memory_space<vmem>>, %arg8: memref<8x1xf32, #tpu.memory_space<vmem>>, %arg9: memref<1x1x8x16xf32, #tpu.memory_space<vmem>>) attributes {dimension_semantics = [#tpu.dimension_semantics<parallel>, #tpu.dimension_semantics<parallel>], iteration_bounds = array<i64: 2, 10>, scalar_prefetch = 0 : i64, scratch_operands = 0 : i64, tpu.core_type = #tpu.core_type<tc>, window_params = [{transform_indices = @transform_0, window_bounds = array<i64: 1, 1, 24, 18>}, {transform_indices = @transform_1, window_bounds = array<i64: 1, 1, 24, 18>}, {pipeline_mode = #tpu.pipeline_mode<synchronous>, transform_indices = @transform_2, window_bounds = array<i64: 2, 3, 8, 24>}, {pipeline_mode = #tpu.pipeline_mode<synchronous>, transform_indices = @transform_3, window_bounds = array<i64: 8, 1>}, {pipeline_mode = #tpu.pipeline_mode<synchronous>, transform_indices = @transform_4, window_bounds = array<i64: 1, 16>}, {pipeline_mode = #tpu.pipeline_mode<synchronous>, transform_indices = @transform_5, window_bounds = array<i64: 1, 16>}, {pipeline_mode = #tpu.pipeline_mode<synchronous>, transform_indices = @transform_6, window_bounds = array<i64: 8, 1>}, {transform_indices = @transform_7, window_bounds = array<i64: 1, 1, 8, 16>}]} {
    %c0 = arith.constant 0 : index
    %c0_0 = arith.constant 0 : index
    %c0_1 = arith.constant 0 : index
    %c0_2 = arith.constant 0 : index
    %0 = vector.load %arg2[%c0, %c0_0, %c0_1, %c0_2] : memref<1x1x24x18xf32, #tpu.memory_space<vmem>>, vector<1x1x24x18xf32>
    %1 = vector.shape_cast %0 : vector<1x1x24x18xf32> to vector<24x18xf32>
    %c0_3 = arith.constant 0 : index
    %c0_4 = arith.constant 0 : index
    %c0_5 = arith.constant 0 : index
    %c0_6 = arith.constant 0 : index
    %2 = vector.load %arg3[%c0_3, %c0_4, %c0_5, %c0_6] : memref<1x1x24x18xf32, #tpu.memory_space<vmem>>, vector<1x1x24x18xf32>
    %3 = vector.shape_cast %2 : vector<1x1x24x18xf32> to vector<24x18xf32>
    %c0_7 = arith.constant 0 : index
    %c0_8 = arith.constant 0 : index
    %c0_9 = arith.constant 0 : index
    %c0_10 = arith.constant 0 : index
    %4 = vector.load %arg4[%c0_7, %c0_8, %c0_9, %c0_10] : memref<2x3x8x24xf32, #tpu.memory_space<vmem>>, vector<1x1x8x24xf32>
    %5 = vector.shape_cast %4 : vector<1x1x8x24xf32> to vector<8x24xf32>
    %6 = vector.extract_strided_slice %1 {offsets = [0, 0], sizes = [24, 16], strides = [1, 1]} : vector<24x18xf32> to vector<24x16xf32>
    %cst = arith.constant dense<0.000000e+00> : vector<8x16xf32>
    %7 = tpu.matmul %5, %6, %cst {dimension_numbers = #tpu.dot_dimension_numbers<[1], [0], [0], [1], [0, 0, 1, 1], [], []>} : vector<8x24xf32>, vector<24x16xf32>, vector<8x16xf32> -> vector<8x16xf32>
    %c0_11 = arith.constant 0 : index
    %c1 = arith.constant 1 : index
    %c0_12 = arith.constant 0 : index
    %c0_13 = arith.constant 0 : index
    %8 = vector.load %arg4[%c0_11, %c1, %c0_12, %c0_13] : memref<2x3x8x24xf32, #tpu.memory_space<vmem>>, vector<1x1x8x24xf32>
    %9 = vector.shape_cast %8 : vector<1x1x8x24xf32> to vector<8x24xf32>
    %10 = vector.extract_strided_slice %1 {offsets = [0, 1], sizes = [24, 16], strides = [1, 1]} : vector<24x18xf32> to vector<24x16xf32>
    %cst_14 = arith.constant dense<0.000000e+00> : vector<8x16xf32>
    %11 = tpu.matmul %9, %10, %cst_14 {dimension_numbers = #tpu.dot_dimension_numbers<[1], [0], [0], [1], [0, 0, 1, 1], [], []>} : vector<8x24xf32>, vector<24x16xf32>, vector<8x16xf32> -> vector<8x16xf32>
    %12 = arith.addf %7, %11 : vector<8x16xf32>
    %c0_15 = arith.constant 0 : index
    %c2 = arith.constant 2 : index
    %c0_16 = arith.constant 0 : index
    %c0_17 = arith.constant 0 : index
    %13 = vector.load %arg4[%c0_15, %c2, %c0_16, %c0_17] : memref<2x3x8x24xf32, #tpu.memory_space<vmem>>, vector<1x1x8x24xf32>
    %14 = vector.shape_cast %13 : vector<1x1x8x24xf32> to vector<8x24xf32>
    %15 = vector.extract_strided_slice %1 {offsets = [0, 2], sizes = [24, 16], strides = [1, 1]} : vector<24x18xf32> to vector<24x16xf32>
    %cst_18 = arith.constant dense<0.000000e+00> : vector<8x16xf32>
    %16 = tpu.matmul %14, %15, %cst_18 {dimension_numbers = #tpu.dot_dimension_numbers<[1], [0], [0], [1], [0, 0, 1, 1], [], []>} : vector<8x24xf32>, vector<24x16xf32>, vector<8x16xf32> -> vector<8x16xf32>
    %17 = arith.addf %12, %16 : vector<8x16xf32>
    %c1_19 = arith.constant 1 : index
    %c0_20 = arith.constant 0 : index
    %c0_21 = arith.constant 0 : index
    %c0_22 = arith.constant 0 : index
    %18 = vector.load %arg4[%c1_19, %c0_20, %c0_21, %c0_22] : memref<2x3x8x24xf32, #tpu.memory_space<vmem>>, vector<1x1x8x24xf32>
    %19 = vector.shape_cast %18 : vector<1x1x8x24xf32> to vector<8x24xf32>
    %20 = vector.extract_strided_slice %3 {offsets = [0, 0], sizes = [24, 16], strides = [1, 1]} : vector<24x18xf32> to vector<24x16xf32>
    %cst_23 = arith.constant dense<0.000000e+00> : vector<8x16xf32>
    %21 = tpu.matmul %19, %20, %cst_23 {dimension_numbers = #tpu.dot_dimension_numbers<[1], [0], [0], [1], [0, 0, 1, 1], [], []>} : vector<8x24xf32>, vector<24x16xf32>, vector<8x16xf32> -> vector<8x16xf32>
    %22 = arith.addf %17, %21 : vector<8x16xf32>
    %c1_24 = arith.constant 1 : index
    %c1_25 = arith.constant 1 : index
    %c0_26 = arith.constant 0 : index
    %c0_27 = arith.constant 0 : index
    %23 = vector.load %arg4[%c1_24, %c1_25, %c0_26, %c0_27] : memref<2x3x8x24xf32, #tpu.memory_space<vmem>>, vector<1x1x8x24xf32>
    %24 = vector.shape_cast %23 : vector<1x1x8x24xf32> to vector<8x24xf32>
    %25 = vector.extract_strided_slice %3 {offsets = [0, 1], sizes = [24, 16], strides = [1, 1]} : vector<24x18xf32> to vector<24x16xf32>
    %cst_28 = arith.constant dense<0.000000e+00> : vector<8x16xf32>
    %26 = tpu.matmul %24, %25, %cst_28 {dimension_numbers = #tpu.dot_dimension_numbers<[1], [0], [0], [1], [0, 0, 1, 1], [], []>} : vector<8x24xf32>, vector<24x16xf32>, vector<8x16xf32> -> vector<8x16xf32>
    %27 = arith.addf %22, %26 : vector<8x16xf32>
    %c1_29 = arith.constant 1 : index
    %c2_30 = arith.constant 2 : index
    %c0_31 = arith.constant 0 : index
    %c0_32 = arith.constant 0 : index
    %28 = vector.load %arg4[%c1_29, %c2_30, %c0_31, %c0_32] : memref<2x3x8x24xf32, #tpu.memory_space<vmem>>, vector<1x1x8x24xf32>
    %29 = vector.shape_cast %28 : vector<1x1x8x24xf32> to vector<8x24xf32>
    %30 = vector.extract_strided_slice %3 {offsets = [0, 2], sizes = [24, 16], strides = [1, 1]} : vector<24x18xf32> to vector<24x16xf32>
    %cst_33 = arith.constant dense<0.000000e+00> : vector<8x16xf32>
    %31 = tpu.matmul %29, %30, %cst_33 {dimension_numbers = #tpu.dot_dimension_numbers<[1], [0], [0], [1], [0, 0, 1, 1], [], []>} : vector<8x24xf32>, vector<24x16xf32>, vector<8x16xf32> -> vector<8x16xf32>
    %32 = arith.addf %27, %31 : vector<8x16xf32>
    %c0_34 = arith.constant 0 : index
    %c0_35 = arith.constant 0 : index
    %33 = vector.load %arg5[%c0_34, %c0_35] : memref<8x1xf32, #tpu.memory_space<vmem>>, vector<8x1xf32>
    %34 = vector.broadcast %33 : vector<8x1xf32> to vector<8x16xf32>
    %35 = arith.addf %32, %34 : vector<8x16xf32>
    %cst_36 = arith.constant dense<0.000000e+00> : vector<8xf32>
    %36 = vector.multi_reduction <add>, %35, %cst_36 [1] : vector<8x16xf32> to vector<8xf32>
    %37 = vector.shape_cast %36 : vector<8xf32> to vector<8x1xf32>
    %cst_37 = arith.constant 1.600000e+01 : f32
    %38 = vector.broadcast %cst_37 : f32 to vector<8x1xf32>
    %39 = arith.divf %37, %38 : vector<8x1xf32>
    %40 = vector.broadcast %39 : vector<8x1xf32> to vector<8x16xf32>
    %41 = arith.subf %35, %40 : vector<8x16xf32>
    %42 = arith.mulf %41, %41 : vector<8x16xf32>
    %cst_38 = arith.constant dense<0.000000e+00> : vector<8xf32>
    %43 = vector.multi_reduction <add>, %42, %cst_38 [1] : vector<8x16xf32> to vector<8xf32>
    %44 = vector.shape_cast %43 : vector<8xf32> to vector<8x1xf32>
    %cst_39 = arith.constant 1.600000e+01 : f32
    %45 = vector.broadcast %cst_39 : f32 to vector<8x1xf32>
    %46 = arith.divf %44, %45 : vector<8x1xf32>
    %cst_40 = arith.constant 9.99999974E-6 : f32
    %47 = vector.broadcast %cst_40 : f32 to vector<8x1xf32>
    %48 = arith.addf %46, %47 : vector<8x1xf32>
    %49 = math.rsqrt %48 : vector<8x1xf32>
    %50 = vector.broadcast %49 : vector<8x1xf32> to vector<8x16xf32>
    %51 = arith.mulf %41, %50 : vector<8x16xf32>
    %c0_41 = arith.constant 0 : index
    %c0_42 = arith.constant 0 : index
    %52 = vector.load %arg6[%c0_41, %c0_42] : memref<1x16xf32, #tpu.memory_space<vmem>>, vector<1x16xf32>
    %53 = vector.broadcast %52 : vector<1x16xf32> to vector<8x16xf32>
    %54 = arith.mulf %51, %53 : vector<8x16xf32>
    %c0_43 = arith.constant 0 : index
    %c0_44 = arith.constant 0 : index
    %55 = vector.load %arg7[%c0_43, %c0_44] : memref<1x16xf32, #tpu.memory_space<vmem>>, vector<1x16xf32>
    %56 = vector.broadcast %55 : vector<1x16xf32> to vector<8x16xf32>
    %57 = arith.addf %54, %56 : vector<8x16xf32>
    %cst_45 = arith.constant 0.000000e+00 : f32
    %58 = vector.broadcast %cst_45 : f32 to vector<8x16xf32>
    %59 = arith.cmpf oge, %57, %58 : vector<8x16xf32>
    %c0_46 = arith.constant 0 : index
    %c0_47 = arith.constant 0 : index
    %60 = vector.load %arg8[%c0_46, %c0_47] : memref<8x1xf32, #tpu.memory_space<vmem>>, vector<8x1xf32>
    %61 = vector.broadcast %60 : vector<8x1xf32> to vector<8x16xf32>
    %62 = arith.mulf %61, %57 : vector<8x16xf32>
    %63 = arith.select %59, %57, %62 : vector<8x16xi1>, vector<8x16xf32>
    %c0_48 = arith.constant 0 : index
    %c0_49 = arith.constant 0 : index
    %c0_50 = arith.constant 0 : index
    %c0_51 = arith.constant 0 : index
    %64 = vector.load %arg9[%c0_48, %c0_49, %c0_50, %c0_51] : memref<1x1x8x16xf32, #tpu.memory_space<vmem>>, vector<1x1x8x16xf32>
    %65 = vector.shape_cast %64 : vector<1x1x8x16xf32> to vector<8x16xf32>
    %66 = vector.shape_cast %63 : vector<8x16xf32> to vector<1x1x8x16xf32>
    tpu.vector_store %arg9[%c0_48, %c0_49, %c0_50, %c0_51], %66 {strides = array<i32>} : memref<1x1x8x16xf32, #tpu.memory_space<vmem>>, vector<1x1x8x16xf32>,
    return
  }
  func.func @transform_0(%arg0: i32, %arg1: i32) -> (i32, i32, i32, i32) {
    %c0_i32 = arith.constant 0 : i32
    %c0_i32_0 = arith.constant 0 : i32
    %c0_i32_1 = arith.constant 0 : i32
    return %arg0, %arg1, %c0_i32, %c0_i32_0 : i32, i32, i32, i32
  }
  func.func @transform_1(%arg0: i32, %arg1: i32) -> (i32, i32, i32, i32) {
    %c4_i32 = arith.constant 4 : i32
    %0 = arith.addi %arg1, %c4_i32 : i32
    %c0_i32 = arith.constant 0 : i32
    %c0_i32_0 = arith.constant 0 : i32
    %c0_i32_1 = arith.constant 0 : i32
    return %arg0, %0, %c0_i32, %c0_i32_0 : i32, i32, i32, i32
  }
  func.func @transform_2(%arg0: i32, %arg1: i32) -> (i32, i32, i32, i32) {
    %c0_i32 = arith.constant 0 : i32
    %c0_i32_0 = arith.constant 0 : i32
    %c0_i32_1 = arith.constant 0 : i32
    %c0_i32_2 = arith.constant 0 : i32
    %c0_i32_3 = arith.constant 0 : i32
    return %c0_i32, %c0_i32_0, %c0_i32_1, %c0_i32_2 : i32, i32, i32, i32
  }
  func.func @transform_3(%arg0: i32, %arg1: i32) -> (i32, i32) {
    %c0_i32 = arith.constant 0 : i32
    %c0_i32_0 = arith.constant 0 : i32
    %c0_i32_1 = arith.constant 0 : i32
    return %c0_i32, %c0_i32_0 : i32, i32
  }
  func.func @transform_4(%arg0: i32, %arg1: i32) -> (i32, i32) {
    %c0_i32 = arith.constant 0 : i32
    %c0_i32_0 = arith.constant 0 : i32
    %c0_i32_1 = arith.constant 0 : i32
    return %c0_i32, %c0_i32_0 : i32, i32
  }
  func.func @transform_5(%arg0: i32, %arg1: i32) -> (i32, i32) {
    %c0_i32 = arith.constant 0 : i32
    %c0_i32_0 = arith.constant 0 : i32
    %c0_i32_1 = arith.constant 0 : i32
    return %c0_i32, %c0_i32_0 : i32, i32
  }
  func.func @transform_6(%arg0: i32, %arg1: i32) -> (i32, i32) {
    %c0_i32 = arith.constant 0 : i32
    %c0_i32_0 = arith.constant 0 : i32
    %c0_i32_1 = arith.constant 0 : i32
    return %c0_i32, %c0_i32_0 : i32, i32
  }
  func.func @transform_7(%arg0: i32, %arg1: i32) -> (i32, i32, i32, i32) {
    %c0_i32 = arith.constant 0 : i32
    %c0_i32_0 = arith.constant 0 : i32
    %c0_i32_1 = arith.constant 0 : i32
    return %arg0, %arg1, %c0_i32, %c0_i32_0 : i32, i32, i32, i32
  }
}

module attributes {stable_mosaic.version = 11 : i64} {
  func.func @kernel(%arg0: i32, %arg1: i32, %arg2: memref<1x8x8x16xf32, #tpu.memory_space<vmem>>, %arg3: memref<16x8xf32, #tpu.memory_space<vmem>>, %arg4: memref<16x1xf32, #tpu.memory_space<vmem>>, %arg5: memref<1x8x8x16xf32, #tpu.memory_space<vmem>>) attributes {dimension_semantics = [#tpu.dimension_semantics<parallel>, #tpu.dimension_semantics<parallel>], iteration_bounds = array<i64: 2, 2>, scalar_prefetch = 0 : i64, scratch_operands = 0 : i64, tpu.core_type = #tpu.core_type<tc>, window_params = [{transform_indices = @transform_0, window_bounds = array<i64: 1, 8, 8, 16>}, {pipeline_mode = #tpu.pipeline_mode<synchronous>, transform_indices = @transform_1, window_bounds = array<i64: 16, 8>}, {pipeline_mode = #tpu.pipeline_mode<synchronous>, transform_indices = @transform_2, window_bounds = array<i64: 16, 1>}, {transform_indices = @transform_3, window_bounds = array<i64: 1, 8, 8, 16>}]} {
    %c0 = arith.constant 0 : index
    %c0_0 = arith.constant 0 : index
    %0 = vector.load %arg3[%c0, %c0_0] : memref<16x8xf32, #tpu.memory_space<vmem>>, vector<16x8xf32>
    %c0_1 = arith.constant 0 : index
    %c0_2 = arith.constant 0 : index
    %1 = vector.load %arg4[%c0_1, %c0_2] : memref<16x1xf32, #tpu.memory_space<vmem>>, vector<16x1xf32>
    %c0_3 = arith.constant 0 : index
    %c0_4 = arith.constant 0 : index
    %c0_5 = arith.constant 0 : index
    %c0_6 = arith.constant 0 : index
    %2 = vector.load %arg2[%c0_3, %c0_4, %c0_5, %c0_6] : memref<1x8x8x16xf32, #tpu.memory_space<vmem>>, vector<1x1x8x16xf32>
    %3 = vector.shape_cast %2 : vector<1x1x8x16xf32> to vector<8x16xf32>
    %cst = arith.constant dense<0.000000e+00> : vector<16x16xf32>
    %4 = tpu.matmul %0, %3, %cst {dimension_numbers = #tpu.dot_dimension_numbers<[1], [0], [0], [1], [0, 0, 1, 1], [], []>} : vector<16x8xf32>, vector<8x16xf32>, vector<16x16xf32> -> vector<16x16xf32>
    %5 = vector.broadcast %1 : vector<16x1xf32> to vector<16x16xf32>
    %6 = arith.addf %4, %5 : vector<16x16xf32>
    %7 = vector.extract_strided_slice %6 {offsets = [0, 0], sizes = [8, 16], strides = [1, 1]} : vector<16x16xf32> to vector<8x16xf32>
    %8 = math.tanh %7 : vector<8x16xf32>
    %9 = vector.extract_strided_slice %6 {offsets = [8, 0], sizes = [8, 16], strides = [1, 1]} : vector<16x16xf32> to vector<8x16xf32>
    %10 = arith.negf %9 : vector<8x16xf32>
    %11 = math.exp %10 : vector<8x16xf32>
    %cst_7 = arith.constant 1.000000e+00 : f32
    %12 = vector.broadcast %cst_7 : f32 to vector<8x16xf32>
    %13 = arith.addf %12, %11 : vector<8x16xf32>
    %14 = arith.divf %12, %13 : vector<8x16xf32>
    %15 = arith.mulf %8, %14 : vector<8x16xf32>
    %c0_8 = arith.constant 0 : index
    %c0_9 = arith.constant 0 : index
    %c0_10 = arith.constant 0 : index
    %c0_11 = arith.constant 0 : index
    %16 = vector.load %arg5[%c0_8, %c0_9, %c0_10, %c0_11] : memref<1x8x8x16xf32, #tpu.memory_space<vmem>>, vector<1x1x8x16xf32>
    %17 = vector.shape_cast %16 : vector<1x1x8x16xf32> to vector<8x16xf32>
    %18 = vector.shape_cast %15 : vector<8x16xf32> to vector<1x1x8x16xf32>
    tpu.vector_store %arg5[%c0_8, %c0_9, %c0_10, %c0_11], %18 {strides = array<i32>} : memref<1x8x8x16xf32, #tpu.memory_space<vmem>>, vector<1x1x8x16xf32>,
    %c0_12 = arith.constant 0 : index
    %c1 = arith.constant 1 : index
    %c0_13 = arith.constant 0 : index
    %c0_14 = arith.constant 0 : index
    %19 = vector.load %arg2[%c0_12, %c1, %c0_13, %c0_14] : memref<1x8x8x16xf32, #tpu.memory_space<vmem>>, vector<1x1x8x16xf32>
    %20 = vector.shape_cast %19 : vector<1x1x8x16xf32> to vector<8x16xf32>
    %cst_15 = arith.constant dense<0.000000e+00> : vector<16x16xf32>
    %21 = tpu.matmul %0, %20, %cst_15 {dimension_numbers = #tpu.dot_dimension_numbers<[1], [0], [0], [1], [0, 0, 1, 1], [], []>} : vector<16x8xf32>, vector<8x16xf32>, vector<16x16xf32> -> vector<16x16xf32>
    %22 = vector.broadcast %1 : vector<16x1xf32> to vector<16x16xf32>
    %23 = arith.addf %21, %22 : vector<16x16xf32>
    %24 = vector.extract_strided_slice %23 {offsets = [0, 0], sizes = [8, 16], strides = [1, 1]} : vector<16x16xf32> to vector<8x16xf32>
    %25 = math.tanh %24 : vector<8x16xf32>
    %26 = vector.extract_strided_slice %23 {offsets = [8, 0], sizes = [8, 16], strides = [1, 1]} : vector<16x16xf32> to vector<8x16xf32>
    %27 = arith.negf %26 : vector<8x16xf32>
    %28 = math.exp %27 : vector<8x16xf32>
    %cst_16 = arith.constant 1.000000e+00 : f32
    %29 = vector.broadcast %cst_16 : f32 to vector<8x16xf32>
    %30 = arith.addf %29, %28 : vector<8x16xf32>
    %31 = arith.divf %29, %30 : vector<8x16xf32>
    %32 = arith.mulf %25, %31 : vector<8x16xf32>
    %c0_17 = arith.constant 0 : index
    %c1_18 = arith.constant 1 : index
    %c0_19 = arith.constant 0 : index
    %c0_20 = arith.constant 0 : index
    %33 = vector.load %arg5[%c0_17, %c1_18, %c0_19, %c0_20] : memref<1x8x8x16xf32, #tpu.memory_space<vmem>>, vector<1x1x8x16xf32>
    %34 = vector.shape_cast %33 : vector<1x1x8x16xf32> to vector<8x16xf32>
    %35 = vector.shape_cast %32 : vector<8x16xf32> to vector<1x1x8x16xf32>
    tpu.vector_store %arg5[%c0_17, %c1_18, %c0_19, %c0_20], %35 {strides = array<i32>} : memref<1x8x8x16xf32, #tpu.memory_space<vmem>>, vector<1x1x8x16xf32>,
    %c0_21 = arith.constant 0 : index
    %c2 = arith.constant 2 : index
    %c0_22 = arith.constant 0 : index
    %c0_23 = arith.constant 0 : index
    %36 = vector.load %arg2[%c0_21, %c2, %c0_22, %c0_23] : memref<1x8x8x16xf32, #tpu.memory_space<vmem>>, vector<1x1x8x16xf32>
    %37 = vector.shape_cast %36 : vector<1x1x8x16xf32> to vector<8x16xf32>
    %cst_24 = arith.constant dense<0.000000e+00> : vector<16x16xf32>
    %38 = tpu.matmul %0, %37, %cst_24 {dimension_numbers = #tpu.dot_dimension_numbers<[1], [0], [0], [1], [0, 0, 1, 1], [], []>} : vector<16x8xf32>, vector<8x16xf32>, vector<16x16xf32> -> vector<16x16xf32>
    %39 = vector.broadcast %1 : vector<16x1xf32> to vector<16x16xf32>
    %40 = arith.addf %38, %39 : vector<16x16xf32>
    %41 = vector.extract_strided_slice %40 {offsets = [0, 0], sizes = [8, 16], strides = [1, 1]} : vector<16x16xf32> to vector<8x16xf32>
    %42 = math.tanh %41 : vector<8x16xf32>
    %43 = vector.extract_strided_slice %40 {offsets = [8, 0], sizes = [8, 16], strides = [1, 1]} : vector<16x16xf32> to vector<8x16xf32>
    %44 = arith.negf %43 : vector<8x16xf32>
    %45 = math.exp %44 : vector<8x16xf32>
    %cst_25 = arith.constant 1.000000e+00 : f32
    %46 = vector.broadcast %cst_25 : f32 to vector<8x16xf32>
    %47 = arith.addf %46, %45 : vector<8x16xf32>
    %48 = arith.divf %46, %47 : vector<8x16xf32>
    %49 = arith.mulf %42, %48 : vector<8x16xf32>
    %c0_26 = arith.constant 0 : index
    %c2_27 = arith.constant 2 : index
    %c0_28 = arith.constant 0 : index
    %c0_29 = arith.constant 0 : index
    %50 = vector.load %arg5[%c0_26, %c2_27, %c0_28, %c0_29] : memref<1x8x8x16xf32, #tpu.memory_space<vmem>>, vector<1x1x8x16xf32>
    %51 = vector.shape_cast %50 : vector<1x1x8x16xf32> to vector<8x16xf32>
    %52 = vector.shape_cast %49 : vector<8x16xf32> to vector<1x1x8x16xf32>
    tpu.vector_store %arg5[%c0_26, %c2_27, %c0_28, %c0_29], %52 {strides = array<i32>} : memref<1x8x8x16xf32, #tpu.memory_space<vmem>>, vector<1x1x8x16xf32>,
    %c0_30 = arith.constant 0 : index
    %c3 = arith.constant 3 : index
    %c0_31 = arith.constant 0 : index
    %c0_32 = arith.constant 0 : index
    %53 = vector.load %arg2[%c0_30, %c3, %c0_31, %c0_32] : memref<1x8x8x16xf32, #tpu.memory_space<vmem>>, vector<1x1x8x16xf32>
    %54 = vector.shape_cast %53 : vector<1x1x8x16xf32> to vector<8x16xf32>
    %cst_33 = arith.constant dense<0.000000e+00> : vector<16x16xf32>
    %55 = tpu.matmul %0, %54, %cst_33 {dimension_numbers = #tpu.dot_dimension_numbers<[1], [0], [0], [1], [0, 0, 1, 1], [], []>} : vector<16x8xf32>, vector<8x16xf32>, vector<16x16xf32> -> vector<16x16xf32>
    %56 = vector.broadcast %1 : vector<16x1xf32> to vector<16x16xf32>
    %57 = arith.addf %55, %56 : vector<16x16xf32>
    %58 = vector.extract_strided_slice %57 {offsets = [0, 0], sizes = [8, 16], strides = [1, 1]} : vector<16x16xf32> to vector<8x16xf32>
    %59 = math.tanh %58 : vector<8x16xf32>
    %60 = vector.extract_strided_slice %57 {offsets = [8, 0], sizes = [8, 16], strides = [1, 1]} : vector<16x16xf32> to vector<8x16xf32>
    %61 = arith.negf %60 : vector<8x16xf32>
    %62 = math.exp %61 : vector<8x16xf32>
    %cst_34 = arith.constant 1.000000e+00 : f32
    %63 = vector.broadcast %cst_34 : f32 to vector<8x16xf32>
    %64 = arith.addf %63, %62 : vector<8x16xf32>
    %65 = arith.divf %63, %64 : vector<8x16xf32>
    %66 = arith.mulf %59, %65 : vector<8x16xf32>
    %c0_35 = arith.constant 0 : index
    %c3_36 = arith.constant 3 : index
    %c0_37 = arith.constant 0 : index
    %c0_38 = arith.constant 0 : index
    %67 = vector.load %arg5[%c0_35, %c3_36, %c0_37, %c0_38] : memref<1x8x8x16xf32, #tpu.memory_space<vmem>>, vector<1x1x8x16xf32>
    %68 = vector.shape_cast %67 : vector<1x1x8x16xf32> to vector<8x16xf32>
    %69 = vector.shape_cast %66 : vector<8x16xf32> to vector<1x1x8x16xf32>
    tpu.vector_store %arg5[%c0_35, %c3_36, %c0_37, %c0_38], %69 {strides = array<i32>} : memref<1x8x8x16xf32, #tpu.memory_space<vmem>>, vector<1x1x8x16xf32>,
    %c0_39 = arith.constant 0 : index
    %c4 = arith.constant 4 : index
    %c0_40 = arith.constant 0 : index
    %c0_41 = arith.constant 0 : index
    %70 = vector.load %arg2[%c0_39, %c4, %c0_40, %c0_41] : memref<1x8x8x16xf32, #tpu.memory_space<vmem>>, vector<1x1x8x16xf32>
    %71 = vector.shape_cast %70 : vector<1x1x8x16xf32> to vector<8x16xf32>
    %cst_42 = arith.constant dense<0.000000e+00> : vector<16x16xf32>
    %72 = tpu.matmul %0, %71, %cst_42 {dimension_numbers = #tpu.dot_dimension_numbers<[1], [0], [0], [1], [0, 0, 1, 1], [], []>} : vector<16x8xf32>, vector<8x16xf32>, vector<16x16xf32> -> vector<16x16xf32>
    %73 = vector.broadcast %1 : vector<16x1xf32> to vector<16x16xf32>
    %74 = arith.addf %72, %73 : vector<16x16xf32>
    %75 = vector.extract_strided_slice %74 {offsets = [0, 0], sizes = [8, 16], strides = [1, 1]} : vector<16x16xf32> to vector<8x16xf32>
    %76 = math.tanh %75 : vector<8x16xf32>
    %77 = vector.extract_strided_slice %74 {offsets = [8, 0], sizes = [8, 16], strides = [1, 1]} : vector<16x16xf32> to vector<8x16xf32>
    %78 = arith.negf %77 : vector<8x16xf32>
    %79 = math.exp %78 : vector<8x16xf32>
    %cst_43 = arith.constant 1.000000e+00 : f32
    %80 = vector.broadcast %cst_43 : f32 to vector<8x16xf32>
    %81 = arith.addf %80, %79 : vector<8x16xf32>
    %82 = arith.divf %80, %81 : vector<8x16xf32>
    %83 = arith.mulf %76, %82 : vector<8x16xf32>
    %c0_44 = arith.constant 0 : index
    %c4_45 = arith.constant 4 : index
    %c0_46 = arith.constant 0 : index
    %c0_47 = arith.constant 0 : index
    %84 = vector.load %arg5[%c0_44, %c4_45, %c0_46, %c0_47] : memref<1x8x8x16xf32, #tpu.memory_space<vmem>>, vector<1x1x8x16xf32>
    %85 = vector.shape_cast %84 : vector<1x1x8x16xf32> to vector<8x16xf32>
    %86 = vector.shape_cast %83 : vector<8x16xf32> to vector<1x1x8x16xf32>
    tpu.vector_store %arg5[%c0_44, %c4_45, %c0_46, %c0_47], %86 {strides = array<i32>} : memref<1x8x8x16xf32, #tpu.memory_space<vmem>>, vector<1x1x8x16xf32>,
    %c0_48 = arith.constant 0 : index
    %c5 = arith.constant 5 : index
    %c0_49 = arith.constant 0 : index
    %c0_50 = arith.constant 0 : index
    %87 = vector.load %arg2[%c0_48, %c5, %c0_49, %c0_50] : memref<1x8x8x16xf32, #tpu.memory_space<vmem>>, vector<1x1x8x16xf32>
    %88 = vector.shape_cast %87 : vector<1x1x8x16xf32> to vector<8x16xf32>
    %cst_51 = arith.constant dense<0.000000e+00> : vector<16x16xf32>
    %89 = tpu.matmul %0, %88, %cst_51 {dimension_numbers = #tpu.dot_dimension_numbers<[1], [0], [0], [1], [0, 0, 1, 1], [], []>} : vector<16x8xf32>, vector<8x16xf32>, vector<16x16xf32> -> vector<16x16xf32>
    %90 = vector.broadcast %1 : vector<16x1xf32> to vector<16x16xf32>
    %91 = arith.addf %89, %90 : vector<16x16xf32>
    %92 = vector.extract_strided_slice %91 {offsets = [0, 0], sizes = [8, 16], strides = [1, 1]} : vector<16x16xf32> to vector<8x16xf32>
    %93 = math.tanh %92 : vector<8x16xf32>
    %94 = vector.extract_strided_slice %91 {offsets = [8, 0], sizes = [8, 16], strides = [1, 1]} : vector<16x16xf32> to vector<8x16xf32>
    %95 = arith.negf %94 : vector<8x16xf32>
    %96 = math.exp %95 : vector<8x16xf32>
    %cst_52 = arith.constant 1.000000e+00 : f32
    %97 = vector.broadcast %cst_52 : f32 to vector<8x16xf32>
    %98 = arith.addf %97, %96 : vector<8x16xf32>
    %99 = arith.divf %97, %98 : vector<8x16xf32>
    %100 = arith.mulf %93, %99 : vector<8x16xf32>
    %c0_53 = arith.constant 0 : index
    %c5_54 = arith.constant 5 : index
    %c0_55 = arith.constant 0 : index
    %c0_56 = arith.constant 0 : index
    %101 = vector.load %arg5[%c0_53, %c5_54, %c0_55, %c0_56] : memref<1x8x8x16xf32, #tpu.memory_space<vmem>>, vector<1x1x8x16xf32>
    %102 = vector.shape_cast %101 : vector<1x1x8x16xf32> to vector<8x16xf32>
    %103 = vector.shape_cast %100 : vector<8x16xf32> to vector<1x1x8x16xf32>
    tpu.vector_store %arg5[%c0_53, %c5_54, %c0_55, %c0_56], %103 {strides = array<i32>} : memref<1x8x8x16xf32, #tpu.memory_space<vmem>>, vector<1x1x8x16xf32>,
    %c0_57 = arith.constant 0 : index
    %c6 = arith.constant 6 : index
    %c0_58 = arith.constant 0 : index
    %c0_59 = arith.constant 0 : index
    %104 = vector.load %arg2[%c0_57, %c6, %c0_58, %c0_59] : memref<1x8x8x16xf32, #tpu.memory_space<vmem>>, vector<1x1x8x16xf32>
    %105 = vector.shape_cast %104 : vector<1x1x8x16xf32> to vector<8x16xf32>
    %cst_60 = arith.constant dense<0.000000e+00> : vector<16x16xf32>
    %106 = tpu.matmul %0, %105, %cst_60 {dimension_numbers = #tpu.dot_dimension_numbers<[1], [0], [0], [1], [0, 0, 1, 1], [], []>} : vector<16x8xf32>, vector<8x16xf32>, vector<16x16xf32> -> vector<16x16xf32>
    %107 = vector.broadcast %1 : vector<16x1xf32> to vector<16x16xf32>
    %108 = arith.addf %106, %107 : vector<16x16xf32>
    %109 = vector.extract_strided_slice %108 {offsets = [0, 0], sizes = [8, 16], strides = [1, 1]} : vector<16x16xf32> to vector<8x16xf32>
    %110 = math.tanh %109 : vector<8x16xf32>
    %111 = vector.extract_strided_slice %108 {offsets = [8, 0], sizes = [8, 16], strides = [1, 1]} : vector<16x16xf32> to vector<8x16xf32>
    %112 = arith.negf %111 : vector<8x16xf32>
    %113 = math.exp %112 : vector<8x16xf32>
    %cst_61 = arith.constant 1.000000e+00 : f32
    %114 = vector.broadcast %cst_61 : f32 to vector<8x16xf32>
    %115 = arith.addf %114, %113 : vector<8x16xf32>
    %116 = arith.divf %114, %115 : vector<8x16xf32>
    %117 = arith.mulf %110, %116 : vector<8x16xf32>
    %c0_62 = arith.constant 0 : index
    %c6_63 = arith.constant 6 : index
    %c0_64 = arith.constant 0 : index
    %c0_65 = arith.constant 0 : index
    %118 = vector.load %arg5[%c0_62, %c6_63, %c0_64, %c0_65] : memref<1x8x8x16xf32, #tpu.memory_space<vmem>>, vector<1x1x8x16xf32>
    %119 = vector.shape_cast %118 : vector<1x1x8x16xf32> to vector<8x16xf32>
    %120 = vector.shape_cast %117 : vector<8x16xf32> to vector<1x1x8x16xf32>
    tpu.vector_store %arg5[%c0_62, %c6_63, %c0_64, %c0_65], %120 {strides = array<i32>} : memref<1x8x8x16xf32, #tpu.memory_space<vmem>>, vector<1x1x8x16xf32>,
    %c0_66 = arith.constant 0 : index
    %c7 = arith.constant 7 : index
    %c0_67 = arith.constant 0 : index
    %c0_68 = arith.constant 0 : index
    %121 = vector.load %arg2[%c0_66, %c7, %c0_67, %c0_68] : memref<1x8x8x16xf32, #tpu.memory_space<vmem>>, vector<1x1x8x16xf32>
    %122 = vector.shape_cast %121 : vector<1x1x8x16xf32> to vector<8x16xf32>
    %cst_69 = arith.constant dense<0.000000e+00> : vector<16x16xf32>
    %123 = tpu.matmul %0, %122, %cst_69 {dimension_numbers = #tpu.dot_dimension_numbers<[1], [0], [0], [1], [0, 0, 1, 1], [], []>} : vector<16x8xf32>, vector<8x16xf32>, vector<16x16xf32> -> vector<16x16xf32>
    %124 = vector.broadcast %1 : vector<16x1xf32> to vector<16x16xf32>
    %125 = arith.addf %123, %124 : vector<16x16xf32>
    %126 = vector.extract_strided_slice %125 {offsets = [0, 0], sizes = [8, 16], strides = [1, 1]} : vector<16x16xf32> to vector<8x16xf32>
    %127 = math.tanh %126 : vector<8x16xf32>
    %128 = vector.extract_strided_slice %125 {offsets = [8, 0], sizes = [8, 16], strides = [1, 1]} : vector<16x16xf32> to vector<8x16xf32>
    %129 = arith.negf %128 : vector<8x16xf32>
    %130 = math.exp %129 : vector<8x16xf32>
    %cst_70 = arith.constant 1.000000e+00 : f32
    %131 = vector.broadcast %cst_70 : f32 to vector<8x16xf32>
    %132 = arith.addf %131, %130 : vector<8x16xf32>
    %133 = arith.divf %131, %132 : vector<8x16xf32>
    %134 = arith.mulf %127, %133 : vector<8x16xf32>
    %c0_71 = arith.constant 0 : index
    %c7_72 = arith.constant 7 : index
    %c0_73 = arith.constant 0 : index
    %c0_74 = arith.constant 0 : index
    %135 = vector.load %arg5[%c0_71, %c7_72, %c0_73, %c0_74] : memref<1x8x8x16xf32, #tpu.memory_space<vmem>>, vector<1x1x8x16xf32>
    %136 = vector.shape_cast %135 : vector<1x1x8x16xf32> to vector<8x16xf32>
    %137 = vector.shape_cast %134 : vector<8x16xf32> to vector<1x1x8x16xf32>
    tpu.vector_store %arg5[%c0_71, %c7_72, %c0_73, %c0_74], %137 {strides = array<i32>} : memref<1x8x8x16xf32, #tpu.memory_space<vmem>>, vector<1x1x8x16xf32>,
    return
  }
  func.func @transform_0(%arg0: i32, %arg1: i32) -> (i32, i32, i32, i32) {
    %c0_i32 = arith.constant 0 : i32
    %c0_i32_0 = arith.constant 0 : i32
    %c0_i32_1 = arith.constant 0 : i32
    return %arg0, %arg1, %c0_i32, %c0_i32_0 : i32, i32, i32, i32
  }
  func.func @transform_1(%arg0: i32, %arg1: i32) -> (i32, i32) {
    %c0_i32 = arith.constant 0 : i32
    %c0_i32_0 = arith.constant 0 : i32
    %c0_i32_1 = arith.constant 0 : i32
    return %c0_i32, %c0_i32_0 : i32, i32
  }
  func.func @transform_2(%arg0: i32, %arg1: i32) -> (i32, i32) {
    %c0_i32 = arith.constant 0 : i32
    %c0_i32_0 = arith.constant 0 : i32
    %c0_i32_1 = arith.constant 0 : i32
    return %c0_i32, %c0_i32_0 : i32, i32
  }
  func.func @transform_3(%arg0: i32, %arg1: i32) -> (i32, i32, i32, i32) {
    %c0_i32 = arith.constant 0 : i32
    %c0_i32_0 = arith.constant 0 : i32
    %c0_i32_1 = arith.constant 0 : i32
    return %arg0, %arg1, %c0_i32, %c0_i32_0 : i32, i32, i32, i32
  }
}

module attributes {stable_mosaic.version = 11 : i64} {
  func.func @kernel(%arg0: i32, %arg1: i32, %arg2: memref<1x8x8x16xf32, #tpu.memory_space<vmem>>, %arg3: memref<1x8x1xf32, #tpu.memory_space<vmem>>, %arg4: memref<1x8x1xf32, #tpu.memory_space<vmem>>, %arg5: memref<2x1xf32, #tpu.memory_space<vmem>>, %arg6: memref<1x8x16xf32, #tpu.memory_space<vmem>>, %arg7: memref<1x8x16xf32, #tpu.memory_space<vmem>>, %arg8: memref<1x8x16xf32, #tpu.memory_space<vmem>>, %arg9: memref<1x8x16xf32, #tpu.memory_space<vmem>>) attributes {dimension_semantics = [#tpu.dimension_semantics<parallel>, #tpu.dimension_semantics<parallel>], iteration_bounds = array<i64: 2, 2>, scalar_prefetch = 0 : i64, scratch_operands = 0 : i64, tpu.core_type = #tpu.core_type<tc>, window_params = [{transform_indices = @transform_0, window_bounds = array<i64: 1, 8, 8, 16>}, {pipeline_mode = #tpu.pipeline_mode<synchronous>, transform_indices = @transform_1, window_bounds = array<i64: 1, 8, 1>}, {pipeline_mode = #tpu.pipeline_mode<synchronous>, transform_indices = @transform_2, window_bounds = array<i64: 1, 8, 1>}, {pipeline_mode = #tpu.pipeline_mode<synchronous>, transform_indices = @transform_3, window_bounds = array<i64: 2, 1>}, {transform_indices = @transform_4, window_bounds = array<i64: 1, 8, 16>}, {transform_indices = @transform_5, window_bounds = array<i64: 1, 8, 16>}, {transform_indices = @transform_6, window_bounds = array<i64: 1, 8, 16>}, {transform_indices = @transform_7, window_bounds = array<i64: 1, 8, 16>}]} {
    %c0 = arith.constant 0 : index
    %c0_0 = arith.constant 0 : index
    %c0_1 = arith.constant 0 : index
    %c0_2 = arith.constant 0 : index
    %0 = vector.load %arg2[%c0, %c0_0, %c0_1, %c0_2] : memref<1x8x8x16xf32, #tpu.memory_space<vmem>>, vector<1x8x8x16xf32>
    %1 = vector.shape_cast %0 : vector<1x8x8x16xf32> to vector<8x8x16xf32>
    %c0_3 = arith.constant 0 : index
    %c0_4 = arith.constant 0 : index
    %2 = vector.load %arg5[%c0_3, %c0_4] : memref<2x1xf32, #tpu.memory_space<vmem>>, vector<2x1xf32>
    %c0_5 = arith.constant 0 : index
    %c0_6 = arith.constant 0 : index
    %c0_7 = arith.constant 0 : index
    %3 = vector.load %arg3[%c0_5, %c0_6, %c0_7] : memref<1x8x1xf32, #tpu.memory_space<vmem>>, vector<1x8x1xf32>
    %4 = vector.broadcast %3 : vector<1x8x1xf32> to vector<8x8x16xf32>
    %5 = arith.mulf %4, %1 : vector<8x8x16xf32>
    %cst = arith.constant dense<0.000000e+00> : vector<8x16xf32>
    %6 = vector.multi_reduction <add>, %5, %cst [1] : vector<8x8x16xf32> to vector<8x16xf32>
    %7 = vector.extract_strided_slice %2 {offsets = [0, 0], sizes = [1, 1], strides = [1, 1]} : vector<2x1xf32> to vector<1x1xf32>
    %8 = vector.broadcast %7 : vector<1x1xf32> to vector<8x16xf32>
    %9 = arith.addf %6, %8 : vector<8x16xf32>
    %c0_8 = arith.constant 0 : index
    %c0_9 = arith.constant 0 : index
    %c0_10 = arith.constant 0 : index
    %10 = vector.load %arg4[%c0_8, %c0_9, %c0_10] : memref<1x8x1xf32, #tpu.memory_space<vmem>>, vector<1x8x1xf32>
    %11 = vector.broadcast %10 : vector<1x8x1xf32> to vector<8x8x16xf32>
    %12 = arith.mulf %11, %1 : vector<8x8x16xf32>
    %cst_11 = arith.constant dense<0.000000e+00> : vector<8x16xf32>
    %13 = vector.multi_reduction <add>, %12, %cst_11 [1] : vector<8x8x16xf32> to vector<8x16xf32>
    %14 = vector.extract_strided_slice %2 {offsets = [1, 0], sizes = [1, 1], strides = [1, 1]} : vector<2x1xf32> to vector<1x1xf32>
    %15 = vector.broadcast %14 : vector<1x1xf32> to vector<8x16xf32>
    %16 = arith.addf %13, %15 : vector<8x16xf32>
    %c0_12 = arith.constant 0 : index
    %c0_13 = arith.constant 0 : index
    %c0_14 = arith.constant 0 : index
    %17 = vector.load %arg6[%c0_12, %c0_13, %c0_14] : memref<1x8x16xf32, #tpu.memory_space<vmem>>, vector<1x8x16xf32>
    %18 = vector.shape_cast %17 : vector<1x8x16xf32> to vector<8x16xf32>
    %c0_15 = arith.constant 0 : index
    %c0_16 = arith.constant 0 : index
    %c0_17 = arith.constant 0 : index
    %19 = vector.load %arg7[%c0_15, %c0_16, %c0_17] : memref<1x8x16xf32, #tpu.memory_space<vmem>>, vector<1x8x16xf32>
    %20 = vector.shape_cast %19 : vector<1x8x16xf32> to vector<8x16xf32>
    %21 = arith.mulf %18, %9 : vector<8x16xf32>
    %22 = arith.mulf %20, %16 : vector<8x16xf32>
    %23 = arith.subf %21, %22 : vector<8x16xf32>
    %c0_18 = arith.constant 0 : index
    %c0_19 = arith.constant 0 : index
    %c0_20 = arith.constant 0 : index
    %24 = vector.load %arg8[%c0_18, %c0_19, %c0_20] : memref<1x8x16xf32, #tpu.memory_space<vmem>>, vector<1x8x16xf32>
    %25 = vector.shape_cast %24 : vector<1x8x16xf32> to vector<8x16xf32>
    %26 = vector.shape_cast %23 : vector<8x16xf32> to vector<1x8x16xf32>
    tpu.vector_store %arg8[%c0_18, %c0_19, %c0_20], %26 {strides = array<i32>} : memref<1x8x16xf32, #tpu.memory_space<vmem>>, vector<1x8x16xf32>,
    %27 = arith.mulf %18, %16 : vector<8x16xf32>
    %28 = arith.mulf %20, %9 : vector<8x16xf32>
    %29 = arith.addf %27, %28 : vector<8x16xf32>
    %c0_21 = arith.constant 0 : index
    %c0_22 = arith.constant 0 : index
    %c0_23 = arith.constant 0 : index
    %30 = vector.load %arg9[%c0_21, %c0_22, %c0_23] : memref<1x8x16xf32, #tpu.memory_space<vmem>>, vector<1x8x16xf32>
    %31 = vector.shape_cast %30 : vector<1x8x16xf32> to vector<8x16xf32>
    %32 = vector.shape_cast %29 : vector<8x16xf32> to vector<1x8x16xf32>
    tpu.vector_store %arg9[%c0_21, %c0_22, %c0_23], %32 {strides = array<i32>} : memref<1x8x16xf32, #tpu.memory_space<vmem>>, vector<1x8x16xf32>,
    return
  }
  func.func @transform_0(%arg0: i32, %arg1: i32) -> (i32, i32, i32, i32) {
    %c0_i32 = arith.constant 0 : i32
    %c0_i32_0 = arith.constant 0 : i32
    %c0_i32_1 = arith.constant 0 : i32
    return %arg0, %arg1, %c0_i32, %c0_i32_0 : i32, i32, i32, i32
  }
  func.func @transform_1(%arg0: i32, %arg1: i32) -> (i32, i32, i32) {
    %c0_i32 = arith.constant 0 : i32
    %c0_i32_0 = arith.constant 0 : i32
    %c0_i32_1 = arith.constant 0 : i32
    %c0_i32_2 = arith.constant 0 : i32
    return %c0_i32, %c0_i32_0, %c0_i32_1 : i32, i32, i32
  }
  func.func @transform_2(%arg0: i32, %arg1: i32) -> (i32, i32, i32) {
    %c0_i32 = arith.constant 0 : i32
    %c0_i32_0 = arith.constant 0 : i32
    %c0_i32_1 = arith.constant 0 : i32
    %c0_i32_2 = arith.constant 0 : i32
    return %c0_i32, %c0_i32_0, %c0_i32_1 : i32, i32, i32
  }
  func.func @transform_3(%arg0: i32, %arg1: i32) -> (i32, i32) {
    %c0_i32 = arith.constant 0 : i32
    %c0_i32_0 = arith.constant 0 : i32
    %c0_i32_1 = arith.constant 0 : i32
    return %c0_i32, %c0_i32_0 : i32, i32
  }
  func.func @transform_4(%arg0: i32, %arg1: i32) -> (i32, i32, i32) {
    %c0_i32 = arith.constant 0 : i32
    %c0_i32_0 = arith.constant 0 : i32
    return %arg0, %arg1, %c0_i32 : i32, i32, i32
  }
  func.func @transform_5(%arg0: i32, %arg1: i32) -> (i32, i32, i32) {
    %c0_i32 = arith.constant 0 : i32
    %c0_i32_0 = arith.constant 0 : i32
    return %arg0, %arg1, %c0_i32 : i32, i32, i32
  }
  func.func @transform_6(%arg0: i32, %arg1: i32) -> (i32, i32, i32) {
    %c0_i32 = arith.constant 0 : i32
    %c0_i32_0 = arith.constant 0 : i32
    return %arg0, %arg1, %c0_i32 : i32, i32, i32
  }
  func.func @transform_7(%arg0: i32, %arg1: i32) -> (i32, i32, i32) {
    %c0_i32 = arith.constant 0 : i32
    %c0_i32_0 = arith.constant 0 : i32
    return %arg0, %arg1, %c0_i32 : i32, i32, i32
  }
}

module attributes {stable_mosaic.version = 11 : i64} {
  func.func @_mm_kernel(%arg0: i32, %arg1: memref<24x34xf32, #tpu.memory_space<vmem>>, %arg2: memref<34x32xf32, #tpu.memory_space<vmem>>, %arg3: memref<24x32xf32, #tpu.memory_space<vmem>>) attributes {dimension_semantics = [#tpu.dimension_semantics<parallel>], iteration_bounds = array<i64: 1>, scalar_prefetch = 0 : i64, scratch_operands = 0 : i64, tpu.core_type = #tpu.core_type<tc>, window_params = [{transform_indices = @transform_0, window_bounds = array<i64: 24, 34>}, {pipeline_mode = #tpu.pipeline_mode<synchronous>, transform_indices = @transform_1, window_bounds = array<i64: 34, 32>}, {transform_indices = @transform_2, window_bounds = array<i64: 24, 32>}]} {
    %c0 = arith.constant 0 : index
    %c0_0 = arith.constant 0 : index
    %0 = vector.load %arg1[%c0, %c0_0] : memref<24x34xf32, #tpu.memory_space<vmem>>, vector<24x34xf32>
    %c0_1 = arith.constant 0 : index
    %c0_2 = arith.constant 0 : index
    %1 = vector.load %arg2[%c0_1, %c0_2] : memref<34x32xf32, #tpu.memory_space<vmem>>, vector<34x32xf32>
    %cst = arith.constant dense<0.000000e+00> : vector<24x32xf32>
    %2 = tpu.matmul %0, %1, %cst {dimension_numbers = #tpu.dot_dimension_numbers<[1], [0], [0], [1], [0, 0, 1, 1], [], []>} : vector<24x34xf32>, vector<34x32xf32>, vector<24x32xf32> -> vector<24x32xf32>
    %c0_3 = arith.constant 0 : index
    %c0_4 = arith.constant 0 : index
    %3 = vector.load %arg3[%c0_3, %c0_4] : memref<24x32xf32, #tpu.memory_space<vmem>>, vector<24x32xf32>
    tpu.vector_store %arg3[%c0_3, %c0_4], %2 {strides = array<i32>} : memref<24x32xf32, #tpu.memory_space<vmem>>, vector<24x32xf32>,
    return
  }
  func.func @transform_0(%arg0: i32) -> (i32, i32) {
    %c0_i32 = arith.constant 0 : i32
    %c0_i32_0 = arith.constant 0 : i32
    return %arg0, %c0_i32 : i32, i32
  }
  func.func @transform_1(%arg0: i32) -> (i32, i32) {
    %c0_i32 = arith.constant 0 : i32
    %c0_i32_0 = arith.constant 0 : i32
    %c0_i32_1 = arith.constant 0 : i32
    return %c0_i32, %c0_i32_0 : i32, i32
  }
  func.func @transform_2(%arg0: i32) -> (i32, i32) {
    %c0_i32 = arith.constant 0 : i32
    %c0_i32_0 = arith.constant 0 : i32
    return %arg0, %c0_i32 : i32, i32
  }
}

</mosaic_0001>

<bundles_post_ra>
// kernel: dptnet_forward.12
= control target key start
LH: loop header
LB: loop body
LE: loop exit
PB: predicated region body
PF: predicated region fallthrough
CT: control target
= control target key end

     0   :  { %vm18_vm0 = vcmask 261120   ;;  %vm54_vm1 = vcmask 277504   ;;  %s118_s1 = inlined_call_operand.vmem [shape: f32[32,34], index: 1, kind: input, shape index: {}]   ;;  %s119_s0 = inlined_call_operand.vmem [shape: f32[20,32], index: 0, kind: input, shape index: {}]   ;;  %s120_s2 = inlined_call_operand.vmem [shape: f32[20,34], index: 2, kind: output, shape index: {}]  }
   0x1   :  { %v17_v0 = vld [vmem:[%s118_s1 + $0x18] sm:$0xff]  ;;  %v16_v1 = vld [vmem:[%s118_s1 + $0x10] sm:$0xff]  ;;  %v15_v2 = vld [vmem:[%s118_s1 + $0x8] sm:$0xff] }
   0x2   :  { %66 = vmatpush.msra.mxu2 %v17_v0  ;;  %40 = vmatpush.msra.mxu0 %v17_v0  ;;  %v14_v3 = vld [vmem:[%s118_s1] sm:$0xff]  ;;  %v13_v4 = vld [vmem:[%s119_s0 + $0x10] sm:$0xff]  ;;  %v12_v6 = vld [vmem:[%s119_s0 + $0x8] sm:$0xff] }
   0x3   :  { %65 = vmatpush.msra.mxu1 %v17_v0  ;;  %v11_v5 = vld [vmem:[%s119_s0] sm:$0xff] }
   0x4   :  { %68 = vmatpush.msra.mxu2 %v16_v1  ;;  %41 = vmatpush.msra.mxu0 %v16_v1 }
   0x5   :  { %67 = vmatpush.msra.mxu1 %v16_v1 }
   0x6   :  { %70 = vmatpush.msra.mxu2 %v15_v2  ;;  %42 = vmatpush.msra.mxu0 %v15_v2 }
   0x7   :  { %69 = vmatpush.msra.mxu1 %v15_v2 }
   0x8   :  { %72 = vmatpush.msra.mxu2 %v14_v3  ;;  %43 = vmatpush.msra.mxu0 %v14_v3 }
   0x9   :  { %64 = vmatmul.msk.f32.vlgmr.msra.gmra.mxu2 %vm18_vm0, %v13_v4  ;;  %71 = vmatpush.msra.mxu1 %v14_v3 }
   0xa   :  { %62 = vmatmul.msk.f32.vlgmr.msra.gmra.mxu0 %vm18_vm0, %v11_v5  ;;  %63 = vmatmul.msk.f32.vlgmr.msra.gmra.mxu1 %vm18_vm0, %v12_v6 }
  0x87   :  { %v45_v7 = vpop.f32.mrf.mxu0  ;;  %v48_v8 = vpop.f32.mrf.mxu1 }
  0x88   :  { %55 = vst.msk [vmem:[%s120_s2] sm:$0xff] %vm54_vm1, %v45_v7 }
  0x89   :  { %56 = vst.msk [vmem:[%s120_s2 + $0x8] sm:$0xff] %vm54_vm1, %v48_v8 }
  0x8c   :  { %v51_v9 = vpop.f32.mrf.mxu2 }
  0x8d   :  { %57 = vst.msk [vmem:[%s120_s2 + $0x10] sm:$0xff] %vm54_vm1, %v51_v9 }

// kernel: dptnet_forward.13
= control target key start
LH: loop header
LB: loop body
LE: loop exit
PB: predicated region body
PF: predicated region fallthrough
CT: control target
= control target key end

     0   :  { %vm25_vm0 = vcmask 130048   ;;  %s163_s1 = inlined_call_operand.vmem [shape: f32[16,16], index: 1, kind: input, shape index: {}]   ;;  %s164_s0 = inlined_call_operand.vmem [shape: f32[40,16], index: 0, kind: input, shape index: {}]   ;;  %s165_s2 = inlined_call_operand.vmem [shape: f32[1,16], index: 2, kind: input, shape index: {}]   ;;  %s166_s3 = inlined_call_operand.vmem [shape: f32[40,16], index: 3, kind: output, shape index: {}]  }
   0x1   :  { %v20_v0 = vld [vmem:[%s163_s1 + $0x8] sm:$0xff]  ;;  %v19_v1 = vld [vmem:[%s163_s1] sm:$0xff]  ;;  %v16_v2 = vld [vmem:[%s164_s0 + $0x10] sm:$0xff] }
   0x2   :  { %88 = vmatpush.msra.mxu2 %v20_v0  ;;  %89 = vmatpush.msra.mxu3 %v20_v0  ;;  %v18_v3 = vld [vmem:[%s164_s0 + $0x20] sm:$0xff]  ;;  %v15_v5 = vld [vmem:[%s164_s0 + $0x8] sm:$0xff]  ;;  %v17_v6 = vld [vmem:[%s164_s0 + $0x18] sm:$0xff] }
   0x3   :  { %55 = vmatpush.msra.mxu0 %v20_v0  ;;  %87 = vmatpush.msra.mxu1 %v20_v0  ;;  %v14_v4 = vld [vmem:[%s164_s0] sm:$0xff] }
   0x4   :  { %91 = vmatpush.msra.mxu2 %v19_v1  ;;  %92 = vmatpush.msra.mxu3 %v19_v1  ;;  %v93_v7 = vld [vmem:[%s165_s2] ss:$0 sm:$0xff] }
   0x5   :  { %84 = vmatmul.msk.f32.vlgmr.msra.gmra.mxu2 %vm25_vm0, %v16_v2  ;;  %86 = vmatmul.msk.f32.vlgmr.msra.gmra.mxu3 %vm25_vm0, %v18_v3 }
   0x6   :  { %56 = vmatpush.msra.mxu0 %v19_v1  ;;  %90 = vmatpush.msra.mxu1 %v19_v1 }
   0x7   :  { %82 = vmatmul.msk.f32.vlgmr.msra.gmra.mxu0 %vm25_vm0, %v14_v4  ;;  %83 = vmatmul.msk.f32.vlgmr.msra.gmra.mxu1 %vm25_vm0, %v15_v5 }
   0xd   :  { %85 = vmatmul.msk.f32.gmra.mxu2 %vm25_vm0, %v17_v6 }
  0x84   :  { %v58_v8 = vpop.f32.mrf.mxu0  ;;  %v61_v9 = vpop.f32.mrf.mxu1 }
  0x85   :  { %v59_v10 = vadd.f32 %v93_v7, %v58_v8  ;;  %v62_v11 = vadd.f32 %v93_v7, %v61_v9 }
  0x87   :  { %73 = vst.msk [vmem:[%s166_s3] sm:$0xff] %vm25_vm0, %v59_v10 }
  0x88   :  { %v64_v12 = vpop.f32.mrf.mxu2  ;;  %74 = vst.msk [vmem:[%s166_s3 + $0x8] sm:$0xff] %vm25_vm0, %v62_v11  ;;  %v70_v13 = vpop.f32.mrf.mxu3 }
  0x89   :  { %v65_v14 = vadd.f32 %v93_v7, %v64_v12  ;;  %v71_v15 = vadd.f32 %v93_v7, %v70_v13 }
  0x8b   :  { %75 = vst.msk [vmem:[%s166_s3 + $0x10] sm:$0xff] %vm25_vm0, %v65_v14 }
  0x8c   :  { %77 = vst.msk [vmem:[%s166_s3 + $0x20] sm:$0xff] %vm25_vm0, %v71_v15 }
  0x90   :  { %v67_v16 = vpop.f32.mrf.mxu2 }
  0x91   :  { %v68_v17 = vadd.f32 %v93_v7, %v67_v16 }
  0x93   :  { %76 = vst.msk [vmem:[%s166_s3 + $0x18] sm:$0xff] %vm25_vm0, %v68_v17 }

// kernel: dptnet_forward.14
= control target key start
LH: loop header
LB: loop body
LE: loop exit
PB: predicated region body
PF: predicated region fallthrough
CT: control target
= control target key end

     0   :  { %s1672_s0 = inlined_call_operand.vmem [shape: f32[2,10,16], index: 0, kind: input, shape index: {}]   ;;  %s1673_s1 = inlined_call_operand.vmem [shape: f32[2,10,16], index: 1, kind: input, shape index: {}]   ;;  %s1674_s2 = inlined_call_operand.vmem [shape: f32[8,1], index: 2, kind: input, shape index: {}]   ;;  %s1675_s3 = inlined_call_operand.vmem [shape: f32[8,1], index: 3, kind: input, shape index: {}]   ;;  %s1676_s4 = inlined_call_operand.vmem [shape: f32[8,1], index: 4, kind: input, shape index: {}]   ;;  %s1677_s5 = inlined_call_operand.vmem [shape: f32[1,16], index: 5, kind: input, shape index: {}]   ;;  %s1678_s6 = inlined_call_operand.vmem [shape: f32[1,16], index: 6, kind: input, shape index: {}]   ;;  %s1679_s7 = inlined_call_operand.vmem [shape: f32[8,1], index: 7, kind: input, shape index: {}]   ;;  %s1680_s8 = inlined_call_operand.vmem [shape: f32[2,10,8,16], index: 8, kind: output, shape index: {}]  }
   0x1   :  { %1681 = sst [smem:[#allocation3_spill]] %s1674_s2 }
   0x2   :  { %1682 = sst [smem:[#allocation4_spill]] %s1676_s4 }
   0x3   :  { %s1333_s27 = smov 0   ;;  %s1335_s28 = smov 0  }
   0x4   :  { %s1337_s29 = smov 0   ;;  %s1339_s30 = smov 0  }
   0x5   :  { %s1341_s9 = smov 0   ;;  %s1343_s10 = smov 0  }
   0x6   :  { %s1345_s11 = smov 0  }
   0x7 LB: > { %s27_s12 = sadd.s32 1, %s1244_s9  ;;  %s30_s13 = sadd.s32 1, %s1248_s10  ;;  %s1252_s11 = sphi %s1345_s11, %s18_s11   ;;  %s1248_s10 = sphi %s1343_s10, %s1695_s10   ;;  %s1244_s9 = sphi %s1341_s9, %s1694_s9   ;;  %s1240_s30 = sphi %s1339_s30, %s1693_s30   ;;  %s1236_s29 = sphi %s1337_s29, %s1692_s29   ;;  %s1232_s28 = sphi %s1335_s28, %s1691_s28   ;;  %s1228_s27 = sphi %s1333_s27, %s1690_s27  }
   0x8   : > { %p28_p0 = scmp.ge.s32.totalorder %s27_s12, 2  ;;  %s991_s14 = sadd.s32 4294967295, %s1252_s11  }
   0x9   : > { %p231_p1 = scmp.ne.s32.totalorder %s1232_s28, %s1228_s27  ;;  %p232_p2 = scmp.eq.s32.totalorder %s991_s14, 3 }
   0xa   : > { %s1697_s12 = smov (%p28_p0, %s27_s12), 0  ;;  %s1699_s13 = smov (!%p28_p0, %s30_s13), %s1248_s10 }
   0xb   : > { %s217_s15 = ssub.s32 %s1244_s9, %s1697_s12  ;;  %p32_p3 = scmp.ge.s32.totalorder %s1699_s13, 2 }
   0xc   : > { %p995_p4 = scmp.ge.s32.totalorder %s1252_s11, 1  ;;  %p1379_p5 = por %p232_p2, %p231_p1 }
   0xd   : > { %p296_p6 = scmp.lt.s32.totalorder %s1252_s11, 5  ;;  %s1701_s13 = smov (%p32_p3, %s1699_s13), 0 }
   0xe   : > { %s216_s17 = ssub.s32 %s1248_s10, %s1701_s13  ;;  %s221_s19 = sadd.s32 1, %s1232_s28 }
   0xf   : > { %p297_p7 = pnand %p995_p4, %p296_p6  ;;  %s218_s18 = sor.u32 %s217_s15, %s216_s17 }
  0x10   : > { %p219_p8 = scmp.eq.s32.totalorder %s218_s18, 0  ;;  %s1684_s2 = sld [smem:[#allocation3_spill]] (!%p297_p7) }
  0x11   : > { %300 = sbr.rel (%p297_p7) target bundleno = 508 (0x1fc), region = 52  ;;  %s1685_s4 = sld [smem:[#allocation4_spill]] (!%p297_p7) }
  0x12   : > { %s1390_s20 = scalar_select %p219_p8, %s1232_s28, %s221_s19  }
  0x13   : > { %p340_p9 = scmp.lt.s32.totalorder (!%p297_p7), %s1240_s30, 1  ;;  %p342_p10 = scmp.lt.s32.totalorder (!%p297_p7), %s1236_s29, 1 }
  0x16   : > { %v363_v0 = vld [vmem:[%s1684_s2] sm:$0xff]  ;;  %v1286_v2 = vmov 0   ;;  %s341_s14 = scalar_select %p340_p9, %s1240_s30, 1  ;;  %vm461_vm0 = vcmask 130048  }
  0x17   : > { %v447_v1 = vld [vmem:[%s1685_s4] sm:$0xff]  ;;  %1143 = vset.pattern.permute.xlu0 %v1286_v2  ;;  %1144 = vset.pattern.permute.xlu1 %v1286_v2  ;;  %s343_s15 = scalar_select %p342_p10, %s1236_s29, 1 }
  0x18   : > { %374 = vperm.xlu0 %1143, %v363_v0   ;;  %450 = vperm.xlu1 %1144, %v447_v1   ;;  %v401_v3 = vld [vmem:[%s1675_s3] sm:$0xff]  ;;  %s997_s17 = sshll.u32 %s341_s14, 1  ;;  %s1020_s21 = smul.u32 (%p1379_p5), 10, %s1240_s30 }
  0x19   : > { %1145 = vset.pattern.permute.xlu2 %v1286_v2  ;;  %s345_s18 = sadd.s32 %s997_s17, %s343_s15  ;;  %s337_s17 = sand.u32 1, %s1228_s27  }
  0x1a   : > { %s998_s19 = sshll.u32 %s345_s18, 3  ;;  %s996_s18 = sshll.u32 %s337_s17, 6 }
  0x1b   : > { %s347_s23 = scalar_lea.vmem %s1672_s0, %s998_s19  ;;  %s355_s4 = scalar_lea.vmem %s1673_s1, %s998_s19 }
  0x1c   : > { %v1411_v4 = vld [vmem:[%s347_s23] sm:$0xff]  ;;  %s1564_s27 = scalar_lea.vmem [#allocation2], %s996_s18   ;;  %s1002_s19 = sshll.u32 (%p1379_p5), %s1236_s29, 3 }
  0x1d   : > { %v1413_v5 = vld [vmem:[%s355_s4] sm:$0xff]  ;;  %v367_v7 = vrot.slane %v1411_v4, 3  ;;  %v365_v9 = vrot.slane %v1411_v4, 1  ;;  %v377_v11 = vperm.slane %v1411_v4, 0  ;;  %v366_v18 = vrot.slane %v1411_v4, 2  ;;  %s715_s22 = ssub.s32 (%p1379_p5), 10, %s1002_s19  ;;  %s721_s23 = sadd.s32 (%p1379_p5), %s1020_s21, %s1002_s19 }
  0x1e   : > { %v405_v8 = vrot.slane %v1413_v5, 3  ;;  %v403_v10 = vrot.slane %v1413_v5, 1  ;;  %v404_v13 = vrot.slane %v1413_v5, 2  ;;  %v415_v14 = vperm.slane %v1413_v5, 0  ;;  %p716_p11 = scmp.lt.s32.totalorder (%p1379_p5), %s715_s22, 8  ;;  %s1005_s24 = sshll.u32 (%p1379_p5), %s721_s23, 3 }
  0x1f   : > { %v380_v12 = vperm.slane %v367_v7, 0  ;;  %v378_v16 = vperm.slane %v365_v9, 0  ;;  %v379_v28 = vperm.slane %v366_v18, 0  ;;  %v406_v33 = vrot.slane %v1413_v5, 4  ;;  %s1609_s25 = scalar_lea.vmem (%p1379_p5), %s1680_s8, %s1005_s24  }
  0x20   : > { %412 = vperm.xlu0 %1143, %v401_v3   ;;  %v418_v15 = vperm.slane %v405_v8, 0  ;;  %v416_v17 = vperm.slane %v403_v10, 0  ;;  %v417_v22 = vperm.slane %v404_v13, 0  ;;  %v368_v38 = vrot.slane %v1411_v4, 4 }
  0x21   : > { %v419_v43 = vperm.slane %v406_v33, 0  ;;  %v407_v47 = vrot.slane %v1413_v5, 5  ;;  %v369_v49 = vrot.slane %v1411_v4, 5  ;;  %v408_v56 = vrot.slane %v1413_v5, 6 }
  0x22   : > { %v381_v44 = vperm.slane %v368_v38, 0  ;;  %v370_v58 = vrot.slane %v1411_v4, 6  ;;  %v409_v1 = vrot.slane %v1413_v5, 7  ;;  %v371_v3 = vrot.slane %v1411_v4, 7 }
  0x23   : > { %v420_v52 = vperm.slane %v407_v47, 0  ;;  %v382_v53 = vperm.slane %v369_v49, 0  ;;  %v421_v61 = vperm.slane %v408_v56, 0 }
  0x24   : > { %v383_v62 = vperm.slane %v370_v58, 0  ;;  %v422_v9 = vperm.slane %v409_v1, 0  ;;  %v384_v10 = vperm.slane %v371_v3, 0 }
  0x8a   : > { %v1415_v6 = vpop.permute.xlu0 %374  ;;  %v451_v27 = vpop.permute.xlu1 %450 }
  0x8b   : > { %v393_v20 = vmul.f32 %v377_v11, %v1415_v6  ;;  %v396_v21 = vmul.f32 %v380_v12, %v1415_v6  ;;  %v394_v25 = vmul.f32 %v378_v16, %v1415_v6  ;;  %v395_v37 = vmul.f32 %v379_v28, %v1415_v6 }
  0x8c   : > { %v397_v48 = vmul.f32 %v381_v44, %v1415_v6  ;;  %v398_v57 = vmul.f32 %v382_v53, %v1415_v6  ;;  %v399_v2 = vmul.f32 %v383_v62, %v1415_v6  ;;  %v400_v13 = vmul.f32 %v384_v10, %v1415_v6  ;;  %v669_v62 = vld [vmem:[%s1679_s7] sm:$0xff] }
  0x92   : > { %v413_v19 = vpop.permute.xlu0 %412 }
  0x93   : > { %v431_v23 = vmul.f32 %v415_v14, %v413_v19  ;;  %v434_v24 = vmul.f32 %v418_v15, %v413_v19  ;;  %v432_v26 = vmul.f32 %v416_v17, %v413_v19  ;;  %v433_v32 = vmul.f32 %v417_v22, %v413_v19 }
  0x94   : > { %v435_v46 = vmul.f32 %v419_v43, %v413_v19  ;;  %v436_v55 = vmul.f32 %v420_v52, %v413_v19  ;;  %v437_v0 = vmul.f32 %v421_v61, %v413_v19  ;;  %v438_v12 = vmul.f32 %v422_v9, %v413_v19 }
  0x95   : > { %v439_v29 = vadd.f32 %v431_v23, %v393_v20  ;;  %v442_v30 = vadd.f32 %v434_v24, %v396_v21  ;;  %v440_v31 = vadd.f32 %v432_v26, %v394_v25  ;;  %v441_v42 = vadd.f32 %v433_v32, %v395_v37 }
  0x96   : > { %v443_v51 = vadd.f32 %v435_v46, %v397_v48  ;;  %v444_v60 = vadd.f32 %v436_v55, %v398_v57  ;;  %v445_v8 = vadd.f32 %v437_v0, %v399_v2  ;;  %v446_v15 = vadd.f32 %v438_v12, %v400_v13 }
  0x97   : > { %v1429_v34 = vadd.f32 %v451_v27, %v439_v29  ;;  %v1431_v35 = vadd.f32 %v451_v27, %v442_v30  ;;  %v1433_v36 = vadd.f32 %v451_v27, %v440_v31  ;;  %v1443_v45 = vadd.f32 %v451_v27, %v441_v42 }
  0x98   : > { %v1450_v54 = vadd.f32 %v451_v27, %v443_v51  ;;  %v458_v63 = vadd.f32 %v451_v27, %v444_v60  ;;  %v459_v11 = vadd.f32 %v451_v27, %v445_v8  ;;  %v460_v16 = vadd.f32 %v451_v27, %v446_v15 }
  0x99   : > { %v462_v39 = vsel %vm461_vm0, %v1429_v34, 0.0  ;;  %v471_v40 = vsel %vm461_vm0, %v1431_v35, 0.0  ;;  %v465_v41 = vsel %vm461_vm0, %v1433_v36, 0.0  ;;  %v468_v50 = vsel %vm461_vm0, %v1443_v45, 0.0 }
  0x9a   : > { %463 = vadd.xlane.f32.xlu1 %v462_v39  ;;  %472 = vadd.xlane.f32.xlu0 %v471_v40  ;;  %v474_v59 = vsel %vm461_vm0, %v1450_v54, 0.0  ;;  %v477_v7 = vsel %vm461_vm0, %v458_v63, 0.0  ;;  %v480_v14 = vsel %vm461_vm0, %v459_v11, 0.0  ;;  %v483_v5 = vsel %vm461_vm0, %v460_v16, 0.0 }
  0x9b   : > { %466 = vadd.xlane.f32.xlu2 %v465_v41  ;;  %v1287_v17 = vmov 16.0  }
  0x9c   : > { %1148 = vrcp.f32 %v1287_v17 }
  0xa2   : > { %v1149_v4 = vpop.eup %1148 }
  0xa3   : > { %469 = vadd.xlane.f32.xlu2 %v468_v50  ;;  %v487_v18 = vmul.f32 16.0, %v1149_v4  ;;  %vm491_vm1 = vweird.f32 %v1149_v4 }
  0xa5   : > { %v488_v20 = vsub.f32 1.0, %v487_v18 }
  0xa7   : > { %v489_v21 = vmul.f32 %v1149_v4, %v488_v20 }
  0xa9   : > { %v490_v22 = vadd.f32 %v1149_v4, %v489_v21 }
  0xab   : > { %475 = vadd.xlane.f32.xlu2 %v474_v59  ;;  %v1464_v23 = vsel %vm491_vm1, %v1149_v4, %v490_v22 }
  0xb3   : > { %478 = vadd.xlane.f32.xlu2 %v477_v7 }
  0xbb   : > { %481 = vadd.xlane.f32.xlu2 %v480_v14 }
  0xc3   : > { %484 = vadd.xlane.f32.xlu2 %v483_v5 }
 0x10d   : > { %v464_v19 = vpop.xlane.xlu1 %463  ;;  %v473_v6 = vpop.xlane.xlu0 %472 }
 0x10e   : > { %v493_v24 = vmul.f32 %v1464_v23, %v464_v19  ;;  %v496_v25 = vmul.f32 %v1464_v23, %v473_v6  ;;  %v467_v26 = vpop.xlane.xlu2 %466 }
 0x10f   : > { %v494_v27 = vmul.f32 %v1464_v23, %v467_v26 }
 0x110   : > { %v1470_v28 = vsub.f32 %v1429_v34, %v493_v24  ;;  %v1473_v29 = vsub.f32 %v1431_v35, %v496_v25 }
 0x111   : > { %v1476_v30 = vsub.f32 %v1433_v36, %v494_v27 }
 0x112   : > { %v512_v31 = vmul.f32 %v1473_v29, %v1473_v29  ;;  %v509_v32 = vmul.f32 %v1470_v28, %v1470_v28 }
 0x113   : > { %v510_v33 = vmul.f32 %v1476_v30, %v1476_v30 }
 0x114   : > { %v526_v37 = vsel %vm461_vm0, %v512_v31, 0.0  ;;  %v517_v34 = vsel %vm461_vm0, %v509_v32, 0.0 }
 0x115   : > { %527 = vadd.xlane.f32.xlu0 %v526_v37  ;;  %518 = vadd.xlane.f32.xlu2 %v517_v34  ;;  %v520_v35 = vsel %vm461_vm0, %v510_v33, 0.0  ;;  %v1532_v34 = vld [vmem:[%s1677_s5] ss:$0 sm:$0xff] }
 0x116   : > { %521 = vadd.xlane.f32.xlu1 %v520_v35  ;;  %v470_v36 = vpop.xlane.xlu2 %469 }
 0x117   : > { %v495_v38 = vmul.f32 %v1464_v23, %v470_v36 }
 0x119   : > { %v1489_v39 = vsub.f32 %v1443_v45, %v495_v38 }
 0x11b   : > { %v511_v40 = vmul.f32 %v1489_v39, %v1489_v39 }
 0x11d   : > { %v523_v41 = vsel %vm461_vm0, %v511_v40, 0.0 }
 0x11e   : > { %524 = vadd.xlane.f32.xlu2 %v523_v41  ;;  %v476_v42 = vpop.xlane.xlu2 %475 }
 0x11f   : > { %v497_v43 = vmul.f32 %v1464_v23, %v476_v42 }
 0x121   : > { %v1496_v44 = vsub.f32 %v1450_v54, %v497_v43 }
 0x123   : > { %v513_v46 = vmul.f32 %v1496_v44, %v1496_v44 }
 0x125   : > { %v529_v47 = vsel %vm461_vm0, %v513_v46, 0.0 }
 0x126   : > { %530 = vadd.xlane.f32.xlu1 %v529_v47  ;;  %v479_v45 = vpop.xlane.xlu2 %478 }
 0x127   : > { %v498_v48 = vmul.f32 %v1464_v23, %v479_v45  ;;  %v1540_v45 = vld [vmem:[%s1678_s6] ss:$0 sm:$0xff] }
 0x129   : > { %v1502_v49 = vsub.f32 %v458_v63, %v498_v48 }
 0x12b   : > { %v514_v50 = vmul.f32 %v1502_v49, %v1502_v49 }
 0x12d   : > { %v532_v51 = vsel %vm461_vm0, %v514_v50, 0.0 }
 0x12e   : > { %533 = vadd.xlane.f32.xlu2 %v532_v51  ;;  %v482_v52 = vpop.xlane.xlu2 %481 }
 0x12f   : > { %v499_v53 = vmul.f32 %v1464_v23, %v482_v52 }
 0x131   : > { %v1508_v54 = vsub.f32 %v459_v11, %v499_v53 }
 0x133   : > { %v515_v55 = vmul.f32 %v1508_v54, %v1508_v54 }
 0x135   : > { %v535_v56 = vsel %vm461_vm0, %v515_v55, 0.0 }
 0x136   : > { %536 = vadd.xlane.f32.xlu0 %v535_v56  ;;  %v485_v57 = vpop.xlane.xlu2 %484 }
 0x137   : > { %v500_v58 = vmul.f32 %v1464_v23, %v485_v57 }
 0x139   : > { %v1514_v59 = vsub.f32 %v460_v16, %v500_v58 }
 0x13b   : > { %v516_v60 = vmul.f32 %v1514_v59, %v1514_v59 }
 0x13d   : > { %v538_v61 = vsel %vm461_vm0, %v516_v60, 0.0 }
 0x13e   : > { %539 = vadd.xlane.f32.xlu1 %v538_v61 }
 0x146   : > { %680 = vperm.xlu2 %1145, %v669_v62  }
 0x188   : > { %v528_v63 = vpop.xlane.xlu0 %527  ;;  %v519_v0 = vpop.xlane.xlu2 %518 }
 0x189   : > { %v544_v1 = vmul.f32 %v528_v63, %v1464_v23  ;;  %v522_v2 = vpop.xlane.xlu1 %521  ;;  %v541_v3 = vmul.f32 %v519_v0, %v1464_v23 }
 0x18a   : > { %v542_v7 = vmul.f32 %v522_v2, %v1464_v23 }
 0x18b   : > { %v552_v8 = vadd.f32 1e-05, %v544_v1  ;;  %v549_v9 = vadd.f32 1e-05, %v541_v3 }
 0x18c   : > { %v550_v10 = vadd.f32 1e-05, %v542_v7 }
 0x18d   : > { %1150 = vrsqrt.f32 %v552_v8  ;;  %vm593_vm3 = vweird.f32 %v552_v8  ;;  %vm563_vm9 = vweird.f32 %v549_v9 }
 0x18e   : > { %1152 = vrsqrt.f32 %v550_v10  ;;  %vm573_vm7 = vweird.f32 %v550_v10 }
 0x18f   : > { %1154 = vrsqrt.f32 %v549_v9 }
 0x191   : > { %v525_v11 = vpop.xlane.xlu2 %524 }
 0x192   : > { %v543_v12 = vmul.f32 %v525_v11, %v1464_v23 }
 0x193   : > { %v1151_v13 = vpop.eup %1150 }
 0x194   : > { %v1153_v14 = vpop.eup %1152  ;;  %v588_v15 = vmul.f32 %v1151_v13, %v552_v8  ;;  %v551_v16 = vadd.f32 1e-05, %v543_v12  ;;  %vm594_vm2 = vweird.f32 %v1151_v13 }
 0x195   : > { %v1155_v5 = vpop.eup %1154  ;;  %v568_v17 = vmul.f32 %v1153_v14, %v550_v10  ;;  %vm574_vm4 = vweird.f32 %v1153_v14  ;;  %vm595_vm6 = vmor %vm593_vm3, %vm594_vm2 }
 0x196   : > { %v589_v4 = vmul.f32 %v1151_v13, %v588_v15  ;;  %v558_v18 = vmul.f32 %v1155_v5, %v549_v9  ;;  %1156 = vrsqrt.f32 %v551_v16  ;;  %vm564_vm5 = vweird.f32 %v1155_v5  ;;  %vm575_vm8 = vmor %vm573_vm7, %vm574_vm4 }
 0x197   : > { %v569_v20 = vmul.f32 %v1153_v14, %v568_v17  ;;  %vm565_vm10 = vmor %vm563_vm9, %vm564_vm5  ;;  %vm583_vm12 = vweird.f32 %v551_v16 }
 0x198   : > { %v590_v21 = vmul.f32 0.5, %v589_v4  ;;  %v559_v22 = vmul.f32 %v1155_v5, %v558_v18 }
 0x199   : > { %v570_v19 = vmul.f32 0.5, %v569_v20  ;;  %v531_v6 = vpop.xlane.xlu1 %530 }
 0x19a   : > { %v591_v24 = vsub.f32 1.5, %v590_v21  ;;  %v560_v25 = vmul.f32 0.5, %v559_v22  ;;  %v545_v26 = vmul.f32 %v531_v6, %v1464_v23 }
 0x19b   : > { %v571_v27 = vsub.f32 1.5, %v570_v19 }
 0x19c   : > { %v1157_v31 = vpop.eup %1156  ;;  %v592_v32 = vmul.f32 %v1151_v13, %v591_v24  ;;  %v561_v33 = vsub.f32 1.5, %v560_v25  ;;  %v1527_v37 = vadd.f32 1e-05, %v545_v26 }
 0x19d   : > { %v572_v35 = vmul.f32 %v1153_v14, %v571_v27  ;;  %v578_v36 = vmul.f32 %v1157_v31, %v551_v16  ;;  %vm584_vm11 = vweird.f32 %v1157_v31 }
 0x19e   : > { %v596_v38 = vsel %vm595_vm6, %v1151_v13, %v592_v32  ;;  %v562_v40 = vmul.f32 %v1155_v5, %v561_v33  ;;  %1158 = vrsqrt.f32 %v1527_v37  ;;  %vm585_vm13 = vmor %vm583_vm12, %vm584_vm11  ;;  %vm603_vm3 = vweird.f32 %v1527_v37 }
 0x19f   : > { %v640_v41 = vmul.f32 %v596_v38, %v1473_v29  ;;  %v576_v42 = vsel %vm575_vm8, %v1153_v14, %v572_v35  ;;  %v579_v43 = vmul.f32 %v1157_v31, %v578_v36 }
 0x1a0   : > { %v638_v46 = vmul.f32 %v576_v42, %v1476_v30  ;;  %v566_v47 = vsel %vm565_vm10, %v1155_v5, %v562_v40 }
 0x1a1   : > { %v652_v48 = vmul.f32 %v1532_v34, %v640_v41  ;;  %v637_v50 = vmul.f32 %v566_v47, %v1470_v28  ;;  %v580_v51 = vmul.f32 0.5, %v579_v43  ;;  %v534_v52 = vpop.xlane.xlu2 %533 }
 0x1a2   : > { %v650_v29 = vmul.f32 %v1532_v34, %v638_v46  ;;  %v546_v53 = vmul.f32 %v534_v52, %v1464_v23 }
 0x1a3   : > { %v649_v55 = vmul.f32 %v1532_v34, %v637_v50  ;;  %v581_v56 = vsub.f32 1.5, %v580_v51  ;;  %v664_v58 = vadd.f32 %v1540_v45, %v652_v48 }
 0x1a4   : > { %v1159_v30 = vpop.eup %1158  ;;  %v554_v57 = vadd.f32 1e-05, %v546_v53  ;;  %v662_v60 = vadd.f32 %v1540_v45, %v650_v29 }
 0x1a5   : > { %v582_v61 = vmul.f32 %v1157_v31, %v581_v56  ;;  %v598_v28 = vmul.f32 %v1159_v30, %v1527_v37  ;;  %v661_v62 = vadd.f32 %v1540_v45, %v649_v55  ;;  %vm673_vm14 = vcmp.ge.f32.partialorder %v664_v58, 0.0 }
 0x1a6   : > { %1160 = vrsqrt.f32 %v554_v57  ;;  %vm671_vm15 = vcmp.ge.f32.partialorder %v662_v60, 0.0  ;;  %vm604_vm2 = vweird.f32 %v1159_v30  ;;  %vm613_vm7 = vweird.f32 %v554_v57 }
 0x1a7   : > { %v586_v63 = vsel %vm585_vm13, %v1157_v31, %v582_v61  ;;  %v599_v0 = vmul.f32 %v1159_v30, %v598_v28  ;;  %vm670_vm1 = vcmp.ge.f32.partialorder %v661_v62, 0.0  ;;  %vm605_vm5 = vmor %vm603_vm3, %vm604_vm2 }
 0x1a8   : > { %v639_v1 = vmul.f32 %v586_v63, %v1489_v39 }
 0x1a9   : > { %v600_v2 = vmul.f32 0.5, %v599_v0  ;;  %v537_v3 = vpop.xlane.xlu0 %536  ;;  %v1553_v7 = vpop.permute.xlu2 %680 }
 0x1aa   : > { %v651_v8 = vmul.f32 %v1532_v34, %v639_v1  ;;  %v547_v9 = vmul.f32 %v537_v3, %v1464_v23  ;;  %v683_v10 = vmul.f32 %v1553_v7, %v661_v62  ;;  %v684_v11 = vmul.f32 %v1553_v7, %v662_v60 }
 0x1ab   : > { %v601_v12 = vsub.f32 1.5, %v600_v2  ;;  %v686_v13 = vmul.f32 %v1553_v7, %v664_v58 }
 0x1ac   : > { %v1161_v39 = vpop.eup %1160  ;;  %v663_v14 = vadd.f32 %v1540_v45, %v651_v8  ;;  %v555_v15 = vadd.f32 1e-05, %v547_v9  ;;  %v691_v16 = vsel %vm670_vm1, %v661_v62, %v683_v10  ;;  %v692_v5 = vsel %vm671_vm15, %v662_v60, %v684_v11 }
 0x1ad   : > { %v602_v17 = vmul.f32 %v1159_v30, %v601_v12  ;;  %v608_v4 = vmul.f32 %v1161_v39, %v554_v57  ;;  %v694_v18 = vsel %vm673_vm14, %v664_v58, %v686_v13  ;;  %699 = vst.msk [vmem:[%s1564_s27] sm:$0xff] %vm461_vm0, %v691_v16  ;;  %vm614_vm6 = vweird.f32 %v1161_v39 }
 0x1ae   : > { %vm672_vm4 = vcmp.ge.f32.partialorder %v663_v14, 0.0  ;;  %1162 = vrsqrt.f32 %v555_v15  ;;  %v685_v20 = vmul.f32 %v1553_v7, %v663_v14  ;;  %700 = vst.msk [vmem:[%s1564_s27 + $0x8] sm:$0xff] %vm461_vm0, %v692_v5  ;;  %vm615_vm9 = vmor %vm613_vm7, %vm614_vm6  ;;  %vm623_vm11 = vweird.f32 %v555_v15 }
 0x1af   : > { %v606_v21 = vsel %vm605_vm5, %v1159_v30, %v602_v17  ;;  %v609_v22 = vmul.f32 %v1161_v39, %v608_v4  ;;  %702 = vst.msk [vmem:[%s1564_s27 + $0x18] sm:$0xff] %vm461_vm0, %v694_v18 }
 0x1b0   : > { %v641_v19 = vmul.f32 %v606_v21, %v1496_v44  ;;  %v693_v6 = vsel %vm672_vm4, %v663_v14, %v685_v20 }
 0x1b1   : > { %v610_v24 = vmul.f32 0.5, %v609_v22  ;;  %701 = vst.msk [vmem:[%s1564_s27 + $0x10] sm:$0xff] %vm461_vm0, %v693_v6  ;;  %v540_v25 = vpop.xlane.xlu1 %539 }
 0x1b2   : > { %v653_v26 = vmul.f32 %v1532_v34, %v641_v19  ;;  %v548_v27 = vmul.f32 %v540_v25, %v1464_v23 }
 0x1b3   : > { %v611_v31 = vsub.f32 1.5, %v610_v24 }
 0x1b4   : > { %v1163_v32 = vpop.eup %1162  ;;  %v665_v33 = vadd.f32 %v1540_v45, %v653_v26  ;;  %v556_v37 = vadd.f32 1e-05, %v548_v27 }
 0x1b5   : > { %v612_v35 = vmul.f32 %v1161_v39, %v611_v31  ;;  %v618_v36 = vmul.f32 %v1163_v32, %v555_v15  ;;  %vm624_vm10 = vweird.f32 %v1163_v32 }
 0x1b6   : > { %vm674_vm8 = vcmp.ge.f32.partialorder %v665_v33, 0.0  ;;  %v687_v44 = vmul.f32 %v1553_v7, %v665_v33  ;;  %1164 = vrsqrt.f32 %v556_v37  ;;  %vm625_vm13 = vmor %vm623_vm11, %vm624_vm10  ;;  %vm633_vm15 = vweird.f32 %v556_v37 }
 0x1b7   : > { %v616_v38 = vsel %vm615_vm9, %v1161_v39, %v612_v35  ;;  %v619_v40 = vmul.f32 %v1163_v32, %v618_v36 }
 0x1b8   : > { %v642_v41 = vmul.f32 %v616_v38, %v1502_v49  ;;  %v695_v23 = vsel %vm674_vm8, %v665_v33, %v687_v44 }
 0x1b9   : > { %v620_v42 = vmul.f32 0.5, %v619_v40  ;;  %703 = vst.msk [vmem:[%s1564_s27 + $0x20] sm:$0xff] %vm461_vm0, %v695_v23 }
 0x1ba   : > { %v654_v43 = vmul.f32 %v1532_v34, %v642_v41 }
 0x1bb   : > { %v621_v46 = vsub.f32 1.5, %v620_v42 }
 0x1bc   : > { %v1165_v47 = vpop.eup %1164  ;;  %v666_v48 = vadd.f32 %v1540_v45, %v654_v43 }
 0x1bd   : > { %v622_v50 = vmul.f32 %v1163_v32, %v621_v46  ;;  %v628_v51 = vmul.f32 %v1165_v47, %v556_v37  ;;  %vm634_vm14 = vweird.f32 %v1165_v47 }
 0x1be   : > { %vm675_vm12 = vcmp.ge.f32.partialorder %v666_v48, 0.0  ;;  %v688_v52 = vmul.f32 %v1553_v7, %v666_v48  ;;  %vm635_vm2 = vmor %vm633_vm15, %vm634_vm14 }
 0x1bf   : > { %v626_v49 = vsel %vm625_vm13, %v1163_v32, %v622_v50  ;;  %v629_v29 = vmul.f32 %v1165_v47, %v628_v51 }
 0x1c0   : > { %v643_v53 = vmul.f32 %v626_v49, %v1508_v54  ;;  %v696_v55 = vsel %vm675_vm12, %v666_v48, %v688_v52 }
 0x1c1   : > { %704 = vst.msk [vmem:[%s1564_s27 + $0x28] sm:$0xff] %vm461_vm0, %v696_v55  ;;  %v630_v56 = vmul.f32 0.5, %v629_v29 }
 0x1c2   : > { %v655_v30 = vmul.f32 %v1532_v34, %v643_v53 }
 0x1c3   : > { %v631_v57 = vsub.f32 1.5, %v630_v56 }
 0x1c4   : > { %v667_v58 = vadd.f32 %v1540_v45, %v655_v30 }
 0x1c5   : > { %v632_v60 = vmul.f32 %v1165_v47, %v631_v57 }
 0x1c6   : > { %vm676_vm1 = vcmp.ge.f32.partialorder %v667_v58, 0.0  ;;  %v689_v61 = vmul.f32 %v1553_v7, %v667_v58 }
 0x1c7   : > { %v636_v28 = vsel %vm635_vm2, %v1165_v47, %v632_v60 }
 0x1c8   : > { %v697_v54 = vsel %vm676_vm1, %v667_v58, %v689_v61  ;;  %v644_v62 = vmul.f32 %v636_v28, %v1514_v59 }
 0x1c9   : > { %705 = vst.msk [vmem:[%s1564_s27 + $0x30] sm:$0xff] %vm461_vm0, %v697_v54 }
 0x1ca   : > { %v656_v63 = vmul.f32 %v1532_v34, %v644_v62 }
 0x1cc   : > { %v668_v0 = vadd.f32 %v1540_v45, %v656_v63 }
 0x1cd   : > { %713 = sbr.rel (!%p1379_p5) target bundleno = 508 (0x1fc), region = 56 }
 0x1ce   : > { %vm677_vm3 = vcmp.ge.f32.partialorder %v668_v0, 0.0  ;;  %v690_v1 = vmul.f32 %v1553_v7, %v668_v0 }
 0x1d0   : > { %v698_v2 = vsel %vm677_vm3, %v668_v0, %v690_v1 }
 0x1d1   : > { %706 = vst.msk [vmem:[%s1564_s27 + $0x38] sm:$0xff] %vm461_vm0, %v698_v2 }
 0x1d2   : > { %s1703_s22 = smov (!%p716_p11, %s715_s22), 8 }
 0x1d3   : > { %s1003_s26 = sshll.u32 %s1703_s22, 3 }
 0x1d4   : > { %p1006_p12 = scmp.eq.s32.totalorder %s1003_s26, 0 }
 0x1d5   : > { %s1613_s16 = sshrl.u32 (!%p1006_p12), %s1703_s22, 3 }
 0x1d6   : > { %726 = sbr.rel (%p1006_p12) target bundleno = 508 (0x1fc), region = 60  ;;  %p1007_p13 = scmp.le.s32.totalorder (!%p1006_p12), %s1613_s16, 0 }
 0x1db   : > { %930 = sbr.rel (%p1007_p13) target bundleno = 491 (0x1eb), region = 139  ;;  %s1686_s29 = smov (!%p1007_p13), %s1609_s25 }
 0x1dc   : > { %s1687_s30 = smov (!%p1007_p13), %s1564_s27  ;;  %s1622_s14 = smov (!%p1007_p13), 0  }
 0x1dd   : > { %s1624_s15 = smov (!%p1007_p13), 0  }
 0x1e0 LB: >> { %v803_v59 = vld [vmem:[%s1260_s30] sm:$0xff]  ;;  %v805_v34 = vld [vmem:[%s1260_s30 + $0x8] sm:$0xff]  ;;  %v807_v45 = vld [vmem:[%s1260_s30 + $0x10] sm:$0xff]  ;;  %s819_s17 = sadd.s32 1, %s1264_s14  ;;  %s797_s15 = sadd.s32 1, %s1268_s15   ;;  %s1268_s15 = sphi %s1624_s15, %s797_s15   ;;  %s1264_s14 = sphi %s1622_s14, %s1689_s14   ;;  %s1260_s30 = sphi %s1687_s30, %s824_s30   ;;  %s1256_s29 = sphi %s1686_s29, %s1688_s29  }
 0x1e1   : >> { %804 = vst [vmem:[%s1256_s29] sm:$0xff] %v803_v59  ;;  %v809_v3 = vld [vmem:[%s1260_s30 + $0x18] sm:$0xff]  ;;  %p820_p0 = scmp.ge.s32.totalorder %s819_s17, %s1613_s16  ;;  %v811_v7 = vld [vmem:[%s1260_s30 + $0x20] sm:$0xff]  ;;  %v813_v8 = vld [vmem:[%s1260_s30 + $0x28] sm:$0xff]  ;;  %p796_p1 = scmp.ge.s32.totalorder %s797_s15, %s1613_s16 }
 0x1e2   : >> { %806 = vst [vmem:[%s1256_s29 + $0x8] sm:$0xff] %v805_v34  ;;  %v815_v9 = vld [vmem:[%s1260_s30 + $0x30] sm:$0xff]  ;;  %v817_v10 = vld [vmem:[%s1260_s30 + $0x38] sm:$0xff] }
 0x1e3   : >> { %808 = vst [vmem:[%s1256_s29 + $0x10] sm:$0xff] %v807_v45  ;;  %s1705_s17 = smov (%p820_p0, %s819_s17), 0 }
 0x1e4   : >> { %810 = vst [vmem:[%s1256_s29 + $0x18] sm:$0xff] %v809_v3  ;;  %s1008_s18 = sshll.u32 %s1705_s17, 6  ;;  %s1689_s14 = smov %s1705_s17 }
 0x1e5   : >> { %812 = vst [vmem:[%s1256_s29 + $0x20] sm:$0xff] %v811_v7  ;;  %s824_s30 = scalar_lea.vmem %s1564_s27, %s1008_s18 [#allocation2]   ;;  %s825_s19 = scalar_lea.vmem %s1609_s25, %s1008_s18  }
 0x1e6   : >> { %814 = vst [vmem:[%s1256_s29 + $0x28] sm:$0xff] %v813_v8  ;;  %799 = sbr.rel (!%p796_p1) target bundleno = 480 (0x1e0), region = 145 }
 0x1e7   : >> { %816 = vst [vmem:[%s1256_s29 + $0x30] sm:$0xff] %v815_v9 }
 0x1e8   : >> { %818 = vst [vmem:[%s1256_s29 + $0x38] sm:$0xff] %v817_v10  ;;  %s1688_s29 = smov %s825_s19 }
 0x1eb PF: > { %s1643_s21 = sand.u32 7, %s1703_s22   ;;  %s1018_s23 = sshll.u32 %s1613_s16, 6 }
 0x1ec   : > { %s830_s24 = scalar_lea.vmem %s1564_s27, %s1018_s23 [#allocation2]   ;;  %s832_s2 = scalar_lea.vmem %s1609_s25, %s1018_s23  }
 0x1ed   : > { %p1013_p2 = scmp.le.s32.totalorder %s1643_s21, 0 }
 0x1ee   : > { %s1270_s4 = smov (!%p1013_p2), %s832_s2   ;;  %s1274_s26 = smov (!%p1013_p2), %s830_s24  }
 0x1ef   : > { %944 = sbr.rel (%p1013_p2) target bundleno = 508 (0x1fc), region = 150  ;;  %s1278_s18 = smov (!%p1013_p2), 0  }
 0x1f0   : > { %s1282_s17 = smov (!%p1013_p2), 0  }
 0x1f4 LB: >> { %v842_v11 = vld [vmem:[%s1276_s26] sm:$0xff]  ;;  %s844_s22 = sadd.s32 1, %s1280_s18  ;;  %s836_s17 = sadd.s32 1, %s1284_s17   ;;  %s1284_s17 = sphi %s1282_s17, %s836_s17   ;;  %s1280_s18 = sphi %s1278_s18, %s1279_s18   ;;  %s1276_s26 = sphi %s1274_s26, %s849_s26   ;;  %s1272_s4 = sphi %s1270_s4, %s850_s4  }
 0x1f5   : >> { %843 = vst [vmem:[%s1272_s4] sm:$0xff] %v842_v11  ;;  %p845_p3 = scmp.ge.s32.totalorder %s844_s22, %s1643_s21  ;;  %p835_p4 = scmp.ge.s32.totalorder %s836_s17, %s1643_s21 }
 0x1f7   : >> { %s1707_s22 = smov (%p845_p3, %s844_s22), 0  ;;  %838 = sbr.rel (!%p835_p4) target bundleno = 500 (0x1f4), region = 156 }
 0x1f8   : >> { %s1014_s27 = sshll.u32 %s1707_s22, 3  ;;  %s1279_s18 = smov %s1707_s22  }
 0x1f9   : >> { %s849_s26 = scalar_lea.vmem %s830_s24, %s1014_s27 [#allocation2]   ;;  %s850_s4 = scalar_lea.vmem %s832_s2, %s1014_s27  }
 0x1fc PF: > { %s18_s11 = sadd.s32 1, %s1252_s11   ;;  %s1690_s27 = smov %s1232_s28 }
 0x1fd   : > { %p15_p5 = scmp.ge.s32.totalorder %s18_s11, 6   ;;  %s1691_s28 = smov %s1390_s20 }
 0x1fe   : > { %s1692_s29 = smov %s1244_s9  ;;  %s1693_s30 = smov %s1248_s10 }
 0x1ff   : > { %s1694_s9 = smov %s1697_s12  ;;  %s1695_s10 = smov %s1701_s13 }
 0x200   :  { %17 = sbr.rel (!%p15_p5) target bundleno = 7 (0x7), region = 167 }

// kernel: dptnet_forward.15
= control target key start
LH: loop header
LB: loop body
LE: loop exit
PB: predicated region body
PF: predicated region fallthrough
CT: control target
= control target key end

     0   :  { %s839_s24 = smov 0   ;;  %s841_s25 = smov 0   ;;  %s943_s0 = inlined_call_operand.vmem [shape: f32[2,11,8,18], index: 0, kind: input, shape index: {}, may-alias: {0,1}]   ;;  %s944_s1 = inlined_call_operand.vmem [shape: f32[2,11,8,18], index: 1, kind: input, shape index: {}, may-alias: {0,1}]   ;;  %s945_s2 = inlined_call_operand.vmem [shape: f32[2,3,8,8], index: 2, kind: input, shape index: {}]   ;;  %s946_s3 = inlined_call_operand.vmem [shape: f32[8,1], index: 3, kind: input, shape index: {}]   ;;  %s947_s4 = inlined_call_operand.vmem [shape: f32[1,16], index: 4, kind: input, shape index: {}]   ;;  %s948_s5 = inlined_call_operand.vmem [shape: f32[1,16], index: 5, kind: input, shape index: {}]   ;;  %s949_s6 = inlined_call_operand.vmem [shape: f32[8,1], index: 6, kind: input, shape index: {}]   ;;  %s950_s7 = inlined_call_operand.vmem [shape: f32[2,10,8,16], index: 7, kind: output, shape index: {}]  }
   0x1   :  { %s843_s26 = smov 0   ;;  %s845_s27 = smov 0  }
   0x2   :  { %s847_s28 = smov 0  }
   0x3 LB: > { %s26_s29 = sadd.s32 1, %s785_s26  ;;  %s29_s30 = sadd.s32 1, %s789_s27  ;;  %s793_s28 = sphi %s847_s28, %s17_s28   ;;  %s789_s27 = sphi %s845_s27, %s954_s27   ;;  %s785_s26 = sphi %s843_s26, %s953_s26   ;;  %s781_s25 = sphi %s841_s25, %s952_s25   ;;  %s777_s24 = sphi %s839_s24, %s951_s24  }
   0x4   : > { %p27_p0 = scmp.ge.s32.totalorder %s26_s29, 10  ;;  %p683_p1 = scmp.ge.s32.totalorder %s793_s28, 1 }
   0x5   : > { %p275_p2 = scmp.lt.s32.totalorder %s793_s28, 21 }
   0x6   : > { %s956_s29 = smov (%p27_p0, %s26_s29), 0  ;;  %s958_s30 = smov (!%p27_p0, %s29_s30), %s789_s27 }
   0x7   : > { %p276_p3 = pnand %p683_p1, %p275_p2  ;;  %p31_p4 = scmp.ge.s32.totalorder %s958_s30, 2 }
   0x8   : > { %p322_p5 = scmp.lt.s32.totalorder (!%p276_p3), %s781_s25, 1  ;;  %p324_p6 = scmp.lt.s32.totalorder (!%p276_p3), %s777_s24, 10 }
   0x9   : > { %s960_s30 = smov (%p31_p4, %s958_s30), 0  ;;  %279 = sbr.rel (%p276_p3) target bundleno = 558 (0x22e), region = 48 }
   0xa   : > { %s330_s8 = sadd.s32 (!%p276_p3), 1, %s777_s24  ;;  %s795_s16 = smov (!%p276_p3), 126  }
   0xb   : > { %p333_p7 = scmp.lt.s32.totalorder (!%p276_p3), %s330_s8, 10  ;;  %s796_s22 = smov (!%p276_p3), 127  }
   0xc   : > { %p342_p8 = scmp.lt.s32.totalorder (!%p276_p3), %s777_s24, 9 }
   0xe   : > { %s962_s25 = smov (!%p322_p5, %s781_s25), 1  ;;  %s964_s8 = smov (!%p333_p7, %s330_s8), 10  ;;  %vm357_vm0 = vcmask 64512   ;;  %v692_v2 = vld [vmem:[%s945_s2 + $0x18] sm:$0xff]  ;;  %v350_v3 = vld [vmem:[%s945_s2] sm:$0xff]  ;;  %v797_v5 = vmov 0  }
   0xf   : > { %s325_s9 = scalar_select %p324_p6, %s777_s24, 10  ;;  %v518_v4 = vld [vmem:[%s946_s3] sm:$0xff]  ;;  %746 = vset.pattern.permute.xlu2 %v797_v5  ;;  %747 = vset.pattern.permute.xlu1 %v797_v5  ;;  %v690_v6 = vld [vmem:[%s945_s2 + $0x10] sm:$0xff]  ;;  %v687_v9 = vld [vmem:[%s945_s2 + $0x8] sm:$0xff]  ;;  %vm525_vm1 = vcmask 130048   ;;  %v798_v28 = vmov 16.0  }
  0x10   : > { %s700_s10 = smul.u32 11, %s962_s25  ;;  %521 = vperm.xlu2 %746, %v518_v4   ;;  %748 = vset.pattern.permute.xlu0 %v797_v5  ;;  %v696_v11 = vld [vmem:[%s945_s2 + $0x28] sm:$0xff]  ;;  %v694_v13 = vld [vmem:[%s945_s2 + $0x20] sm:$0xff]  ;;  %751 = vrcp.f32 %v798_v28  ;;  %s966_s24 = smov (!%p342_p8, %s777_s24), 9 }
  0x11   : > { %v566_v29 = vld [vmem:[%s949_s6] sm:$0xff]  ;;  %s701_s23 = smul.u32 10, %s962_s25 }
  0x12   : > { %s327_s11 = sadd.s32 %s700_s10, %s325_s9  ;;  %s336_s17 = sadd.s32 %s700_s10, %s964_s8  ;;  %v749_v50 = vld [vmem:[%s947_s4] ss:$0 sm:$0xff] }
  0x13   : > { %s684_s12 = sshll.u32 %s327_s11, 3  ;;  %s685_s18 = sshll.u32 %s336_s17, 3  ;;  %v750_v52 = vld [vmem:[%s948_s5] ss:$0 sm:$0xff] }
  0x14   : > { %s329_s15 = scalar_lea.vmem %s943_s0, %s684_s12  ;;  %s338_s21 = scalar_lea.vmem %s944_s1, %s685_s18 }
  0x15   : > { %v348_v0 = vld [vmem:[%s329_s15] sm:$0xff]  ;;  %s345_s8 = sadd.s32 %s701_s23, %s966_s24 }
  0x16   : > { %406 = vrot.lane.b32.xlu0 %v348_v0, %s795_s16  ;;  %399 = vmatpush.msra.mxu1 %v348_v0  ;;  %v349_v1 = vld [vmem:[%s338_s21] sm:$0xff]  ;;  %v752_v30 = vpop.eup %751  ;;  %s686_s13 = sshll.u32 %s345_s8, 3 }
  0x17   : > { %462 = vrot.lane.b32.xlu1 %v349_v1, %s796_s22  ;;  %453 = vmatpush.msra.mxu3 %v349_v1  ;;  %v530_v31 = vmul.f32 16.0, %v752_v30  ;;  %vm534_vm2 = vweird.f32 %v752_v30  ;;  %s347_s15 = scalar_lea.vmem %s950_s7, %s686_s13 }
  0x18   : > { %693 = vmatmul.msk.f32.vlgmr.msra.gmra.mxu3 %vm357_vm0, %v692_v2  ;;  %689 = vmatmul.msk.f32.vlgmr.msra.gmra.mxu1 %vm357_vm0, %v350_v3 }
  0x19   : > { %v531_v32 = vsub.f32 1.0, %v530_v31 }
  0x1b   : > { %v532_v33 = vmul.f32 %v752_v30, %v531_v32 }
  0x1d   : > { %v533_v34 = vadd.f32 %v752_v30, %v532_v33 }
  0x1e   : > { %354 = vrot.lane.b32.xlu0 %v348_v0, %s796_s22 }
  0x1f   : > { %491 = vrot.lane.b32.xlu1 %v349_v1, %s795_s16  ;;  %v535_v35 = vsel %vm534_vm2, %v752_v30, %v533_v34 }
  0x27   : > { %569 = vperm.xlu1 %747, %v566_v29  }
  0x6a   : > { %v522_v24 = vpop.permute.xlu2 %521 }
  0x88   : > { %v407_v7 = vpop.permute.xlu0 %406 }
  0x89   : > { %427 = vmatpush.msra.mxu2 %v407_v7  ;;  %v463_v8 = vpop.permute.xlu1 %462 }
  0x8a   : > { %691 = vmatmul.msk.f32.vlgmr.msra.gmra.mxu2 %vm357_vm0, %v690_v6 }
  0x90   : > { %v355_v10 = vpop.permute.xlu0 %354 }
  0x91   : > { %376 = vmatpush.msra.mxu0 %v355_v10  ;;  %v492_v12 = vpop.permute.xlu1 %491 }
  0x92   : > { %688 = vmatmul.msk.f32.vlgmr.msra.gmra.mxu0 %vm357_vm0, %v687_v9  ;;  %512 = vmatpush.msrb.mxu1 %v492_v12 }
  0x93   : > { %483 = vmatpush.msrb.mxu0 %v463_v8  ;;  %697 = vmatmul.msk.f32.vlgmr.msrb.gmra.mxu1 %vm357_vm0, %v696_v11 }
  0x95   : > { %v401_v14 = vpop.f32.mrf.mxu1 }
  0x99   : > { %v570_v55 = vpop.permute.xlu1 %569 }
  0x9a   : > { %695 = vmatmul.msk.f32.vlgmr.msrb.gmra.mxu0 %vm357_vm0, %v694_v13 }
  0x9b   : > { %v455_v19 = vpop.f32.mrf.mxu3 }
 0x10d   : > { %v429_v16 = vpop.f32.mrf.mxu2 }
 0x10f   : > { %v378_v15 = vpop.f32.mrf.mxu0 }
 0x110   : > { %v402_v17 = vadd.f32 %v401_v14, %v378_v15  ;;  %v514_v22 = vpop.f32.mrf.mxu1 }
 0x112   : > { %v432_v18 = vadd.f32 %v429_v16, %v402_v17 }
 0x114   : > { %v458_v20 = vadd.f32 %v455_v19, %v432_v18 }
 0x117   : > { %v485_v21 = vpop.f32.mrf.mxu0 }
 0x118   : > { %v488_v23 = vadd.f32 %v485_v21, %v458_v20 }
 0x11a   : > { %v517_v25 = vadd.f32 %v514_v22, %v488_v23 }
 0x11c   : > { %v524_v26 = vadd.f32 %v522_v24, %v517_v25 }
 0x11e   : > { %v526_v27 = vsel %vm525_vm1, %v524_v26, 0.0 }
 0x11f   : > { %527 = vadd.xlane.f32.xlu2 %v526_v27 }
 0x192   : > { %v528_v36 = vpop.xlane.xlu2 %527 }
 0x193   : > { %v536_v37 = vmul.f32 %v535_v35, %v528_v36 }
 0x195   : > { %v537_v38 = vsub.f32 %v524_v26, %v536_v37 }
 0x197   : > { %v538_v39 = vmul.f32 %v537_v38, %v537_v38 }
 0x199   : > { %v539_v40 = vsel %vm525_vm1, %v538_v39, 0.0 }
 0x19a   : > { %540 = vadd.xlane.f32.xlu0 %v539_v40 }
 0x20d   : > { %v541_v41 = vpop.xlane.xlu0 %540 }
 0x20e   : > { %v542_v42 = vmul.f32 %v541_v41, %v535_v35 }
 0x210   : > { %v543_v43 = vadd.f32 1e-05, %v542_v42 }
 0x212   : > { %753 = vrsqrt.f32 %v543_v43  ;;  %vm550_vm4 = vweird.f32 %v543_v43 }
 0x218   : > { %v754_v44 = vpop.eup %753 }
 0x219   : > { %v545_v45 = vmul.f32 %v754_v44, %v543_v43  ;;  %vm551_vm3 = vweird.f32 %v754_v44 }
 0x21a   : > { %vm552_vm5 = vmor %vm550_vm4, %vm551_vm3 }
 0x21b   : > { %v546_v46 = vmul.f32 %v754_v44, %v545_v45 }
 0x21d   : > { %v547_v47 = vmul.f32 0.5, %v546_v46 }
 0x21f   : > { %v548_v48 = vsub.f32 1.5, %v547_v47 }
 0x221   : > { %v549_v49 = vmul.f32 %v754_v44, %v548_v48 }
 0x223   : > { %v553_v51 = vsel %vm552_vm5, %v754_v44, %v549_v49 }
 0x224   : > { %v554_v53 = vmul.f32 %v553_v51, %v537_v38 }
 0x226   : > { %v559_v54 = vmul.f32 %v749_v50, %v554_v53 }
 0x228   : > { %v564_v56 = vadd.f32 %v750_v52, %v559_v54 }
 0x22a   : > { %vm565_vm6 = vcmp.ge.f32.partialorder %v564_v56, 0.0  ;;  %v572_v57 = vmul.f32 %v570_v55, %v564_v56 }
 0x22c   : > { %v573_v58 = vsel %vm565_vm6, %v564_v56, %v572_v57 }
 0x22d   : > { %574 = vst.msk [vmem:[%s347_s15] sm:$0xff] %vm525_vm1, %v573_v58 }
 0x22e PF: > { %s17_s28 = sadd.s32 1, %s793_s28   ;;  %s951_s24 = smov %s785_s26 }
 0x22f   : > { %p14_p9 = scmp.ge.s32.totalorder %s17_s28, 22   ;;  %s952_s25 = smov %s789_s27 }
 0x230   : > { %s953_s26 = smov %s956_s29  ;;  %s954_s27 = smov %s960_s30 }
 0x231   :  { %16 = sbr.rel (!%p14_p9) target bundleno = 3 (0x3), region = 86 }

// kernel: dptnet_forward.16
= control target key start
LH: loop header
LB: loop body
LE: loop exit
PB: predicated region body
PF: predicated region fallthrough
CT: control target
= control target key end

     0   :  { %s888_s24 = smov 0   ;;  %s890_s25 = smov 0   ;;  %s992_s0 = inlined_call_operand.vmem [shape: f32[2,12,16,18], index: 0, kind: input, shape index: {}, may-alias: {0,1}]   ;;  %s993_s1 = inlined_call_operand.vmem [shape: f32[2,12,16,18], index: 1, kind: input, shape index: {}, may-alias: {0,1}]   ;;  %s994_s2 = inlined_call_operand.vmem [shape: f32[2,3,8,16], index: 2, kind: input, shape index: {}]   ;;  %s995_s3 = inlined_call_operand.vmem [shape: f32[8,1], index: 3, kind: input, shape index: {}]   ;;  %s996_s4 = inlined_call_operand.vmem [shape: f32[1,16], index: 4, kind: input, shape index: {}]   ;;  %s997_s5 = inlined_call_operand.vmem [shape: f32[1,16], index: 5, kind: input, shape index: {}]   ;;  %s998_s6 = inlined_call_operand.vmem [shape: f32[8,1], index: 6, kind: input, shape index: {}]   ;;  %s999_s7 = inlined_call_operand.vmem [shape: f32[2,10,8,16], index: 7, kind: output, shape index: {}]  }
   0x1   :  { %s892_s26 = smov 0   ;;  %s894_s27 = smov 0  }
   0x2   :  { %s896_s28 = smov 0  }
   0x3 LB: > { %s26_s29 = sadd.s32 1, %s834_s26  ;;  %s29_s30 = sadd.s32 1, %s838_s27  ;;  %s842_s28 = sphi %s896_s28, %s17_s28   ;;  %s838_s27 = sphi %s894_s27, %s1003_s27   ;;  %s834_s26 = sphi %s892_s26, %s1002_s26   ;;  %s830_s25 = sphi %s890_s25, %s1001_s25   ;;  %s826_s24 = sphi %s888_s24, %s1000_s24  }
   0x4   : > { %p27_p0 = scmp.ge.s32.totalorder %s26_s29, 10  ;;  %p710_p1 = scmp.ge.s32.totalorder %s842_s28, 1 }
   0x5   : > { %p277_p2 = scmp.lt.s32.totalorder %s842_s28, 21 }
   0x6   : > { %s1005_s29 = smov (%p27_p0, %s26_s29), 0  ;;  %s1007_s30 = smov (!%p27_p0, %s29_s30), %s838_s27 }
   0x7   : > { %p278_p3 = pnand %p710_p1, %p277_p2  ;;  %p31_p4 = scmp.ge.s32.totalorder %s1007_s30, 2 }
   0x8   : > { %p326_p5 = scmp.lt.s32.totalorder (!%p278_p3), %s830_s25, 1  ;;  %p328_p6 = scmp.lt.s32.totalorder (!%p278_p3), %s826_s24, 11 }
   0x9   : > { %s1009_s30 = smov (%p31_p4, %s1007_s30), 0  ;;  %281 = sbr.rel (%p278_p3) target bundleno = 564 (0x234), region = 48 }
   0xa   : > { %s335_s8 = sadd.s32 (!%p278_p3), 2, %s826_s24  ;;  %s844_s18 = smov (!%p278_p3), 126  }
   0xb   : > { %p338_p7 = scmp.lt.s32.totalorder (!%p278_p3), %s335_s8, 11  ;;  %p348_p8 = scmp.lt.s32.totalorder (!%p278_p3), %s826_s24, 9 }
   0xe   : > { %s1011_s25 = smov (!%p326_p5, %s830_s25), 1  ;;  %s1013_s8 = smov (!%p338_p7, %s335_s8), 11  ;;  %vm369_vm0 = vcmask 130048   ;;  %v721_v6 = vld [vmem:[%s994_s2 + $0x18] sm:$0xff]  ;;  %v358_v7 = vld [vmem:[%s994_s2] sm:$0xff]  ;;  %v846_v9 = vmov 0  }
   0xf   : > { %s329_s9 = scalar_select %p328_p6, %s826_s24, 11  ;;  %v540_v8 = vld [vmem:[%s995_s3] sm:$0xff]  ;;  %795 = vset.pattern.permute.xlu2 %v846_v9  ;;  %796 = vset.pattern.permute.xlu1 %v846_v9  ;;  %v719_v13 = vld [vmem:[%s994_s2 + $0x10] sm:$0xff]  ;;  %v716_v18 = vld [vmem:[%s994_s2 + $0x8] sm:$0xff]  ;;  %v847_v40 = vmov 16.0  }
  0x10   : > { %s729_s10 = smul.u32 24, %s1011_s25  ;;  %s713_s17 = sshll.u32 %s1013_s8, 1  ;;  %543 = vperm.xlu2 %795, %v540_v8   ;;  %797 = vset.pattern.permute.xlu0 %v846_v9  ;;  %v725_v24 = vld [vmem:[%s994_s2 + $0x28] sm:$0xff]  ;;  %v723_v25 = vld [vmem:[%s994_s2 + $0x20] sm:$0xff]  ;;  %800 = vrcp.f32 %v847_v40 }
  0x11   : > { %s711_s11 = sshll.u32 %s329_s9, 1  ;;  %s845_s9 = smov 127   ;;  %v587_v41 = vld [vmem:[%s998_s6] sm:$0xff] }
  0x12   : > { %s332_s12 = sadd.s32 %s729_s10, %s711_s11  ;;  %s342_s19 = sadd.s32 %s729_s10, %s713_s17  ;;  %v798_v62 = vld [vmem:[%s996_s4] ss:$0 sm:$0xff] }
  0x13   : > { %s712_s13 = sshll.u32 %s332_s12, 3  ;;  %s714_s20 = sshll.u32 %s342_s19, 3 }
  0x14   : > { %s334_s16 = scalar_lea.vmem %s992_s0, %s712_s13  ;;  %s344_s23 = scalar_lea.vmem %s993_s1, %s714_s20 }
  0x15   : > { %v354_v0 = vld [vmem:[%s334_s16] sm:$0xff]  ;;  %v355_v1 = vld [vmem:[%s334_s16 + $0x8] sm:$0xff]  ;;  %s730_s8 = smul.u32 10, %s1011_s25  ;;  %s1015_s24 = smov (!%p348_p8, %s826_s24), 9 }
  0x16   : > { %v775_v2 = vpack.i.bf16 %v354_v0, %v355_v1  ;;  %410 = vmatpush.msra.mxu1 %v355_v1  ;;  %v356_v3 = vld [vmem:[%s344_s23] sm:$0xff]  ;;  %v357_v4 = vld [vmem:[%s344_s23 + $0x8] sm:$0xff]  ;;  %v801_v42 = vpop.eup %800 }
  0x17   : > { %v785_v5 = vpack.i.bf16 %v356_v3, %v357_v4  ;;  %467 = vmatpush.msra.mxu3 %v357_v4  ;;  %v551_v43 = vmul.f32 16.0, %v801_v42  ;;  %vm555_vm1 = vweird.f32 %v801_v42  ;;  %s351_s12 = sadd.s32 %s730_s8, %s1015_s24 }
  0x18   : > { %776 = vrot.lane.b32.xlu0 %v775_v2, %s844_s18  ;;  %411 = vmatpush.msra.mxu1 %v354_v0  ;;  %v799_v0 = vld [vmem:[%s997_s5] ss:$0 sm:$0xff]  ;;  %s715_s15 = sshll.u32 %s351_s12, 3 }
  0x19   : > { %786 = vrot.lane.b32.xlu1 %v785_v5, %s845_s9  ;;  %468 = vmatpush.msra.mxu3 %v356_v3  ;;  %v552_v44 = vsub.f32 1.0, %v551_v43  ;;  %s353_s17 = scalar_lea.vmem %s999_s7, %s715_s15 }
  0x1a   : > { %722 = vmatmul.msk.f32.vlgmr.msra.gmra.mxu3 %vm369_vm0, %v721_v6  ;;  %718 = vmatmul.msk.f32.vlgmr.msra.gmra.mxu1 %vm369_vm0, %v358_v7 }
  0x1b   : > { %v553_v45 = vmul.f32 %v801_v42, %v552_v44 }
  0x1d   : > { %v554_v46 = vadd.f32 %v801_v42, %v553_v45 }
  0x1f   : > { %v556_v47 = vsel %vm555_vm1, %v801_v42, %v554_v46 }
  0x20   : > { %781 = vrot.lane.b32.xlu0 %v775_v2, %s845_s9 }
  0x21   : > { %791 = vrot.lane.b32.xlu1 %v785_v5, %s844_s18 }
  0x29   : > { %590 = vperm.xlu1 %796, %v587_v41  }
  0x6a   : > { %v544_v36 = vpop.permute.xlu2 %543 }
  0x8a   : > { %v777_v10 = vpop.permute.xlu0 %776 }
  0x8b   : > { %v778_v11 = vunpack.i.l.bf16 %v777_v10  ;;  %v779_v12 = vunpack.i.h.bf16 %v777_v10  ;;  %v787_v14 = vpop.permute.xlu1 %786 }
  0x8c   : > { %v788_v19 = vunpack.i.l.bf16 %v787_v14  ;;  %v789_v22 = vunpack.i.h.bf16 %v787_v14 }
  0x8d   : > { %441 = vmatpush.msra.mxu2 %v778_v11 }
  0x8f   : > { %442 = vmatpush.msra.mxu2 %v779_v12 }
  0x90   : > { %720 = vmatmul.msk.f32.vlgmr.msra.gmra.mxu2 %vm369_vm0, %v719_v13 }
  0x92   : > { %v782_v15 = vpop.permute.xlu0 %781 }
  0x93   : > { %v783_v16 = vunpack.i.l.bf16 %v782_v15  ;;  %v784_v17 = vunpack.i.h.bf16 %v782_v15  ;;  %v792_v20 = vpop.permute.xlu1 %791 }
  0x94   : > { %v793_v21 = vunpack.i.l.bf16 %v792_v20  ;;  %v794_v23 = vunpack.i.h.bf16 %v792_v20 }
  0x95   : > { %387 = vmatpush.msra.mxu0 %v783_v16 }
  0x96   : > { %533 = vmatpush.msrb.mxu1 %v793_v21 }
  0x97   : > { %388 = vmatpush.msra.mxu0 %v784_v17  ;;  %v413_v26 = vpop.f32.mrf.mxu1 }
  0x98   : > { %717 = vmatmul.msk.f32.vlgmr.msra.gmra.mxu0 %vm369_vm0, %v716_v18  ;;  %534 = vmatpush.msrb.mxu1 %v794_v23 }
  0x99   : > { %501 = vmatpush.msrb.mxu0 %v788_v19  ;;  %726 = vmatmul.msk.f32.vlgmr.msrb.gmra.mxu1 %vm369_vm0, %v725_v24 }
  0x9b   : > { %502 = vmatpush.msrb.mxu0 %v789_v22  ;;  %v591_v3 = vpop.permute.xlu1 %590 }
  0x9d   : > { %v470_v31 = vpop.f32.mrf.mxu3 }
  0xa0   : > { %724 = vmatmul.msk.f32.vlgmr.msrb.gmra.mxu0 %vm369_vm0, %v723_v25 }
 0x113   : > { %v444_v28 = vpop.f32.mrf.mxu2 }
 0x115   : > { %v390_v27 = vpop.f32.mrf.mxu0 }
 0x116   : > { %v414_v29 = vadd.f32 %v413_v26, %v390_v27  ;;  %v536_v34 = vpop.f32.mrf.mxu1 }
 0x118   : > { %v447_v30 = vadd.f32 %v444_v28, %v414_v29 }
 0x11a   : > { %v473_v32 = vadd.f32 %v470_v31, %v447_v30 }
 0x11d   : > { %v504_v33 = vpop.f32.mrf.mxu0 }
 0x11e   : > { %v507_v35 = vadd.f32 %v504_v33, %v473_v32 }
 0x120   : > { %v539_v37 = vadd.f32 %v536_v34, %v507_v35 }
 0x122   : > { %v546_v38 = vadd.f32 %v544_v36, %v539_v37 }
 0x124   : > { %v547_v39 = vsel %vm369_vm0, %v546_v38, 0.0 }
 0x125   : > { %548 = vadd.xlane.f32.xlu2 %v547_v39 }
 0x198   : > { %v549_v48 = vpop.xlane.xlu2 %548 }
 0x199   : > { %v557_v49 = vmul.f32 %v556_v47, %v549_v48 }
 0x19b   : > { %v558_v50 = vsub.f32 %v546_v38, %v557_v49 }
 0x19d   : > { %v559_v51 = vmul.f32 %v558_v50, %v558_v50 }
 0x19f   : > { %v560_v52 = vsel %vm369_vm0, %v559_v51, 0.0 }
 0x1a0   : > { %561 = vadd.xlane.f32.xlu0 %v560_v52 }
 0x213   : > { %v562_v53 = vpop.xlane.xlu0 %561 }
 0x214   : > { %v563_v54 = vmul.f32 %v562_v53, %v556_v47 }
 0x216   : > { %v564_v55 = vadd.f32 1e-05, %v563_v54 }
 0x218   : > { %802 = vrsqrt.f32 %v564_v55  ;;  %vm571_vm3 = vweird.f32 %v564_v55 }
 0x21e   : > { %v803_v56 = vpop.eup %802 }
 0x21f   : > { %v566_v57 = vmul.f32 %v803_v56, %v564_v55  ;;  %vm572_vm2 = vweird.f32 %v803_v56 }
 0x220   : > { %vm573_vm4 = vmor %vm571_vm3, %vm572_vm2 }
 0x221   : > { %v567_v58 = vmul.f32 %v803_v56, %v566_v57 }
 0x223   : > { %v568_v59 = vmul.f32 0.5, %v567_v58 }
 0x225   : > { %v569_v60 = vsub.f32 1.5, %v568_v59 }
 0x227   : > { %v570_v61 = vmul.f32 %v803_v56, %v569_v60 }
 0x229   : > { %v574_v63 = vsel %vm573_vm4, %v803_v56, %v570_v61 }
 0x22a   : > { %v575_v1 = vmul.f32 %v574_v63, %v558_v50 }
 0x22c   : > { %v580_v2 = vmul.f32 %v798_v62, %v575_v1 }
 0x22e   : > { %v585_v4 = vadd.f32 %v799_v0, %v580_v2 }
 0x230   : > { %vm586_vm5 = vcmp.ge.f32.partialorder %v585_v4, 0.0  ;;  %v593_v5 = vmul.f32 %v591_v3, %v585_v4 }
 0x232   : > { %v594_v6 = vsel %vm586_vm5, %v585_v4, %v593_v5 }
 0x233   : > { %595 = vst.msk [vmem:[%s353_s17] sm:$0xff] %vm369_vm0, %v594_v6 }
 0x234 PF: > { %s17_s28 = sadd.s32 1, %s842_s28   ;;  %s1000_s24 = smov %s834_s26 }
 0x235   : > { %p14_p9 = scmp.ge.s32.totalorder %s17_s28, 22   ;;  %s1001_s25 = smov %s838_s27 }
 0x236   : > { %s1002_s26 = smov %s1005_s29  ;;  %s1003_s27 = smov %s1009_s30 }
 0x237   :  { %16 = sbr.rel (!%p14_p9) target bundleno = 3 (0x3), region = 86 }

// kernel: dptnet_forward.17
= control target key start
LH: loop header
LB: loop body
LE: loop exit
PB: predicated region body
PF: predicated region fallthrough
CT: control target
= control target key end

     0   :  { %s909_s24 = smov 0   ;;  %s911_s25 = smov 0   ;;  %s1013_s0 = inlined_call_operand.vmem [shape: f32[2,14,24,18], index: 0, kind: input, shape index: {}, may-alias: {0,1}]   ;;  %s1014_s1 = inlined_call_operand.vmem [shape: f32[2,14,24,18], index: 1, kind: input, shape index: {}, may-alias: {0,1}]   ;;  %s1015_s2 = inlined_call_operand.vmem [shape: f32[2,3,8,24], index: 2, kind: input, shape index: {}]   ;;  %s1016_s3 = inlined_call_operand.vmem [shape: f32[8,1], index: 3, kind: input, shape index: {}]   ;;  %s1017_s4 = inlined_call_operand.vmem [shape: f32[1,16], index: 4, kind: input, shape index: {}]   ;;  %s1018_s5 = inlined_call_operand.vmem [shape: f32[1,16], index: 5, kind: input, shape index: {}]   ;;  %s1019_s6 = inlined_call_operand.vmem [shape: f32[8,1], index: 6, kind: input, shape index: {}]   ;;  %s1020_s7 = inlined_call_operand.vmem [shape: f32[2,10,8,16], index: 7, kind: output, shape index: {}]  }
   0x1   :  { %s913_s26 = smov 0   ;;  %s915_s27 = smov 0  }
   0x2   :  { %s917_s28 = smov 0  }
   0x3 LB: > { %s26_s29 = sadd.s32 1, %s855_s26  ;;  %s29_s30 = sadd.s32 1, %s859_s27  ;;  %s863_s28 = sphi %s917_s28, %s17_s28   ;;  %s859_s27 = sphi %s915_s27, %s1024_s27   ;;  %s855_s26 = sphi %s913_s26, %s1023_s26   ;;  %s851_s25 = sphi %s911_s25, %s1022_s25   ;;  %s847_s24 = sphi %s909_s24, %s1021_s24  }
   0x4   : > { %p27_p0 = scmp.ge.s32.totalorder %s26_s29, 10  ;;  %p727_p1 = scmp.ge.s32.totalorder %s863_s28, 1 }
   0x5   : > { %p277_p2 = scmp.lt.s32.totalorder %s863_s28, 21 }
   0x6   : > { %s1026_s29 = smov (%p27_p0, %s26_s29), 0  ;;  %s1028_s30 = smov (!%p27_p0, %s29_s30), %s859_s27 }
   0x7   : > { %p278_p3 = pnand %p727_p1, %p277_p2  ;;  %p31_p4 = scmp.ge.s32.totalorder %s1028_s30, 2 }
   0x8   : > { %p326_p5 = scmp.lt.s32.totalorder (!%p278_p3), %s851_s25, 1  ;;  %p328_p6 = scmp.lt.s32.totalorder (!%p278_p3), %s847_s24, 13 }
   0x9   : > { %s1030_s30 = smov (%p31_p4, %s1028_s30), 0  ;;  %281 = sbr.rel (%p278_p3) target bundleno = 567 (0x237), region = 48 }
   0xa   : > { %s335_s11 = sadd.s32 (!%p278_p3), 4, %s847_s24  ;;  %s865_s17 = smov (!%p278_p3), 126  }
   0xb   : > { %p338_p7 = scmp.lt.s32.totalorder (!%p278_p3), %s335_s11, 13  ;;  %p348_p8 = scmp.lt.s32.totalorder (!%p278_p3), %s847_s24, 9 }
   0xe   : > { %s1032_s25 = smov (!%p326_p5, %s851_s25), 1  ;;  %s1034_s11 = smov (!%p338_p7, %s335_s11), 13  ;;  %vm375_vm0 = vcmask 195584   ;;  %v736_v10 = vld [vmem:[%s1015_s2 + $0x18] sm:$0xff]  ;;  %v360_v11 = vld [vmem:[%s1015_s2] sm:$0xff]  ;;  %v867_v15 = vmov 0  }
   0xf   : > { %s329_s8 = scalar_select %p328_p6, %s847_s24, 13  ;;  %v556_v13 = vld [vmem:[%s1016_s3] sm:$0xff]  ;;  %817 = vset.pattern.permute.xlu1 %v867_v15  ;;  %818 = vset.pattern.permute.xlu0 %v867_v15  ;;  %v734_v23 = vld [vmem:[%s1015_s2 + $0x10] sm:$0xff]  ;;  %v731_v29 = vld [vmem:[%s1015_s2 + $0x8] sm:$0xff]  ;;  %vm563_vm1 = vcmask 130048   ;;  %v868_v50 = vmov 16.0  }
  0x10   : > { %s745_s9 = smul.u32 42, %s1032_s25  ;;  %v604_v19 = vld [vmem:[%s1019_s6] sm:$0xff]  ;;  %v740_v31 = vld [vmem:[%s1015_s2 + $0x28] sm:$0xff]  ;;  %821 = vrcp.f32 %v868_v50  ;;  %s1036_s24 = smov (!%p348_p8, %s847_s24), 9 }
  0x11   : > { %s744_s10 = smul.u32 3, %s329_s8  ;;  %s866_s8 = smov 127   ;;  %v738_v35 = vld [vmem:[%s1015_s2 + $0x20] sm:$0xff] }
  0x12   : > { %s746_s18 = smul.u32 3, %s1034_s11 }
  0x13   : > { %s332_s12 = sadd.s32 %s745_s9, %s744_s10 }
  0x14   : > { %s728_s13 = sshll.u32 %s332_s12, 3  ;;  %s342_s19 = sadd.s32 %s746_s18, %s745_s9 }
  0x15   : > { %s334_s16 = scalar_lea.vmem %s1013_s0, %s728_s13  ;;  %s729_s20 = sshll.u32 %s342_s19, 3 }
  0x16   : > { %v355_v0 = vld [vmem:[%s334_s16 + $0x8] sm:$0xff]  ;;  %v356_v1 = vld [vmem:[%s334_s16 + $0x10] sm:$0xff]  ;;  %v354_v2 = vld [vmem:[%s334_s16] sm:$0xff]  ;;  %s344_s23 = scalar_lea.vmem %s1014_s1, %s729_s20  ;;  %v822_v51 = vpop.eup %821  ;;  %s747_s9 = smul.u32 10, %s1032_s25 }
  0x17   : > { %v792_v3 = vpack.i.bf16 %v355_v0, %v356_v1  ;;  %424 = vrot.lane.b32.xlu1 %v354_v2, %s865_s17  ;;  %415 = vmatpush.msra.mxu1 %v356_v1  ;;  %v359_v4 = vld [vmem:[%s344_s23 + $0x10] sm:$0xff]  ;;  %v357_v5 = vld [vmem:[%s344_s23] sm:$0xff]  ;;  %v358_v6 = vld [vmem:[%s344_s23 + $0x8] sm:$0xff]  ;;  %v568_v52 = vmul.f32 16.0, %v822_v51  ;;  %vm572_vm2 = vweird.f32 %v822_v51 }
  0x18   : > { %v802_v7 = vpack.i.bf16 %v359_v4, %v354_v2  ;;  %v807_v8 = vpack.i.bf16 %v357_v5, %v358_v6  ;;  %475 = vmatpush.msra.mxu3 %v359_v4  ;;  %v812_v9 = vpack.i.bf16 %v358_v6, %v359_v4  ;;  %s351_s12 = sadd.s32 %s747_s9, %s1036_s24 }
  0x19   : > { %793 = vrot.lane.b32.xlu0 %v792_v3, %s865_s17  ;;  %416 = vmatpush.msra.mxu1 %v355_v0  ;;  %v569_v53 = vsub.f32 1.0, %v568_v52  ;;  %s730_s15 = sshll.u32 %s351_s12, 3 }
  0x1a   : > { %808 = vrot.lane.b32.xlu2 %v807_v8, %s866_s8  ;;  %476 = vmatpush.msra.mxu3 %v358_v6 }
  0x1b   : > { %417 = vmatpush.msra.mxu1 %v354_v2  ;;  %v570_v54 = vmul.f32 %v822_v51, %v569_v53 }
  0x1c   : > { %477 = vmatpush.msra.mxu3 %v357_v5  ;;  %733 = vmatmul.msk.f32.vlgmr.msra.gmra.mxu1 %vm375_vm0, %v360_v11 }
  0x1d   : > { %737 = vmatmul.msk.f32.vlgmr.msra.gmra.mxu3 %vm375_vm0, %v736_v10  ;;  %v571_v55 = vadd.f32 %v822_v51, %v570_v54 }
  0x1f   : > { %803 = vrot.lane.b32.xlu1 %v802_v7, %s866_s8  ;;  %v573_v56 = vsel %vm572_vm2, %v822_v51, %v571_v55  ;;  %v819_v7 = vld [vmem:[%s1017_s4] ss:$0 sm:$0xff] }
  0x21   : > { %798 = vrot.lane.b32.xlu0 %v792_v3, %s866_s8 }
  0x22   : > { %813 = vrot.lane.b32.xlu2 %v812_v9, %s865_s17  ;;  %v820_v9 = vld [vmem:[%s1018_s5] ss:$0 sm:$0xff] }
  0x27   : > { %559 = vperm.xlu1 %817, %v556_v13  }
  0x29   : > { %523 = vrot.lane.b32.xlu0 %v357_v5, %s865_s17  ;;  %s353_s17 = scalar_lea.vmem %s1020_s7, %s730_s15 }
  0x2f   : > { %607 = vperm.xlu1 %817, %v604_v19  }
  0x74   : > { %v809_v12 = vpop.permute.xlu2 %808 }
  0x75   : > { %v810_v33 = vunpack.i.l.bf16 %v809_v12  ;;  %v811_v34 = vunpack.i.h.bf16 %v809_v12 }
  0x7c   : > { %v814_v14 = vpop.permute.xlu2 %813 }
  0x7d   : > { %v815_v16 = vunpack.i.l.bf16 %v814_v14  ;;  %v816_v17 = vunpack.i.h.bf16 %v814_v14 }
  0x7f   : > { %548 = vmatpush.msrb.mxu1 %v815_v16 }
  0x81   : > { %549 = vmatpush.msrb.mxu1 %v816_v17 }
  0x89   : > { %v425_v18 = vpop.permute.xlu1 %424 }
  0x8b   : > { %v794_v20 = vpop.permute.xlu0 %793 }
  0x8c   : > { %v795_v21 = vunpack.i.l.bf16 %v794_v20  ;;  %v796_v22 = vunpack.i.h.bf16 %v794_v20 }
  0x8e   : > { %449 = vmatpush.msra.mxu2 %v795_v21 }
  0x90   : > { %450 = vmatpush.msra.mxu2 %v796_v22 }
  0x91   : > { %v804_v26 = vpop.permute.xlu1 %803 }
  0x92   : > { %451 = vmatpush.msra.mxu2 %v425_v18  ;;  %v805_v28 = vunpack.i.l.bf16 %v804_v26  ;;  %v806_v30 = vunpack.i.h.bf16 %v804_v26 }
  0x93   : > { %v799_v24 = vpop.permute.xlu0 %798  ;;  %735 = vmatmul.msk.f32.vlgmr.msra.gmra.mxu2 %vm375_vm0, %v734_v23 }
  0x94   : > { %v800_v25 = vunpack.i.l.bf16 %v799_v24  ;;  %v801_v27 = vunpack.i.h.bf16 %v799_v24 }
  0x96   : > { %392 = vmatpush.msra.mxu0 %v800_v25 }
  0x98   : > { %393 = vmatpush.msra.mxu0 %v801_v27 }
  0x99   : > { %v419_v36 = vpop.f32.mrf.mxu1  ;;  %v560_v47 = vpop.permute.xlu1 %559 }
  0x9a   : > { %394 = vmatpush.msra.mxu0 %v805_v28 }
  0x9b   : > { %732 = vmatmul.msk.f32.vlgmr.msra.gmra.mxu0 %vm375_vm0, %v731_v29  ;;  %v524_v32 = vpop.permute.xlu0 %523 }
  0x9c   : > { %513 = vmatpush.msrb.mxu0 %v806_v30  ;;  %550 = vmatpush.msrb.mxu1 %v524_v32 }
  0x9d   : > { %741 = vmatmul.msk.f32.vlgmr.msrb.gmra.mxu1 %vm375_vm0, %v740_v31 }
  0x9e   : > { %514 = vmatpush.msrb.mxu0 %v810_v33 }
  0xa0   : > { %515 = vmatpush.msrb.mxu0 %v811_v34  ;;  %v479_v41 = vpop.f32.mrf.mxu3 }
  0xa1   : > { %v608_v13 = vpop.permute.xlu1 %607 }
  0xa3   : > { %739 = vmatmul.msk.f32.vlgmr.msrb.gmra.mxu0 %vm375_vm0, %v738_v35 }
 0x116   : > { %v453_v38 = vpop.f32.mrf.mxu2 }
 0x118   : > { %v396_v37 = vpop.f32.mrf.mxu0 }
 0x119   : > { %v420_v39 = vadd.f32 %v419_v36, %v396_v37 }
 0x11a   : > { %v552_v44 = vpop.f32.mrf.mxu1 }
 0x11b   : > { %v456_v40 = vadd.f32 %v453_v38, %v420_v39 }
 0x11d   : > { %v482_v42 = vadd.f32 %v479_v41, %v456_v40 }
 0x120   : > { %v517_v43 = vpop.f32.mrf.mxu0 }
 0x121   : > { %v520_v45 = vadd.f32 %v517_v43, %v482_v42 }
 0x123   : > { %v555_v46 = vadd.f32 %v552_v44, %v520_v45 }
 0x125   : > { %v562_v48 = vadd.f32 %v560_v47, %v555_v46 }
 0x127   : > { %v564_v49 = vsel %vm563_vm1, %v562_v48, 0.0 }
 0x128   : > { %565 = vadd.xlane.f32.xlu2 %v564_v49 }
 0x19b   : > { %v566_v57 = vpop.xlane.xlu2 %565 }
 0x19c   : > { %v574_v58 = vmul.f32 %v573_v56, %v566_v57 }
 0x19e   : > { %v575_v59 = vsub.f32 %v562_v48, %v574_v58 }
 0x1a0   : > { %v576_v60 = vmul.f32 %v575_v59, %v575_v59 }
 0x1a2   : > { %v577_v61 = vsel %vm563_vm1, %v576_v60, 0.0 }
 0x1a3   : > { %578 = vadd.xlane.f32.xlu0 %v577_v61 }
 0x216   : > { %v579_v62 = vpop.xlane.xlu0 %578 }
 0x217   : > { %v580_v63 = vmul.f32 %v579_v62, %v573_v56 }
 0x219   : > { %v581_v0 = vadd.f32 1e-05, %v580_v63 }
 0x21b   : > { %823 = vrsqrt.f32 %v581_v0  ;;  %vm588_vm4 = vweird.f32 %v581_v0 }
 0x221   : > { %v824_v1 = vpop.eup %823 }
 0x222   : > { %v583_v2 = vmul.f32 %v824_v1, %v581_v0  ;;  %vm589_vm3 = vweird.f32 %v824_v1 }
 0x223   : > { %vm590_vm5 = vmor %vm588_vm4, %vm589_vm3 }
 0x224   : > { %v584_v3 = vmul.f32 %v824_v1, %v583_v2 }
 0x226   : > { %v585_v4 = vmul.f32 0.5, %v584_v3 }
 0x228   : > { %v586_v5 = vsub.f32 1.5, %v585_v4 }
 0x22a   : > { %v587_v6 = vmul.f32 %v824_v1, %v586_v5 }
 0x22c   : > { %v591_v8 = vsel %vm590_vm5, %v824_v1, %v587_v6 }
 0x22d   : > { %v592_v10 = vmul.f32 %v591_v8, %v575_v59 }
 0x22f   : > { %v597_v11 = vmul.f32 %v819_v7, %v592_v10 }
 0x231   : > { %v602_v12 = vadd.f32 %v820_v9, %v597_v11 }
 0x233   : > { %vm603_vm6 = vcmp.ge.f32.partialorder %v602_v12, 0.0  ;;  %v610_v14 = vmul.f32 %v608_v13, %v602_v12 }
 0x235   : > { %v611_v15 = vsel %vm603_vm6, %v602_v12, %v610_v14 }
 0x236   : > { %612 = vst.msk [vmem:[%s353_s17] sm:$0xff] %vm563_vm1, %v611_v15 }
 0x237 PF: > { %s17_s28 = sadd.s32 1, %s863_s28   ;;  %s1021_s24 = smov %s855_s26 }
 0x238   : > { %p14_p9 = scmp.ge.s32.totalorder %s17_s28, 22   ;;  %s1022_s25 = smov %s859_s27 }
 0x239   : > { %s1023_s26 = smov %s1026_s29  ;;  %s1024_s27 = smov %s1030_s30 }
 0x23a   :  { %16 = sbr.rel (!%p14_p9) target bundleno = 3 (0x3), region = 86 }

// kernel: dptnet_forward.22
= control target key start
LH: loop header
LB: loop body
LE: loop exit
PB: predicated region body
PF: predicated region fallthrough
CT: control target
= control target key end

     0   :  { %s955_s24 = smov 0   ;;  %s957_s25 = smov 0   ;;  %s1085_s0 = inlined_call_operand.vmem [shape: f32[2,10,8,16], index: 0, kind: input, shape index: {}]   ;;  %s1086_s1 = inlined_call_operand.vmem [shape: f32[1,8,1], index: 1, kind: input, shape index: {}]   ;;  %s1087_s2 = inlined_call_operand.vmem [shape: f32[1,8,1], index: 2, kind: input, shape index: {}]   ;;  %s1088_s3 = inlined_call_operand.vmem [shape: f32[2,1], index: 3, kind: input, shape index: {}]   ;;  %s1089_s4 = inlined_call_operand.vmem [shape: f32[2,10,16], index: 4, kind: input, shape index: {}]   ;;  %s1090_s5 = inlined_call_operand.vmem [shape: f32[2,10,16], index: 5, kind: input, shape index: {}]   ;;  %s1091_s6 = inlined_call_operand.vmem [shape: f32[2,10,16], index: 6, kind: output, shape index: {0}]   ;;  %s1092_s7 = inlined_call_operand.vmem [shape: f32[2,10,16], index: 7, kind: output, shape index: {1}]  }
   0x1   :  { %s959_s26 = smov 0   ;;  %s961_s27 = smov 0  }
   0x2   :  { %s963_s28 = smov 0  }
   0x3 LB: > { %s27_s29 = sadd.s32 1, %s904_s26  ;;  %s30_s30 = sadd.s32 1, %s908_s27  ;;  %s912_s28 = sphi %s963_s28, %s18_s28   ;;  %s908_s27 = sphi %s961_s27, %s1096_s27   ;;  %s904_s26 = sphi %s959_s26, %s1095_s26   ;;  %s900_s25 = sphi %s957_s25, %s1094_s25   ;;  %s896_s24 = sphi %s955_s24, %s1093_s24  }
   0x4   : > { %p28_p0 = scmp.ge.s32.totalorder %s27_s29, 2  ;;  %p814_p1 = scmp.ge.s32.totalorder %s912_s28, 1 }
   0x5   : > { %p301_p2 = scmp.lt.s32.totalorder %s912_s28, 5 }
   0x6   : > { %s1098_s29 = smov (%p28_p0, %s27_s29), 0  ;;  %s1100_s30 = smov (!%p28_p0, %s30_s30), %s908_s27 }
   0x7   : > { %p302_p3 = pnand %p814_p1, %p301_p2  ;;  %p32_p4 = scmp.ge.s32.totalorder %s1100_s30, 2 }
   0x8   : > { %s815_s14 = sshll.u32 (!%p302_p3), %s896_s24, 3  ;;  %p373_p5 = scmp.lt.s32.totalorder (!%p302_p3), %s900_s25, 1 }
   0x9   : > { %s1102_s30 = smov (%p32_p4, %s1100_s30), 0  ;;  %305 = sbr.rel (%p302_p3) target bundleno = 180 (0xb4), region = 44 }
   0xa   : > { %p375_p6 = scmp.lt.s32.totalorder (!%p302_p3), %s815_s14, 9  ;;  %p388_p7 = scmp.lt.s32.totalorder (!%p302_p3), %s896_s24, 1 }
   0xe   : > { %v427_v0 = vld [vmem:[%s1086_s1] sm:$0xff]  ;;  %v914_v2 = vmov 0   ;;  %s1104_s25 = smov (!%p373_p5, %s900_s25), 1  ;;  %s1106_s14 = smov (!%p375_p6, %s815_s14), 9  ;;  %vm441_vm0 = vcmask 130048   ;;  %vm602_vm1 = vcmask 1041409  }
   0xf   : > { %v426_v1 = vld [vmem:[%s1088_s3] sm:$0x3]  ;;  %873 = vset.pattern.permute.xlu0 %v914_v2  ;;  %s827_s15 = smul.u32 10, %s1104_s25  ;;  %vm604_vm2 = vcmask 1042434   ;;  %vm606_vm3 = vcmask 1043459   ;;  %vm608_vm4 = vcmask 1044484  }
  0x10   : > { %828 = vpush %v426_v1  ;;  %v580_v3 = vrot.slane %v426_v1, 1  ;;  %430 = vperm.xlu0 %873, %v427_v0   ;;  %v510_v4 = vld [vmem:[%s1087_s2] sm:$0xff]  ;;  %vm610_vm5 = vcmask 1045509   ;;  %s1108_s24 = smov (!%p388_p7, %s896_s24), 1  ;;  %s817_s22 = sshll.u32 %s1104_s25, 1  ;;  %vm612_vm6 = vcmask 1046534  }
  0x11   : > { %s378_s16 = sadd.s32 %s827_s15, %s1106_s14  ;;  %s391_s8 = sadd.s32 %s817_s22, %s1108_s24  ;;  %vm614_vm7 = vcmask 1047559  }
  0x12   : > { %830 = vpush %v580_v3  ;;  %s816_s17 = sshll.u32 %s378_s16, 3  ;;  %s1040_s25 = sshll.u32 %s391_s8, 3 }
  0x13   : > { %s380_s20 = scalar_lea.vmem %s1085_s0, %s816_s17  ;;  %s393_s10 = scalar_lea.vmem %s1089_s4, %s1040_s25 }
  0x14   : > { %v418_v5 = vld [vmem:[%s380_s20] sm:$0xff]  ;;  %v419_v6 = vld [vmem:[%s380_s20 + $0x8] sm:$0xff]  ;;  %v420_v7 = vld [vmem:[%s380_s20 + $0x10] sm:$0xff]  ;;  %s401_s13 = scalar_lea.vmem %s1090_s5, %s1040_s25  ;;  %s409_s16 = scalar_lea.vmem %s1091_s6, %s1040_s25 }
  0x15   : > { %v421_v8 = vld [vmem:[%s380_s20 + $0x18] sm:$0xff]  ;;  %v422_v9 = vld [vmem:[%s380_s20 + $0x20] sm:$0xff]  ;;  %v423_v10 = vld [vmem:[%s380_s20 + $0x28] sm:$0xff]  ;;  %s417_s19 = scalar_lea.vmem %s1092_s7, %s1040_s25 }
  0x16   : > { %v424_v11 = vld [vmem:[%s380_s20 + $0x30] sm:$0xff]  ;;  %v425_v12 = vld [vmem:[%s380_s20 + $0x38] sm:$0xff] }
  0x18   : > { %513 = vperm.xlu0 %873, %v510_v4  }
  0x41   : > { %s829_s21 = spop %828 }
  0x42   : > { %v1011_v34 = vstv %s829_s21 }
  0x43   : > { %s831_s23 = spop %830 }
  0x82   : > { %v431_v13 = vpop.permute.xlu0 %430 }
  0x83   : > { %v433_v14 = vmul.f32 %v431_v13, %v418_v5  ;;  %v434_v15 = vmul.f32 %v431_v13, %v419_v6  ;;  %v435_v16 = vmul.f32 %v431_v13, %v420_v7  ;;  %v436_v17 = vmul.f32 %v431_v13, %v421_v8 }
  0x84   : > { %v437_v18 = vmul.f32 %v431_v13, %v422_v9  ;;  %v438_v19 = vmul.f32 %v431_v13, %v423_v10  ;;  %v439_v20 = vmul.f32 %v431_v13, %v424_v11  ;;  %v440_v21 = vmul.f32 %v431_v13, %v425_v12 }
  0x85   : > { %v442_v22 = vsel %vm441_vm0, %v433_v14, 0.0  ;;  %v449_v23 = vsel %vm441_vm0, %v434_v15, 0.0  ;;  %v456_v24 = vsel %vm441_vm0, %v435_v16, 0.0  ;;  %v463_v25 = vsel %vm441_vm0, %v436_v17, 0.0 }
  0x86   : > { %v443_v26 = vrot.slane %v442_v22, 4  ;;  %v450_v27 = vrot.slane %v449_v23, 4  ;;  %v457_v28 = vrot.slane %v456_v24, 4  ;;  %v464_v29 = vrot.slane %v463_v25, 4 }
  0x87   : > { %v470_v30 = vsel %vm441_vm0, %v437_v18, 0.0  ;;  %v477_v31 = vsel %vm441_vm0, %v438_v19, 0.0  ;;  %v484_v32 = vsel %vm441_vm0, %v439_v20, 0.0  ;;  %v491_v33 = vsel %vm441_vm0, %v440_v21, 0.0 }
  0x88   : > { %v444_v36 = vadd.f32 %v443_v26, %v442_v22  ;;  %v451_v37 = vadd.f32 %v450_v27, %v449_v23  ;;  %v458_v38 = vadd.f32 %v457_v28, %v456_v24  ;;  %v465_v39 = vadd.f32 %v464_v29, %v463_v25 }
  0x89   : > { %v471_v40 = vrot.slane %v470_v30, 4  ;;  %v478_v41 = vrot.slane %v477_v31, 4  ;;  %v485_v42 = vrot.slane %v484_v32, 4  ;;  %v492_v43 = vrot.slane %v491_v33, 4 }
  0x8a   : > { %v514_v35 = vpop.permute.xlu0 %513  ;;  %v445_v59 = vrot.slane %v444_v36, 2  ;;  %v452_v62 = vrot.slane %v451_v37, 2  ;;  %v459_v63 = vrot.slane %v458_v38, 2  ;;  %v466_v3 = vrot.slane %v465_v39, 2 }
  0x8b   : > { %v516_v44 = vmul.f32 %v514_v35, %v418_v5  ;;  %v517_v45 = vmul.f32 %v514_v35, %v419_v6  ;;  %v518_v46 = vmul.f32 %v514_v35, %v420_v7  ;;  %v519_v47 = vmul.f32 %v514_v35, %v421_v8 }
  0x8c   : > { %v520_v48 = vmul.f32 %v514_v35, %v422_v9  ;;  %v521_v49 = vmul.f32 %v514_v35, %v423_v10  ;;  %v522_v50 = vmul.f32 %v514_v35, %v424_v11  ;;  %v523_v51 = vmul.f32 %v514_v35, %v425_v12 }
  0x8d   : > { %v524_v52 = vsel %vm441_vm0, %v516_v44, 0.0  ;;  %v531_v53 = vsel %vm441_vm0, %v517_v45, 0.0  ;;  %v538_v54 = vsel %vm441_vm0, %v518_v46, 0.0  ;;  %v545_v55 = vsel %vm441_vm0, %v519_v47, 0.0 }
  0x8e   : > { %v525_v56 = vrot.slane %v524_v52, 4  ;;  %v532_v57 = vrot.slane %v531_v53, 4  ;;  %v539_v58 = vrot.slane %v538_v54, 4  ;;  %v546_v60 = vrot.slane %v545_v55, 4 }
  0x8f   : > { %v552_v61 = vsel %vm441_vm0, %v520_v48, 0.0  ;;  %v559_v0 = vsel %vm441_vm0, %v521_v49, 0.0  ;;  %v566_v1 = vsel %vm441_vm0, %v522_v50, 0.0  ;;  %v573_v2 = vsel %vm441_vm0, %v523_v51, 0.0 }
  0x90   : > { %v526_v4 = vadd.f32 %v525_v56, %v524_v52  ;;  %v533_v5 = vadd.f32 %v532_v57, %v531_v53  ;;  %v540_v6 = vadd.f32 %v539_v58, %v538_v54  ;;  %v553_v7 = vrot.slane %v552_v61, 4 }
  0x91   : > { %v472_v8 = vadd.f32 %v471_v40, %v470_v30  ;;  %v479_v9 = vadd.f32 %v478_v41, %v477_v31  ;;  %v486_v10 = vadd.f32 %v485_v42, %v484_v32  ;;  %v493_v11 = vadd.f32 %v492_v43, %v491_v33 }
  0x92   : > { %v1021_v12 = vadd.f32 %v546_v60, %v545_v55  ;;  %v560_v13 = vrot.slane %v559_v0, 4  ;;  %v567_v14 = vrot.slane %v566_v1, 4  ;;  %v574_v15 = vrot.slane %v573_v2, 4 }
  0x93   : > { %v446_v16 = vadd.f32 %v445_v59, %v444_v36  ;;  %v453_v17 = vadd.f32 %v452_v62, %v451_v37  ;;  %v460_v18 = vadd.f32 %v459_v63, %v458_v38  ;;  %v467_v19 = vadd.f32 %v466_v3, %v465_v39 }
  0x94   : > { %v527_v20 = vrot.slane %v526_v4, 2  ;;  %v534_v21 = vrot.slane %v533_v5, 2  ;;  %v541_v22 = vrot.slane %v540_v6, 2  ;;  %v554_v23 = vadd.f32 %v553_v7, %v552_v61 }
  0x95   : > { %v447_v24 = vrot.slane %v446_v16, 1  ;;  %v454_v25 = vrot.slane %v453_v17, 1  ;;  %v461_v26 = vrot.slane %v460_v18, 1  ;;  %v468_v27 = vrot.slane %v467_v19, 1 }
  0x96   : > { %v473_v28 = vrot.slane %v472_v8, 2  ;;  %v480_v29 = vrot.slane %v479_v9, 2  ;;  %v487_v30 = vrot.slane %v486_v10, 2  ;;  %v494_v31 = vrot.slane %v493_v11, 2 }
  0x97   : > { %v561_v32 = vadd.f32 %v560_v13, %v559_v0  ;;  %v448_v33 = vadd.f32 %v447_v24, %v446_v16  ;;  %v455_v35 = vadd.f32 %v454_v25, %v453_v17  ;;  %v462_v36 = vadd.f32 %v461_v26, %v460_v18 }
  0x98   : > { %v568_v37 = vadd.f32 %v567_v14, %v566_v1  ;;  %v474_v38 = vadd.f32 %v473_v28, %v472_v8  ;;  %v481_v39 = vadd.f32 %v480_v29, %v479_v9  ;;  %v488_v40 = vadd.f32 %v487_v30, %v486_v10 }
  0x99   : > { %v548_v41 = vrot.slane %v1021_v12, 2  ;;  %v502_v42 = vadd.f32 %v1011_v34, %v448_v33  ;;  %v503_v43 = vadd.f32 %v1011_v34, %v455_v35  ;;  %v504_v44 = vadd.f32 %v1011_v34, %v462_v36 }
  0x9a   : > { %v575_v45 = vadd.f32 %v574_v15, %v573_v2  ;;  %v469_v46 = vadd.f32 %v468_v27, %v467_v19  ;;  %v475_v47 = vrot.slane %v474_v38, 1  ;;  %v495_v48 = vadd.f32 %v494_v31, %v493_v11 }
  0x9b   : > { %v482_v49 = vrot.slane %v481_v39, 1  ;;  %v489_v50 = vrot.slane %v488_v40, 1  ;;  %v603_v51 = vsel %vm602_vm1, %v503_v43, %v502_v42  ;;  %v528_v52 = vadd.f32 %v527_v20, %v526_v4 }
  0x9c   : > { %v555_v53 = vrot.slane %v554_v23, 2  ;;  %v562_v54 = vrot.slane %v561_v32, 2  ;;  %v569_v55 = vrot.slane %v568_v37, 2  ;;  %v476_v56 = vadd.f32 %v475_v47, %v474_v38 }
  0x9d   : > { %v605_v57 = vsel %vm604_vm2, %v504_v44, %v603_v51  ;;  %v529_v58 = vrot.slane %v528_v52, 1  ;;  %v535_v59 = vadd.f32 %v534_v21, %v533_v5  ;;  %v542_v60 = vadd.f32 %v541_v22, %v540_v6  ;;  %v592_v44 = vld [vmem:[%s393_s10] sm:$0xff] }
  0x9e   : > { %v576_v61 = vrot.slane %v575_v45, 2  ;;  %v496_v62 = vrot.slane %v495_v48, 1  ;;  %v505_v63 = vadd.f32 %v1011_v34, %v469_v46  ;;  %v483_v0 = vadd.f32 %v482_v49, %v481_v39 }
  0x9f   : > { %v490_v1 = vadd.f32 %v489_v50, %v488_v40  ;;  %v536_v2 = vrot.slane %v535_v59, 1  ;;  %v543_v3 = vrot.slane %v542_v60, 1  ;;  %v549_v7 = vadd.f32 %v548_v41, %v1021_v12 }
  0xa0   : > { %v607_v4 = vsel %vm606_vm3, %v505_v63, %v605_v57  ;;  %v556_v8 = vadd.f32 %v555_v53, %v554_v23  ;;  %v563_v9 = vadd.f32 %v562_v54, %v561_v32  ;;  %v506_v5 = vadd.f32 %v1011_v34, %v476_v56 }
  0xa1   : > { %v530_v6 = vadd.f32 %v529_v58, %v528_v52  ;;  %v537_v10 = vadd.f32 %v536_v2, %v535_v59  ;;  %v570_v11 = vadd.f32 %v569_v55, %v568_v37  ;;  %v544_v13 = vadd.f32 %v543_v3, %v542_v60 }
  0xa2   : > { %v550_v14 = vrot.slane %v549_v7, 1  ;;  %v557_v15 = vrot.slane %v556_v8, 1  ;;  %v564_v16 = vrot.slane %v563_v9, 1  ;;  %v609_v17 = vsel %vm608_vm4, %v506_v5, %v607_v4 }
  0xa3   : > { %v571_v18 = vrot.slane %v570_v11, 1  ;;  %v577_v19 = vadd.f32 %v576_v61, %v575_v45  ;;  %v582_v20 = vstv %s831_s23  ;;  %v507_v12 = vadd.f32 %v1011_v34, %v483_v0  ;;  %v593_v45 = vld [vmem:[%s401_s13] sm:$0xff] }
  0xa4   : > { %v551_v21 = vadd.f32 %v550_v14, %v549_v7  ;;  %v497_v22 = vadd.f32 %v496_v62, %v495_v48  ;;  %v558_v23 = vadd.f32 %v557_v15, %v556_v8  ;;  %v584_v25 = vadd.f32 %v582_v20, %v530_v6 }
  0xa5   : > { %v578_v24 = vrot.slane %v577_v19, 1  ;;  %v611_v26 = vsel %vm610_vm5, %v507_v12, %v609_v17  ;;  %v565_v27 = vadd.f32 %v564_v16, %v563_v9  ;;  %v585_v28 = vadd.f32 %v582_v20, %v537_v10 }
  0xa6   : > { %v586_v29 = vadd.f32 %v582_v20, %v544_v13  ;;  %v508_v30 = vadd.f32 %v1011_v34, %v490_v1  ;;  %v572_v31 = vadd.f32 %v571_v18, %v570_v11  ;;  %v587_v33 = vadd.f32 %v582_v20, %v551_v21 }
  0xa7   : > { %v579_v32 = vadd.f32 %v578_v24, %v577_v19  ;;  %v626_v35 = vsel %vm602_vm1, %v585_v28, %v584_v25  ;;  %v588_v37 = vadd.f32 %v582_v20, %v558_v23  ;;  %v509_v39 = vadd.f32 %v1011_v34, %v497_v22 }
  0xa8   : > { %v613_v36 = vsel %vm612_vm6, %v508_v30, %v611_v26  ;;  %v627_v38 = vsel %vm604_vm2, %v586_v29, %v626_v35  ;;  %v589_v40 = vadd.f32 %v582_v20, %v565_v27  ;;  %v590_v42 = vadd.f32 %v582_v20, %v572_v31 }
  0xa9   : > { %v628_v41 = vsel %vm606_vm3, %v587_v33, %v627_v38  ;;  %v615_v46 = vsel %vm614_vm7, %v509_v39, %v613_v36  ;;  %v591_v47 = vadd.f32 %v582_v20, %v579_v32 }
  0xaa   : > { %v629_v43 = vsel %vm608_vm4, %v588_v37, %v628_v41  ;;  %v617_v51 = vmul.f32 %v615_v46, %v592_v44  ;;  %v638_v52 = vmul.f32 %v615_v46, %v593_v45 }
  0xab   : > { %v630_v48 = vsel %vm610_vm5, %v589_v40, %v629_v43 }
  0xac   : > { %v631_v49 = vsel %vm612_vm6, %v590_v42, %v630_v48 }
  0xad   : > { %v632_v50 = vsel %vm614_vm7, %v591_v47, %v631_v49 }
  0xae   : > { %v634_v34 = vmul.f32 %v632_v50, %v593_v45  ;;  %v637_v53 = vmul.f32 %v632_v50, %v592_v44 }
  0xb0   : > { %v635_v54 = vsub.f32 %v617_v51, %v634_v34  ;;  %v639_v55 = vadd.f32 %v638_v52, %v637_v53 }
  0xb2   : > { %636 = vst.msk [vmem:[%s409_s16] sm:$0xff] %vm441_vm0, %v635_v54 }
  0xb3   : > { %640 = vst.msk [vmem:[%s417_s19] sm:$0xff] %vm441_vm0, %v639_v55 }
  0xb4 PF: > { %s18_s28 = sadd.s32 1, %s912_s28   ;;  %s1093_s24 = smov %s904_s26 }
  0xb5   : > { %p15_p8 = scmp.ge.s32.totalorder %s18_s28, 6   ;;  %s1094_s25 = smov %s908_s27 }
  0xb6   : > { %s1095_s26 = smov %s1098_s29  ;;  %s1096_s27 = smov %s1102_s30 }
  0xb7   :  { %17 = sbr.rel (!%p15_p8) target bundleno = 3 (0x3), region = 92 }

// kernel: dptnet_forward.18
= control target key start
LH: loop header
LB: loop body
LE: loop exit
PB: predicated region body
PF: predicated region fallthrough
CT: control target
= control target key end

     0   :  { %s1268_s12 = smov 0   ;;  %s1270_s13 = smov 0   ;;  %s1566_s0 = inlined_call_operand.vmem [shape: f32[2,10,8,16], index: 0, kind: input, shape index: {}]   ;;  %s1567_s1 = inlined_call_operand.vmem [shape: f32[16,8], index: 1, kind: input, shape index: {}]   ;;  %s1568_s2 = inlined_call_operand.vmem [shape: f32[16,1], index: 2, kind: input, shape index: {}]   ;;  %s1569_s3 = inlined_call_operand.vmem [shape: f32[2,10,8,16], index: 3, kind: output, shape index: {}]  }
   0x1   :  { %s1272_s14 = smov 0   ;;  %s1274_s15 = smov 0  }
   0x2   :  { %s1276_s16 = smov 0   ;;  %s1278_s17 = smov 0  }
   0x3   :  { %s1280_s18 = smov 0  }
   0x4 LB: > { %s22_s19 = sadd.s32 1, %s1205_s16  ;;  %s25_s20 = sadd.s32 1, %s1209_s17  ;;  %s1213_s18 = sphi %s1280_s18, %s13_s18   ;;  %s1209_s17 = sphi %s1278_s17, %s1584_s17   ;;  %s1205_s16 = sphi %s1276_s16, %s1583_s16   ;;  %s1201_s15 = sphi %s1274_s15, %s1582_s15   ;;  %s1197_s14 = sphi %s1272_s14, %s1581_s14   ;;  %s1193_s13 = sphi %s1270_s13, %s1580_s13   ;;  %s1189_s12 = sphi %s1268_s12, %s1579_s12  }
   0x5   : > { %p23_p0 = scmp.ge.s32.totalorder %s22_s19, 2  ;;  %s890_s21 = sadd.s32 4294967295, %s1213_s18  }
   0x6   : > { %p114_p1 = scmp.ne.s32.totalorder %s1193_s13, %s1189_s12  ;;  %p115_p2 = scmp.eq.s32.totalorder %s890_s21, 3 }
   0x7   : > { %s1586_s19 = smov (%p23_p0, %s22_s19), 0  ;;  %s1588_s20 = smov (!%p23_p0, %s25_s20), %s1209_s17 }
   0x8   : > { %s100_s22 = ssub.s32 %s1205_s16, %s1586_s19  ;;  %p27_p3 = scmp.ge.s32.totalorder %s1588_s20, 2 }
   0x9   : > { %p894_p4 = scmp.ge.s32.totalorder %s1213_s18, 1  ;;  %p1312_p5 = por %p115_p2, %p114_p1 }
   0xa   : > { %p166_p6 = scmp.lt.s32.totalorder %s1213_s18, 5  ;;  %s1590_s20 = smov (%p27_p3, %s1588_s20), 0 }
   0xb   : > { %s99_s24 = ssub.s32 %s1209_s17, %s1590_s20  ;;  %s104_s26 = sadd.s32 1, %s1193_s13 }
   0xc   : > { %p167_p7 = pnand %p894_p4, %p166_p6  ;;  %s101_s25 = sor.u32 %s100_s22, %s99_s24 }
   0xd   : > { %p102_p8 = scmp.eq.s32.totalorder %s101_s25, 0  ;;  %s1325_s28 = sshll.u32 (!%p167_p7), %s1197_s14, 3 }
   0xe   : > { %170 = sbr.rel (%p167_p7) target bundleno = 263 (0x107), region = 32  ;;  %p202_p9 = scmp.lt.s32.totalorder (!%p167_p7), %s1201_s15, 1 }
   0xf   : > { %s1323_s27 = scalar_select %p102_p8, %s1193_s13, %s104_s26  }
  0x10   : > { %p204_p10 = scmp.lt.s32.totalorder (!%p167_p7), %s1325_s28, 9  ;;  %s194_s29 = sand.u32 (!%p167_p7), 1, %s1189_s12  }
  0x11   : > { %s1411_s12 = sshll.u32 (!%p167_p7), %s194_s29, 6 }
  0x12   : > { %s1434_s30 = scalar_lea.vmem (!%p167_p7), [#allocation2], %s1411_s12  }
  0x13   : > { %v1247_v0 = vmov 0   ;;  %v223_v1 = vld [vmem:[%s1568_s2 + $0x8] sm:$0xff]  ;;  %s203_s4 = scalar_select %p202_p9, %s1201_s15, 1  ;;  %v220_v2 = vld [vmem:[%s1567_s1] sm:$0xff]  ;;  %vm235_vm0 = vcmask 64512   ;;  %vm286_vm2 = vcmask 130048  }
  0x14   : > { %1078 = vset.pattern.permute.xlu0 %v1247_v0  ;;  %s205_s5 = scalar_select %p204_p10, %s1325_s28, 9  ;;  %v222_v11 = vld [vmem:[%s1568_s2] sm:$0xff]  ;;  %v221_v12 = vld [vmem:[%s1567_s1 + $0x8] sm:$0xff] }
  0x15   : > { %232 = vperm.xlu0 %1078, %v223_v1   ;;  %s955_s6 = smul.u32 10, %s203_s4  ;;  %s632_s4 = ssub.s32 (%p1312_p5), 10, %s1325_s28 }
  0x16   : > { %p633_p11 = scmp.lt.s32.totalorder (%p1312_p5), %s632_s4, 8 }
  0x17   : > { %s207_s7 = sadd.s32 %s955_s6, %s205_s5  ;;  %s956_s5 = smul.u32 (%p1312_p5), 10, %s1201_s15 }
  0x18   : > { %s897_s8 = sshll.u32 %s207_s7, 3 }
  0x19   : > { %s209_s11 = scalar_lea.vmem %s1566_s0, %s897_s8  ;;  %s638_s6 = sadd.s32 (%p1312_p5), %s956_s5, %s1325_s28 }
  0x1a   : > { %v224_v3 = vld [vmem:[%s209_s11] sm:$0xff]  ;;  %v901_v4 = vld [vmem:[%s209_s11 + $0x8] sm:$0xff]  ;;  %v906_v5 = vld [vmem:[%s209_s11 + $0x10] sm:$0xff]  ;;  %s940_s7 = sshll.u32 (%p1312_p5), %s638_s6, 3 }
  0x1b   : > { %257 = vmatpush.msra.mxu0 %v224_v3  ;;  %305 = vmatpush.msra.mxu1 %v901_v4  ;;  %v911_v6 = vld [vmem:[%s209_s11 + $0x18] sm:$0xff]  ;;  %v926_v7 = vld [vmem:[%s209_s11 + $0x30] sm:$0xff]  ;;  %v916_v9 = vld [vmem:[%s209_s11 + $0x20] sm:$0xff] }
  0x1c   : > { %353 = vmatpush.msra.mxu2 %v906_v5  ;;  %401 = vmatpush.msra.mxu3 %v911_v6  ;;  %v931_v8 = vld [vmem:[%s209_s11 + $0x38] sm:$0xff]  ;;  %v921_v10 = vld [vmem:[%s209_s11 + $0x28] sm:$0xff]  ;;  %s1504_s11 = scalar_lea.vmem (%p1312_p5), %s1569_s3, %s940_s7  }
  0x1d   : > { %898 = vmatmul.msk.f32.vlgmr.msra.gmra.mxu0 %vm235_vm0, %v220_v2  ;;  %902 = vmatmul.msk.f32.vlgmr.msra.gmra.mxu1 %vm235_vm0, %v220_v2 }
  0x1e   : > { %907 = vmatmul.msk.f32.vlgmr.msra.gmra.mxu2 %vm235_vm0, %v220_v2  ;;  %912 = vmatmul.msk.f32.vlgmr.msra.gmra.mxu3 %vm235_vm0, %v220_v2 }
  0x1f   : > { %545 = vmatpush.msrb.mxu2 %v926_v7  ;;  %593 = vmatpush.msrb.mxu3 %v931_v8 }
  0x20   : > { %449 = vmatpush.msrb.mxu0 %v916_v9  ;;  %497 = vmatpush.msrb.mxu1 %v921_v10 }
  0x21   : > { %227 = vperm.xlu0 %1078, %v222_v11  }
  0x25   : > { %899 = vmatmul.msk.f32.gmra.mxu0 %vm235_vm0, %v221_v12  ;;  %903 = vmatmul.msk.f32.gmra.mxu1 %vm235_vm0, %v221_v12 }
  0x26   : > { %908 = vmatmul.msk.f32.gmra.mxu2 %vm235_vm0, %v221_v12  ;;  %913 = vmatmul.msk.f32.gmra.mxu3 %vm235_vm0, %v221_v12 }
  0x2d   : > { %917 = vmatmul.msk.f32.vlgmr.msrb.gmra.mxu0 %vm235_vm0, %v220_v2  ;;  %922 = vmatmul.msk.f32.vlgmr.msrb.gmra.mxu1 %vm235_vm0, %v220_v2 }
  0x2e   : > { %927 = vmatmul.msk.f32.vlgmr.msrb.gmra.mxu2 %vm235_vm0, %v220_v2  ;;  %932 = vmatmul.msk.f32.vlgmr.msrb.gmra.mxu3 %vm235_vm0, %v220_v2 }
  0x35   : > { %918 = vmatmul.msk.f32.gmra.mxu0 %vm235_vm0, %v221_v12  ;;  %923 = vmatmul.msk.f32.gmra.mxu1 %vm235_vm0, %v221_v12 }
  0x36   : > { %928 = vmatmul.msk.f32.gmra.mxu2 %vm235_vm0, %v221_v12  ;;  %933 = vmatmul.msk.f32.gmra.mxu3 %vm235_vm0, %v221_v12 }
  0x87   : > { %v1362_v15 = vpop.permute.xlu0 %232 }
  0x93   : > { %v1372_v33 = vpop.permute.xlu0 %227 }
  0x9a   : > { %v259_v13 = vpop.f32.mrf.mxu0  ;;  %v307_v14 = vpop.f32.mrf.mxu1 }
  0x9b   : > { %v260_v37 = vadd.f32 %v259_v13, %v1372_v33  ;;  %v308_v38 = vadd.f32 %v307_v14, %v1372_v33 }
  0xa1   : > { %v355_v16 = vpop.f32.mrf.mxu2  ;;  %v403_v17 = vpop.f32.mrf.mxu3 }
  0xa2   : > { %v262_v18 = vpop.f32.mrf.mxu0  ;;  %v310_v19 = vpop.f32.mrf.mxu1  ;;  %v356_v41 = vadd.f32 %v355_v16, %v1372_v33  ;;  %v404_v46 = vadd.f32 %v403_v17, %v1372_v33 }
  0xa3   : > { %v263_v20 = vadd.f32 %v262_v18, %v1362_v15  ;;  %v311_v21 = vadd.f32 %v310_v19, %v1362_v15 }
  0xa5   : > { %v900_v22 = vmul.f32 -1.442695, %v263_v20  ;;  %v904_v23 = vmul.f32 -1.442695, %v311_v21 }
  0xa7   : > { %1079 = vpow2.f32 %v900_v22 }
  0xa8   : > { %1081 = vpow2.f32 %v904_v23 }
  0xa9   : > { %v358_v24 = vpop.f32.mrf.mxu2  ;;  %v406_v25 = vpop.f32.mrf.mxu3 }
  0xaa   : > { %v359_v26 = vadd.f32 %v358_v24, %v1362_v15  ;;  %v407_v27 = vadd.f32 %v406_v25, %v1362_v15  ;;  %v1368_v28 = vpop.f32.mrf.mxu0  ;;  %v1370_v29 = vpop.f32.mrf.mxu1 }
  0xac   : > { %v909_v30 = vmul.f32 -1.442695, %v359_v26  ;;  %v914_v31 = vmul.f32 -1.442695, %v407_v27 }
  0xad   : > { %v1080_v32 = vpop.eup %1079 }
  0xae   : > { %v1082_v34 = vpop.eup %1081  ;;  %v1374_v35 = vadd.f32 1.0, %v1080_v32  ;;  %1083 = vpow2.f32 %v909_v30 }
  0xaf   : > { %v1376_v36 = vadd.f32 1.0, %v1082_v34  ;;  %1085 = vpow2.f32 %v914_v31 }
  0xb0   : > { %1087 = vrcp.f32 %v1374_v35  ;;  %v279_v51 = vand.u32 2147483647, %v1374_v35  ;;  %vm275_vm1 = vweird.f32 %v1374_v35  ;;  %v281_v59 = vand.u32 2147483648, %v1374_v35 }
  0xb1   : > { %1089 = vrcp.f32 %v1376_v36  ;;  %v1382_v39 = vpop.f32.mrf.mxu2  ;;  %v1384_v40 = vpop.f32.mrf.mxu3  ;;  %v327_v60 = vand.u32 2147483647, %v1376_v36  ;;  %vm323_vm4 = vweird.f32 %v1376_v36  ;;  %v329_v2 = vand.u32 2147483648, %v1376_v36 }
  0xb2   : > { %v454_v42 = vpop.f32.mrf.mxu0  ;;  %v502_v43 = vpop.f32.mrf.mxu1  ;;  %1091 = vtanh.f32 %v260_v37  ;;  %vm1403_vm3 = vcmp.eq.f32.partialorder %v279_v51, 8.507059e+37  ;;  %v282_v11 = vor.u32 1.1754944e-38, %v281_v59  ;;  %v500_v59 = vadd.f32 %v1370_v29, %v1372_v33 }
  0xb3   : > { %v455_v44 = vadd.f32 %v454_v42, %v1362_v15  ;;  %v503_v47 = vadd.f32 %v502_v43, %v1362_v15  ;;  %1093 = vtanh.f32 %v308_v38  ;;  %vm1413_vm7 = vcmp.eq.f32.partialorder %v327_v60, 8.507059e+37 }
  0xb4   : > { %v1084_v45 = vpop.eup %1083  ;;  %1095 = vtanh.f32 %v356_v41  ;;  %v330_v17 = vor.u32 1.1754944e-38, %v329_v2 }
  0xb5   : > { %v1086_v48 = vpop.eup %1085  ;;  %v1390_v49 = vadd.f32 1.0, %v1084_v45  ;;  %v919_v55 = vmul.f32 -1.442695, %v455_v44  ;;  %v924_v57 = vmul.f32 -1.442695, %v503_v47 }
  0xb6   : > { %v1088_v50 = vpop.eup %1087  ;;  %v1393_v52 = vadd.f32 1.0, %v1086_v48 }
  0xb7   : > { %v1090_v53 = vpop.eup %1089  ;;  %v271_v54 = vmul.f32 %v1088_v50, %v1374_v35  ;;  %1097 = vrcp.f32 %v1390_v49  ;;  %vm276_vm5 = vweird.f32 %v1088_v50  ;;  %v375_v21 = vand.u32 2147483647, %v1390_v49 }
  0xb8   : > { %1099 = vtanh.f32 %v404_v46  ;;  %v319_v56 = vmul.f32 %v1090_v53, %v1376_v36  ;;  %v1092_v63 = vpop.eup %1091  ;;  %vm324_vm6 = vweird.f32 %v1090_v53  ;;  %vm277_vm8 = vmor %vm275_vm1, %vm276_vm5  ;;  %v377_v22 = vand.u32 2147483648, %v1390_v49 }
  0xb9   : > { %v272_v58 = vsub.f32 1.0, %v271_v54  ;;  %1101 = vrcp.f32 %v1393_v52  ;;  %v550_v61 = vpop.f32.mrf.mxu2  ;;  %v598_v62 = vpop.f32.mrf.mxu3  ;;  %vm325_vm9 = vmor %vm323_vm4, %vm324_vm6  ;;  %vm371_vm11 = vweird.f32 %v1390_v49  ;;  %v423_v38 = vand.u32 2147483647, %v1393_v52 }
  0xba   : > { %v320_v1 = vsub.f32 1.0, %v319_v56  ;;  %v1094_v3 = vpop.eup %1093  ;;  %1103 = vpow2.f32 %v919_v55  ;;  %v551_v5 = vadd.f32 %v550_v61, %v1362_v15  ;;  %v599_v8 = vadd.f32 %v598_v62, %v1362_v15 }
  0xbb   : > { %v273_v4 = vmul.f32 %v1088_v50, %v272_v58  ;;  %v1096_v6 = vpop.eup %1095  ;;  %1105 = vpow2.f32 %v924_v57  ;;  %v425_v41 = vand.u32 2147483648, %v1393_v52  ;;  %v378_v46 = vor.u32 1.1754944e-38, %v377_v22 }
  0xbc   : > { %v321_v7 = vmul.f32 %v1090_v53, %v320_v1  ;;  %v929_v13 = vmul.f32 -1.442695, %v551_v5  ;;  %v934_v15 = vmul.f32 -1.442695, %v599_v8  ;;  %vm376_vm14 = vcmp.eq.f32.partialorder %v375_v21, 8.507059e+37 }
  0xbd   : > { %v1098_v9 = vpop.eup %1097  ;;  %v274_v10 = vadd.f32 %v1088_v50, %v273_v4  ;;  %vm419_vm15 = vweird.f32 %v1393_v52  ;;  %v426_v51 = vor.u32 1.1754944e-38, %v425_v41  ;;  %vm424_vm1 = vcmp.eq.f32.partialorder %v423_v38, 8.507059e+37 }
  0xbe   : > { %v1100_v14 = vpop.eup %1099  ;;  %v322_v16 = vadd.f32 %v1090_v53, %v321_v7  ;;  %v367_v18 = vmul.f32 %v1098_v9, %v1390_v49  ;;  %1107 = vpow2.f32 %v929_v13  ;;  %vm372_vm10 = vweird.f32 %v1098_v9 }
  0xbf   : > { %v1102_v19 = vpop.eup %1101  ;;  %v278_v20 = vsel %vm277_vm8, %v1088_v50, %v274_v10  ;;  %1109 = vpow2.f32 %v934_v15  ;;  %vm373_vm13 = vmor %vm371_vm11, %vm372_vm10 }
  0xc0   : > { %v283_v23 = vsel %vm1403_vm3, %v282_v11, %v278_v20  ;;  %v326_v24 = vsel %vm325_vm9, %v1090_v53, %v322_v16  ;;  %v368_v25 = vsub.f32 1.0, %v367_v18  ;;  %v415_v26 = vmul.f32 %v1102_v19, %v1393_v52  ;;  %v1104_v27 = vpop.eup %1103 }
  0xc1   : > { %v285_v30 = vmul.f32 %v1092_v63, %v283_v23  ;;  %v331_v31 = vsel %vm1413_vm7, %v330_v17, %v326_v24  ;;  %v1106_v32 = vpop.eup %1105  ;;  %v1431_v37 = vadd.f32 1.0, %v1104_v27  ;;  %vm420_vm12 = vweird.f32 %v1102_v19 }
  0xc2   : > { %v333_v34 = vmul.f32 %v1094_v3, %v331_v31  ;;  %v369_v35 = vmul.f32 %v1098_v9, %v368_v25  ;;  %v416_v36 = vsub.f32 1.0, %v415_v26  ;;  %v1441_v42 = vadd.f32 1.0, %v1106_v32  ;;  %vm421_vm0 = vmor %vm419_vm15, %vm420_vm12 }
  0xc3   : > { %287 = vst.msk [vmem:[%s1434_s30] sm:$0xff] %vm286_vm2, %v285_v30  ;;  %1111 = vrcp.f32 %v1431_v37  ;;  %v452_v53 = vadd.f32 %v1368_v28, %v1372_v33  ;;  %v548_v63 = vadd.f32 %v1382_v39, %v1372_v33  ;;  %v471_v1 = vand.u32 2147483647, %v1431_v37 }
  0xc4   : > { %905 = vst.msk [vmem:[%s1434_s30 + $0x8] sm:$0xff] %vm286_vm2, %v333_v34  ;;  %v370_v43 = vadd.f32 %v1098_v9, %v369_v35  ;;  %v417_v44 = vmul.f32 %v1102_v19, %v416_v36  ;;  %v1108_v45 = vpop.eup %1107  ;;  %1113 = vrcp.f32 %v1441_v42  ;;  %v473_v29 = vand.u32 2147483648, %v1431_v37 }
  0xc5   : > { %v1110_v49 = vpop.eup %1109  ;;  %v1451_v54 = vadd.f32 1.0, %v1108_v45  ;;  %v519_v3 = vand.u32 2147483647, %v1441_v42  ;;  %v521_v4 = vand.u32 2147483648, %v1441_v42  ;;  %vm467_vm3 = vweird.f32 %v1431_v37 }
  0xc6   : > { %v374_v47 = vsel %vm373_vm13, %v1098_v9, %v370_v43  ;;  %v418_v48 = vadd.f32 %v1102_v19, %v417_v44  ;;  %v1458_v60 = vadd.f32 1.0, %v1110_v49  ;;  %vm515_vm5 = vweird.f32 %v1441_v42 }
  0xc7   : > { %v379_v50 = vsel %vm376_vm14, %v378_v46, %v374_v47  ;;  %1115 = vrcp.f32 %v1451_v54  ;;  %vm472_vm7 = vcmp.eq.f32.partialorder %v471_v1, 8.507059e+37  ;;  %v474_v11 = vor.u32 1.1754944e-38, %v473_v29 }
  0xc8   : > { %v381_v55 = vmul.f32 %v1096_v6, %v379_v50  ;;  %v422_v56 = vsel %vm421_vm0, %v1102_v19, %v418_v48  ;;  %1117 = vtanh.f32 %v452_v53  ;;  %v596_v6 = vadd.f32 %v1384_v40, %v1372_v33 }
  0xc9   : > { %v427_v57 = vsel %vm424_vm1, %v426_v51, %v422_v56  ;;  %v1112_v58 = vpop.eup %1111  ;;  %1119 = vrcp.f32 %v1458_v60  ;;  %vm520_vm9 = vcmp.eq.f32.partialorder %v519_v3, 8.507059e+37  ;;  %v522_v33 = vor.u32 1.1754944e-38, %v521_v4 }
  0xca   : > { %910 = vst.msk [vmem:[%s1434_s30 + $0x10] sm:$0xff] %vm286_vm2, %v381_v55  ;;  %v429_v52 = vmul.f32 %v1100_v14, %v427_v57  ;;  %v1114_v61 = vpop.eup %1113  ;;  %v463_v28 = vmul.f32 %v1112_v58, %v1431_v37  ;;  %1121 = vtanh.f32 %v500_v59  ;;  %vm468_vm4 = vweird.f32 %v1112_v58 }
  0xcb   : > { %v511_v62 = vmul.f32 %v1114_v61, %v1441_v42  ;;  %vm516_vm6 = vweird.f32 %v1114_v61  ;;  %1123 = vtanh.f32 %v548_v63  ;;  %vm469_vm8 = vmor %vm467_vm3, %vm468_vm4  ;;  %v567_v16 = vand.u32 2147483647, %v1451_v54 }
  0xcc   : > { %915 = vst.msk [vmem:[%s1434_s30 + $0x18] sm:$0xff] %vm286_vm2, %v429_v52  ;;  %v464_v0 = vsub.f32 1.0, %v463_v28  ;;  %vm517_vm10 = vmor %vm515_vm5, %vm516_vm6  ;;  %v569_v17 = vand.u32 2147483648, %v1451_v54  ;;  %1125 = vtanh.f32 %v596_v6  ;;  %vm563_vm12 = vweird.f32 %v1451_v54 }
  0xcd   : > { %v512_v2 = vsub.f32 1.0, %v511_v62  ;;  %v1116_v5 = vpop.eup %1115  ;;  %v617_v27 = vand.u32 2147483648, %v1458_v60  ;;  %v615_v34 = vand.u32 2147483647, %v1458_v60  ;;  %vm568_vm15 = vcmp.eq.f32.partialorder %v567_v16, 8.507059e+37 }
  0xce   : > { %v465_v7 = vmul.f32 %v1112_v58, %v464_v0  ;;  %v559_v8 = vmul.f32 %v1116_v5, %v1451_v54  ;;  %v1118_v9 = vpop.eup %1117  ;;  %vm564_vm11 = vweird.f32 %v1116_v5  ;;  %v570_v31 = vor.u32 1.1754944e-38, %v569_v17 }
  0xcf   : > { %v513_v39 = vmul.f32 %v1114_v61, %v512_v2  ;;  %v1120_v12 = vpop.eup %1119  ;;  %vm565_vm13 = vmor %vm563_vm12, %vm564_vm11  ;;  %vm611_vm0 = vweird.f32 %v1458_v60  ;;  %v618_v41 = vor.u32 1.1754944e-38, %v617_v27  ;;  %vm616_vm3 = vcmp.eq.f32.partialorder %v615_v34, 8.507059e+37 }
  0xd0   : > { %v466_v10 = vadd.f32 %v1112_v58, %v465_v7  ;;  %v560_v40 = vsub.f32 1.0, %v559_v8  ;;  %v607_v18 = vmul.f32 %v1120_v12, %v1458_v60  ;;  %v1122_v15 = vpop.eup %1121  ;;  %vm612_vm14 = vweird.f32 %v1120_v12 }
  0xd1   : > { %v514_v13 = vadd.f32 %v1114_v61, %v513_v39  ;;  %v1124_v30 = vpop.eup %1123  ;;  %vm613_vm1 = vmor %vm611_vm0, %vm612_vm14 }
  0xd2   : > { %v470_v14 = vsel %vm469_vm8, %v1112_v58, %v466_v10  ;;  %v561_v21 = vmul.f32 %v1116_v5, %v560_v40  ;;  %v608_v24 = vsub.f32 1.0, %v607_v18  ;;  %v1126_v42 = vpop.eup %1125 }
  0xd3   : > { %v475_v19 = vsel %vm472_vm7, %v474_v11, %v470_v14  ;;  %v518_v20 = vsel %vm517_vm10, %v1114_v61, %v514_v13 }
  0xd4   : > { %v477_v22 = vmul.f32 %v1118_v9, %v475_v19  ;;  %v523_v23 = vsel %vm520_vm9, %v522_v33, %v518_v20  ;;  %v562_v26 = vadd.f32 %v1116_v5, %v561_v21  ;;  %v609_v32 = vmul.f32 %v1120_v12, %v608_v24 }
  0xd5   : > { %v525_v25 = vmul.f32 %v1122_v15, %v523_v23 }
  0xd6   : > { %920 = vst.msk [vmem:[%s1434_s30 + $0x20] sm:$0xff] %vm286_vm2, %v477_v22  ;;  %v566_v35 = vsel %vm565_vm13, %v1116_v5, %v562_v26  ;;  %v610_v37 = vadd.f32 %v1120_v12, %v609_v32 }
  0xd7   : > { %925 = vst.msk [vmem:[%s1434_s30 + $0x28] sm:$0xff] %vm286_vm2, %v525_v25  ;;  %v571_v36 = vsel %vm568_vm15, %v570_v31, %v566_v35 }
  0xd8   : > { %v573_v38 = vmul.f32 %v1124_v30, %v571_v36  ;;  %v614_v43 = vsel %vm613_vm1, %v1120_v12, %v610_v37  ;;  %630 = sbr.rel (!%p1312_p5) target bundleno = 263 (0x107), region = 36 }
  0xd9   : > { %v619_v44 = vsel %vm616_vm3, %v618_v41, %v614_v43 }
  0xda   : > { %930 = vst.msk [vmem:[%s1434_s30 + $0x30] sm:$0xff] %vm286_vm2, %v573_v38  ;;  %v621_v45 = vmul.f32 %v1126_v42, %v619_v44 }
  0xdc   : > { %935 = vst.msk [vmem:[%s1434_s30 + $0x38] sm:$0xff] %vm286_vm2, %v621_v45 }
  0xdd   : > { %s1592_s4 = smov (!%p633_p11, %s632_s4), 8 }
  0xde   : > { %s938_s8 = sshll.u32 %s1592_s4, 3 }
  0xdf   : > { %p941_p12 = scmp.eq.s32.totalorder %s938_s8, 0 }
  0xe0   : > { %s1507_s23 = sshrl.u32 (!%p941_p12), %s1592_s4, 3 }
  0xe1   : > { %643 = sbr.rel (%p941_p12) target bundleno = 263 (0x107), region = 40  ;;  %p942_p13 = scmp.le.s32.totalorder (!%p941_p12), %s1507_s23, 0 }
  0xe6   : > { %835 = sbr.rel (%p942_p13) target bundleno = 246 (0xf6), region = 130  ;;  %s1575_s15 = smov (!%p942_p13), %s1504_s11 }
  0xe7   : > { %s1576_s28 = smov (!%p942_p13), %s1434_s30  ;;  %s1516_s14 = smov (!%p942_p13), 0  }
  0xe8   : > { %s1518_s21 = smov (!%p942_p13), 0  }
  0xeb LB: >> { %v720_v46 = vld [vmem:[%s1221_s28] sm:$0xff]  ;;  %v722_v47 = vld [vmem:[%s1221_s28 + $0x8] sm:$0xff]  ;;  %v724_v48 = vld [vmem:[%s1221_s28 + $0x10] sm:$0xff]  ;;  %s736_s22 = sadd.s32 1, %s1225_s14  ;;  %s714_s21 = sadd.s32 1, %s1229_s21   ;;  %s1229_s21 = sphi %s1518_s21, %s714_s21   ;;  %s1225_s14 = sphi %s1516_s14, %s1578_s14   ;;  %s1221_s28 = sphi %s1576_s28, %s741_s28   ;;  %s1217_s15 = sphi %s1575_s15, %s1577_s15  }
  0xec   : >> { %721 = vst [vmem:[%s1217_s15] sm:$0xff] %v720_v46  ;;  %v726_v49 = vld [vmem:[%s1221_s28 + $0x18] sm:$0xff]  ;;  %p737_p0 = scmp.ge.s32.totalorder %s736_s22, %s1507_s23  ;;  %v728_v50 = vld [vmem:[%s1221_s28 + $0x20] sm:$0xff]  ;;  %v730_v51 = vld [vmem:[%s1221_s28 + $0x28] sm:$0xff]  ;;  %p713_p1 = scmp.ge.s32.totalorder %s714_s21, %s1507_s23 }
  0xed   : >> { %723 = vst [vmem:[%s1217_s15 + $0x8] sm:$0xff] %v722_v47  ;;  %v732_v53 = vld [vmem:[%s1221_s28 + $0x30] sm:$0xff]  ;;  %v734_v54 = vld [vmem:[%s1221_s28 + $0x38] sm:$0xff] }
  0xee   : >> { %725 = vst [vmem:[%s1217_s15 + $0x10] sm:$0xff] %v724_v48  ;;  %s1594_s22 = smov (%p737_p0, %s736_s22), 0 }
  0xef   : >> { %727 = vst [vmem:[%s1217_s15 + $0x18] sm:$0xff] %v726_v49  ;;  %s943_s24 = sshll.u32 %s1594_s22, 6  ;;  %s1578_s14 = smov %s1594_s22 }
  0xf0   : >> { %729 = vst [vmem:[%s1217_s15 + $0x20] sm:$0xff] %v728_v50  ;;  %s741_s28 = scalar_lea.vmem %s1434_s30, %s943_s24 [#allocation2]   ;;  %s742_s25 = scalar_lea.vmem %s1504_s11, %s943_s24  }
  0xf1   : >> { %731 = vst [vmem:[%s1217_s15 + $0x28] sm:$0xff] %v730_v51  ;;  %716 = sbr.rel (!%p713_p1) target bundleno = 235 (0xeb), region = 136 }
  0xf2   : >> { %733 = vst [vmem:[%s1217_s15 + $0x30] sm:$0xff] %v732_v53 }
  0xf3   : >> { %735 = vst [vmem:[%s1217_s15 + $0x38] sm:$0xff] %v734_v54  ;;  %s1577_s15 = smov %s742_s25 }
  0xf6 PF: > { %s1537_s26 = sand.u32 7, %s1592_s4   ;;  %s953_s29 = sshll.u32 %s1507_s23, 6 }
  0xf7   : > { %s747_s12 = scalar_lea.vmem %s1434_s30, %s953_s29 [#allocation2]   ;;  %s749_s5 = scalar_lea.vmem %s1504_s11, %s953_s29  }
  0xf8   : > { %p948_p2 = scmp.le.s32.totalorder %s1537_s26, 0 }
  0xf9   : > { %s1231_s6 = smov (!%p948_p2), %s749_s5   ;;  %s1235_s7 = smov (!%p948_p2), %s747_s12  }
  0xfa   : > { %849 = sbr.rel (%p948_p2) target bundleno = 263 (0x107), region = 141  ;;  %s1239_s8 = smov (!%p948_p2), 0  }
  0xfb   : > { %s1243_s9 = smov (!%p948_p2), 0  }
  0xff LB: >> { %v759_v55 = vld [vmem:[%s1237_s7] sm:$0xff]  ;;  %s761_s4 = sadd.s32 1, %s1241_s8  ;;  %s753_s9 = sadd.s32 1, %s1245_s9   ;;  %s1245_s9 = sphi %s1243_s9, %s753_s9   ;;  %s1241_s8 = sphi %s1239_s8, %s1240_s8   ;;  %s1237_s7 = sphi %s1235_s7, %s766_s7   ;;  %s1233_s6 = sphi %s1231_s6, %s767_s6  }
 0x100   : >> { %760 = vst [vmem:[%s1233_s6] sm:$0xff] %v759_v55  ;;  %p762_p3 = scmp.ge.s32.totalorder %s761_s4, %s1537_s26  ;;  %p752_p4 = scmp.ge.s32.totalorder %s753_s9, %s1537_s26 }
 0x102   : >> { %s1596_s4 = smov (%p762_p3, %s761_s4), 0  ;;  %755 = sbr.rel (!%p752_p4) target bundleno = 255 (0xff), region = 147 }
 0x103   : >> { %s949_s30 = sshll.u32 %s1596_s4, 3  ;;  %s1240_s8 = smov %s1596_s4  }
 0x104   : >> { %s766_s7 = scalar_lea.vmem %s747_s12, %s949_s30 [#allocation2]   ;;  %s767_s6 = scalar_lea.vmem %s749_s5, %s949_s30  }
 0x107 PF: > { %s13_s18 = sadd.s32 1, %s1213_s18   ;;  %s1579_s12 = smov %s1193_s13 }
 0x108   : > { %p10_p5 = scmp.ge.s32.totalorder %s13_s18, 6   ;;  %s1580_s13 = smov %s1323_s27 }
 0x109   : > { %s1581_s14 = smov %s1205_s16  ;;  %s1582_s15 = smov %s1209_s17 }
 0x10a   : > { %s1583_s16 = smov %s1586_s19  ;;  %s1584_s17 = smov %s1590_s20 }
 0x10b   :  { %12 = sbr.rel (!%p10_p5) target bundleno = 4 (0x4), region = 158 }

// kernel: dptnet_forward.23
= control target key start
LH: loop header
LB: loop body
LE: loop exit
PB: predicated region body
PF: predicated region fallthrough
CT: control target
= control target key end

     0   :  { %vm29_vm0 = vcmask 1041408   ;;  %vm19_vm1 = vcmask 277504   ;;  %vm59_vm2 = vcmask 261120   ;;  %s129_s1 = inlined_call_operand.vmem [shape: f32[34,32], index: 1, kind: input, shape index: {}]   ;;  %s130_s0 = inlined_call_operand.vmem [shape: f32[20,34], index: 0, kind: input, shape index: {}]   ;;  %s131_s2 = inlined_call_operand.vmem [shape: f32[20,32], index: 2, kind: output, shape index: {}]  }
   0x1   :  { %v18_v0 = vld [vmem:[%s129_s1 + $0x20] sm:$0x3]  ;;  %v17_v1 = vld [vmem:[%s129_s1 + $0x18] sm:$0xff]  ;;  %v16_v2 = vld [vmem:[%s129_s1 + $0x10] sm:$0xff] }
   0x2   :  { %72 = vmatpush.msk.msra.mxu2 %vm29_vm0, %v18_v0  ;;  %67 = vmatpush.msk.msra.mxu0 %vm29_vm0, %v18_v0  ;;  %v15_v3 = vld [vmem:[%s129_s1 + $0x8] sm:$0xff]  ;;  %v14_v4 = vld [vmem:[%s129_s1] sm:$0xff]  ;;  %v13_v5 = vld [vmem:[%s130_s0 + $0x10] sm:$0xff] }
   0x3   :  { %71 = vmatpush.msk.msra.mxu1 %vm29_vm0, %v18_v0  ;;  %v11_v6 = vld [vmem:[%s130_s0] sm:$0xff]  ;;  %v12_v7 = vld [vmem:[%s130_s0 + $0x8] sm:$0xff] }
   0x4   :  { %74 = vmatpush.msra.mxu2 %v17_v1  ;;  %45 = vmatpush.msra.mxu0 %v17_v1 }
   0x5   :  { %73 = vmatpush.msra.mxu1 %v17_v1 }
   0x6   :  { %76 = vmatpush.msra.mxu2 %v16_v2  ;;  %46 = vmatpush.msra.mxu0 %v16_v2 }
   0x7   :  { %75 = vmatpush.msra.mxu1 %v16_v2 }
   0x8   :  { %78 = vmatpush.msra.mxu2 %v15_v3  ;;  %47 = vmatpush.msra.mxu0 %v15_v3 }
   0x9   :  { %77 = vmatpush.msra.mxu1 %v15_v3 }
   0xa   :  { %80 = vmatpush.msra.mxu2 %v14_v4  ;;  %48 = vmatpush.msra.mxu0 %v14_v4 }
   0xb   :  { %70 = vmatmul.msk.f32.vlgmr.msra.gmra.mxu2 %vm19_vm1, %v13_v5  ;;  %79 = vmatpush.msra.mxu1 %v14_v4 }
   0xc   :  { %68 = vmatmul.msk.f32.vlgmr.msra.gmra.mxu0 %vm19_vm1, %v11_v6  ;;  %69 = vmatmul.msk.f32.vlgmr.msra.gmra.mxu1 %vm19_vm1, %v12_v7 }
  0x89   :  { %v50_v8 = vpop.f32.mrf.mxu0  ;;  %v53_v9 = vpop.f32.mrf.mxu1 }
  0x8a   :  { %60 = vst.msk [vmem:[%s131_s2] sm:$0xff] %vm59_vm2, %v50_v8 }
  0x8b   :  { %61 = vst.msk [vmem:[%s131_s2 + $0x8] sm:$0xff] %vm59_vm2, %v53_v9 }
  0x8e   :  { %v56_v10 = vpop.f32.mrf.mxu2 }
  0x8f   :  { %62 = vst.msk [vmem:[%s131_s2 + $0x10] sm:$0xff] %vm59_vm2, %v56_v10 }

// kernel: integer_pow.1
= control target key start
LH: loop header
LB: loop body
LE: loop exit
PB: predicated region body
PF: predicated region fallthrough
CT: control target
= control target key end

     0   :  { %s34_s0 = inlined_call_operand.vmem [shape: f32[32], index: 0, kind: input, shape index: {}, may-alias: {0,1}]   ;;  %s35_s1 = inlined_call_operand.vmem [shape: f32[32], index: 1, kind: input, shape index: {}, may-alias: {0,1}]   ;;  %s36_s2 = inlined_call_operand.vmem [shape: f32[32], index: 2, kind: output, shape index: {}]  }
   0x1   :  { %v3_v0 = vld [vmem:[%s34_s0] sm:$0x1] }
   0x2   :  { %v4_v1 = vld [vmem:[%s35_s1] sm:$0x1] }
   0x3   :  { %v7_v2 = vmul.f32 %v4_v1, %v3_v0 }
   0x5   :  { %9 = vst [vmem:[%s36_s2] sm:$0x1] %v7_v2 }

// kernel: tile.8
= control target key start
LH: loop header
LB: loop body
LE: loop exit
PB: predicated region body
PF: predicated region fallthrough
CT: control target
= control target key end

     0   :  { %s28_s0 = inlined_call_operand.vmem [shape: f32[32], index: 0, kind: input, shape index: {}]   ;;  %s29_s1 = inlined_call_operand.vmem [shape: f32[10,32], index: 1, kind: output, shape index: {}]  }
   0x1   :  { %v4_v0 = vld [vmem:[%s28_s0] ss:$0 sm:$0xff] }
   0x2   :  { %5 = vst [vmem:[%s29_s1] sm:$0xff] %v4_v0 }
   0x3   :  { %8 = vst [vmem:[%s29_s1 + $0x8] sm:$0xff] %v4_v0 }

</bundles_post_ra>
